<compile_context>
chip_gen: v7x
topology: tpu7x:2x2x1
jax: 0.10.0
libtpu: 0.0.40
codegen_flags: <defaults>
</compile_context>

<pallas_src>
import functools
import math

import jax
import jax.numpy as jnp
from jax.experimental import pallas as pl
from jax.experimental.pallas import tpu as pltpu

C_IN = 3
C_OUT = 8

# TODO(synk): `inv_scale_factor` and `dropout_p` are undefined free variables in the
# original PyTorch snippet; we use inv_scale_factor = sqrt(attention width W+2)
# derived from the runtime shape and dropout_p = 0 (eval-mode identity).
V_SCALE = 0.2041241452316284


def _fused_attention_kernel(xp_ref, w1_ref, b1_ref, w2_ref, b2_ref, o_ref,
                            *, qk_scale, bb):
    """One grid step: 1x1 convs on pre-padded input, q/k/v, attention, softmax, out.

    xp_ref: (bb, C_IN, Hp, Wp)   VMEM  zero-padded input images for this step
    w*_ref: (C_OUT, C_IN)        SMEM  1x1 conv weights (scalar reads)
    b*_ref: (C_OUT,)             SMEM  conv biases (scalar reads)
    o_ref : (bb, C_OUT, Hp, Wp)  VMEM  output
    """
    for b in range(bb):
        planes = [xp_ref[b, ci] for ci in range(C_IN)]  # each (Hp, Wp) f32

        for co in range(C_OUT):
            # 1x1 conv == per-pixel channel mix with scalar weights from SMEM.
            v1c = planes[0] * w1_ref[co, 0]
            v2c = planes[0] * w2_ref[co, 0]
            for ci in range(1, C_IN):
                v1c = v1c + planes[ci] * w1_ref[co, ci]
                v2c = v2c + planes[ci] * w2_ref[co, ci]
            v1c = v1c + b1_ref[co]
            v2c = v2c + b2_ref[co]

            # q = s*0.1, k = (v1*v2)*0.5, v = s*V_SCALE.  The q/k constants and the
            # 1/inv_scale_factor are pre-folded into the k operand (qk_scale), so
            # the post-matmul chain feeding the softmax stays short.
            s = v1c + v2c                       # shared by q and v
            kk = (v1c * v2c) * qk_scale         # k with all qk scaling folded in

            # bf16 MXU operands, f32 accumulation (avoids f32 matmul emulation).
            s_bf = s.astype(jnp.bfloat16)
            kk_bf = kk.astype(jnp.bfloat16)

            qk = jnp.dot(s_bf, kk_bf, preferred_element_type=jnp.float32)

            # softmax along the last dim (EUP exp + approximate reciprocal).
            m = jnp.max(qk, axis=-1, keepdims=True)
            e = jnp.exp(qk - m)
            denom = jnp.sum(e, axis=-1, keepdims=True)
            soft = e * pl.reciprocal(denom, approx=True)

            # dropout with p = 0.0 is the identity.
            outc = jnp.dot(soft.astype(jnp.bfloat16), s_bf,
                           preferred_element_type=jnp.float32) * V_SCALE
            o_ref[b, co] = outc.astype(o_ref.dtype)


def _tensorcores_per_chip():
    """2 on v7x, otherwise 1 (v5e/v6e).  Defaults to 1 on any detection failure."""
    try:
        kind = jax.devices()[0].device_kind.lower()
    except Exception:
        return 1
    return 2 if ("v7" in kind or "7x" in kind) else 1


def model_forward(x, w1, b1, w2, b2):
    """x: (N, C_IN, H, W) f32 NCHW; w1/w2: (C_OUT, C_IN); b1/b2: (C_OUT,).
    Returns (N, C_OUT, H+2, W+2), matching the PyTorch Model.forward."""
    n, cin, h, w = x.shape
    assert cin == C_IN and h == w, "trailing-dim matmul requires H == W"
    hp, wp = h + 2, w + 2

    # Undefined in the original snippet -> derived from the attention width.
    inv_scale_factor = math.sqrt(float(wp))
    qk_scale = (0.1 * 0.5) / inv_scale_factor

    # Wrapper-side zero pad (padding=1 of the 1x1 conv).  ~7.7 KB extra HBM
    # traffic; removes misaligned in-kernel VMEM stores and the RAW hazard.
    xp = jnp.pad(x.astype(jnp.float32), ((0, 0), (0, 0), (1, 1), (1, 1)))

    # Generation-aware grid: one step per TensorCore.  v5e/v6e: single TC -> a
    # second grid step is pure overhead, so g=1.  v7x: 2 TCs -> split the batch
    # with CORE_PARALLEL so both cores are busy.
    cores = _tensorcores_per_chip()
    g = 2 if (cores == 2 and n >= 2 and n % 2 == 0) else 1
    bb = n // g
    dim_sem = (pltpu.CORE_PARALLEL,) if g == 2 else ("arbitrary",)

    kernel = functools.partial(_fused_attention_kernel, qk_scale=qk_scale, bb=bb)

    return pl.pallas_call(
        kernel,
        out_shape=jax.ShapeDtypeStruct((n, C_OUT, hp, wp), jnp.float32),
        grid_spec=pltpu.PrefetchScalarGridSpec(
            num_scalar_prefetch=0,
            grid=(g,),
            in_specs=[
                pl.BlockSpec((bb, C_IN, hp, wp), lambda i: (i, 0, 0, 0)),
                pl.BlockSpec(memory_space=pltpu.MemorySpace.SMEM),  # w1
                pl.BlockSpec(memory_space=pltpu.MemorySpace.SMEM),  # b1
                pl.BlockSpec(memory_space=pltpu.MemorySpace.SMEM),  # w2
                pl.BlockSpec(memory_space=pltpu.MemorySpace.SMEM),  # b2
            ],
            out_specs=pl.BlockSpec((bb, C_OUT, hp, wp), lambda i: (i, 0, 0, 0)),
        ),
        compiler_params=pltpu.CompilerParams(dimension_semantics=dim_sem),
    )(xp, w1.astype(jnp.float32), b1.astype(jnp.float32),
      w2.astype(jnp.float32), b2.astype(jnp.float32))


def reference_forward(x, w1, b1, w2, b2):
    """Pure-JAX f32 reference mirroring the PyTorch forward."""
    _, _, _, w_dim = x.shape
    inv_scale_factor = math.sqrt(float(w_dim + 2))
    xp = jnp.pad(x, ((0, 0), (0, 0), (1, 1), (1, 1)))
    v1 = jnp.einsum('oc,nchw->nohw', w1, xp) + b1[None, :, None, None]
    v2 = jnp.einsum('oc,nchw->nohw', w2, xp) + b2[None, :, None, None]
    q = (v1 + v2) * 0.1
    k = v1 * v2 * 0.5
    v = (v1 + v2) * V_SCALE
    qk = jnp.matmul(q, k)
    scaled = qk / inv_scale_factor
    soft = jax.nn.softmax(scaled, axis=-1)
    return jnp.matmul(soft, v)


if __name__ == "__main__":
    key = jax.random.PRNGKey(0)
    kx, kw1, kb1, kw2, kb2 = jax.random.split(key, 5)

    # Small shapes consistent with the module: batch=2, in-channels=3, spatial=16.
    N, H, W = 2, 16, 16
    x = jax.random.normal(kx, (N, C_IN, H, W), dtype=jnp.float32)

    # Conv2d(3, 8, 1) parameters as (C_OUT, C_IN) weight + (C_OUT,) bias.
    w1 = jax.random.normal(kw1, (C_OUT, C_IN), dtype=jnp.float32) * 0.3
    b1 = jax.random.normal(kb1, (C_OUT,), dtype=jnp.float32) * 0.1
    w2 = jax.random.normal(kw2, (C_OUT, C_IN), dtype=jnp.float32) * 0.3
    b2 = jax.random.normal(kb2, (C_OUT,), dtype=jnp.float32) * 0.1

    out = jax.block_until_ready(model_forward(x, w1, b1, w2, b2))
    ref = reference_forward(x, w1, b1, w2, b2)

    assert out.shape == (N, C_OUT, H + 2, W + 2), out.shape
    # Tolerance covers bf16 MXU operands (f32 accumulation) and the EUP
    # approximate reciprocal in the softmax.
    assert jnp.allclose(out, ref, rtol=1e-2, atol=1e-2), \
        float(jnp.max(jnp.abs(out - ref)))

    print("KERNEL_OK")
</pallas_src>

<mosaic_0001>
module attributes {stable_mosaic.version = 11 : i64} {
  func.func @_fused_attention_kernel(%arg0: i32, %arg1: memref<2x3x18x18xf32, #tpu.memory_space<vmem>>, %arg2: memref<8x3xf32, #tpu.memory_space<smem>>, %arg3: memref<8xf32, #tpu.memory_space<smem>>, %arg4: memref<8x3xf32, #tpu.memory_space<smem>>, %arg5: memref<8xf32, #tpu.memory_space<smem>>, %arg6: memref<2x8x18x18xf32, #tpu.memory_space<vmem>>) attributes {dimension_semantics = [#tpu.dimension_semantics<arbitrary>], iteration_bounds = array<i64: 1>, scalar_prefetch = 0 : i64, scratch_operands = 0 : i64, tpu.core_type = #tpu.core_type<tc>, window_params = [{transform_indices = @transform_0, window_bounds = array<i64: 2, 3, 18, 18>}, {transform_indices = @transform_1, window_bounds = array<i64: 8, 3>}, {transform_indices = @transform_2, window_bounds = array<i64: 8>}, {transform_indices = @transform_3, window_bounds = array<i64: 8, 3>}, {transform_indices = @transform_4, window_bounds = array<i64: 8>}, {transform_indices = @transform_5, window_bounds = array<i64: 2, 8, 18, 18>}]} {
    %c0 = arith.constant 0 : index
    %c0_0 = arith.constant 0 : index
    %c0_1 = arith.constant 0 : index
    %c0_2 = arith.constant 0 : index
    %0 = vector.load %arg1[%c0, %c0_0, %c0_1, %c0_2] : memref<2x3x18x18xf32, #tpu.memory_space<vmem>>, vector<1x1x18x18xf32>
    %1 = vector.shape_cast %0 : vector<1x1x18x18xf32> to vector<18x18xf32>
    %c0_3 = arith.constant 0 : index
    %c1 = arith.constant 1 : index
    %c0_4 = arith.constant 0 : index
    %c0_5 = arith.constant 0 : index
    %2 = vector.load %arg1[%c0_3, %c1, %c0_4, %c0_5] : memref<2x3x18x18xf32, #tpu.memory_space<vmem>>, vector<1x1x18x18xf32>
    %3 = vector.shape_cast %2 : vector<1x1x18x18xf32> to vector<18x18xf32>
    %c0_6 = arith.constant 0 : index
    %c2 = arith.constant 2 : index
    %c0_7 = arith.constant 0 : index
    %c0_8 = arith.constant 0 : index
    %4 = vector.load %arg1[%c0_6, %c2, %c0_7, %c0_8] : memref<2x3x18x18xf32, #tpu.memory_space<vmem>>, vector<1x1x18x18xf32>
    %5 = vector.shape_cast %4 : vector<1x1x18x18xf32> to vector<18x18xf32>
    %c0_9 = arith.constant 0 : index
    %c0_10 = arith.constant 0 : index
    %6 = memref.load %arg2[%c0_9, %c0_10] : memref<8x3xf32, #tpu.memory_space<smem>>
    %7 = vector.broadcast %6 : f32 to vector<18x18xf32>
    %8 = arith.mulf %1, %7 : vector<18x18xf32>
    %c0_11 = arith.constant 0 : index
    %c0_12 = arith.constant 0 : index
    %9 = memref.load %arg4[%c0_11, %c0_12] : memref<8x3xf32, #tpu.memory_space<smem>>
    %10 = vector.broadcast %9 : f32 to vector<18x18xf32>
    %11 = arith.mulf %1, %10 : vector<18x18xf32>
    %c0_13 = arith.constant 0 : index
    %c1_14 = arith.constant 1 : index
    %12 = memref.load %arg2[%c0_13, %c1_14] : memref<8x3xf32, #tpu.memory_space<smem>>
    %13 = vector.broadcast %12 : f32 to vector<18x18xf32>
    %14 = arith.mulf %3, %13 : vector<18x18xf32>
    %15 = arith.addf %8, %14 : vector<18x18xf32>
    %c0_15 = arith.constant 0 : index
    %c1_16 = arith.constant 1 : index
    %16 = memref.load %arg4[%c0_15, %c1_16] : memref<8x3xf32, #tpu.memory_space<smem>>
    %17 = vector.broadcast %16 : f32 to vector<18x18xf32>
    %18 = arith.mulf %3, %17 : vector<18x18xf32>
    %19 = arith.addf %11, %18 : vector<18x18xf32>
    %c0_17 = arith.constant 0 : index
    %c2_18 = arith.constant 2 : index
    %20 = memref.load %arg2[%c0_17, %c2_18] : memref<8x3xf32, #tpu.memory_space<smem>>
    %21 = vector.broadcast %20 : f32 to vector<18x18xf32>
    %22 = arith.mulf %5, %21 : vector<18x18xf32>
    %23 = arith.addf %15, %22 : vector<18x18xf32>
    %c0_19 = arith.constant 0 : index
    %c2_20 = arith.constant 2 : index
    %24 = memref.load %arg4[%c0_19, %c2_20] : memref<8x3xf32, #tpu.memory_space<smem>>
    %25 = vector.broadcast %24 : f32 to vector<18x18xf32>
    %26 = arith.mulf %5, %25 : vector<18x18xf32>
    %27 = arith.addf %19, %26 : vector<18x18xf32>
    %c0_21 = arith.constant 0 : index
    %28 = memref.load %arg3[%c0_21] : memref<8xf32, #tpu.memory_space<smem>>
    %29 = vector.broadcast %28 : f32 to vector<18x18xf32>
    %30 = arith.addf %23, %29 : vector<18x18xf32>
    %c0_22 = arith.constant 0 : index
    %31 = memref.load %arg5[%c0_22] : memref<8xf32, #tpu.memory_space<smem>>
    %32 = vector.broadcast %31 : f32 to vector<18x18xf32>
    %33 = arith.addf %27, %32 : vector<18x18xf32>
    %34 = arith.addf %30, %33 : vector<18x18xf32>
    %35 = arith.mulf %30, %33 : vector<18x18xf32>
    %cst = arith.constant 0.0117851133 : f32
    %36 = vector.broadcast %cst : f32 to vector<18x18xf32>
    %37 = arith.mulf %35, %36 : vector<18x18xf32>
    %38 = arith.truncf %34 : vector<18x18xf32> to vector<18x18xbf16>
    %39 = arith.truncf %37 : vector<18x18xf32> to vector<18x18xbf16>
    %cst_23 = arith.constant dense<0.000000e+00> : vector<18x18xf32>
    %40 = tpu.matmul %38, %39, %cst_23 {dimension_numbers = #tpu.dot_dimension_numbers<[1], [0], [0], [1], [0, 0, 1, 1], [], []>} : vector<18x18xbf16>, vector<18x18xbf16>, vector<18x18xf32> -> vector<18x18xf32>
    %cst_24 = arith.constant dense<0xFF800000> : vector<18xf32>
    %41 = vector.multi_reduction <maximumf>, %40, %cst_24 [1] : vector<18x18xf32> to vector<18xf32>
    %42 = vector.shape_cast %41 : vector<18xf32> to vector<18x1xf32>
    %43 = vector.broadcast %42 : vector<18x1xf32> to vector<18x18xf32>
    %44 = arith.subf %40, %43 : vector<18x18xf32>
    %45 = math.exp %44 : vector<18x18xf32>
    %cst_25 = arith.constant dense<0.000000e+00> : vector<18xf32>
    %46 = vector.multi_reduction <add>, %45, %cst_25 [1] : vector<18x18xf32> to vector<18xf32>
    %47 = vector.shape_cast %46 : vector<18xf32> to vector<18x1xf32>
    %48 = tpu.reciprocal %47 {approx = true} : vector<18x1xf32> -> vector<18x1xf32>
    %49 = vector.broadcast %48 : vector<18x1xf32> to vector<18x18xf32>
    %50 = arith.mulf %45, %49 : vector<18x18xf32>
    %51 = arith.truncf %50 : vector<18x18xf32> to vector<18x18xbf16>
    %cst_26 = arith.constant dense<0.000000e+00> : vector<18x18xf32>
    %52 = tpu.matmul %51, %38, %cst_26 {dimension_numbers = #tpu.dot_dimension_numbers<[1], [0], [0], [1], [0, 0, 1, 1], [], []>} : vector<18x18xbf16>, vector<18x18xbf16>, vector<18x18xf32> -> vector<18x18xf32>
    %cst_27 = arith.constant 0.204124153 : f32
    %53 = vector.broadcast %cst_27 : f32 to vector<18x18xf32>
    %54 = arith.mulf %52, %53 : vector<18x18xf32>
    %c0_28 = arith.constant 0 : index
    %c0_29 = arith.constant 0 : index
    %c0_30 = arith.constant 0 : index
    %c0_31 = arith.constant 0 : index
    %55 = vector.load %arg6[%c0_28, %c0_29, %c0_30, %c0_31] : memref<2x8x18x18xf32, #tpu.memory_space<vmem>>, vector<1x1x18x18xf32>
    %56 = vector.shape_cast %55 : vector<1x1x18x18xf32> to vector<18x18xf32>
    %57 = vector.shape_cast %54 : vector<18x18xf32> to vector<1x1x18x18xf32>
    tpu.vector_store %arg6[%c0_28, %c0_29, %c0_30, %c0_31], %57 {strides = array<i32>} : memref<2x8x18x18xf32, #tpu.memory_space<vmem>>, vector<1x1x18x18xf32>,
    %c1_32 = arith.constant 1 : index
    %c0_33 = arith.constant 0 : index
    %58 = memref.load %arg2[%c1_32, %c0_33] : memref<8x3xf32, #tpu.memory_space<smem>>
    %59 = vector.broadcast %58 : f32 to vector<18x18xf32>
    %60 = arith.mulf %1, %59 : vector<18x18xf32>
    %c1_34 = arith.constant 1 : index
    %c0_35 = arith.constant 0 : index
    %61 = memref.load %arg4[%c1_34, %c0_35] : memref<8x3xf32, #tpu.memory_space<smem>>
    %62 = vector.broadcast %61 : f32 to vector<18x18xf32>
    %63 = arith.mulf %1, %62 : vector<18x18xf32>
    %c1_36 = arith.constant 1 : index
    %c1_37 = arith.constant 1 : index
    %64 = memref.load %arg2[%c1_36, %c1_37] : memref<8x3xf32, #tpu.memory_space<smem>>
    %65 = vector.broadcast %64 : f32 to vector<18x18xf32>
    %66 = arith.mulf %3, %65 : vector<18x18xf32>
    %67 = arith.addf %60, %66 : vector<18x18xf32>
    %c1_38 = arith.constant 1 : index
    %c1_39 = arith.constant 1 : index
    %68 = memref.load %arg4[%c1_38, %c1_39] : memref<8x3xf32, #tpu.memory_space<smem>>
    %69 = vector.broadcast %68 : f32 to vector<18x18xf32>
    %70 = arith.mulf %3, %69 : vector<18x18xf32>
    %71 = arith.addf %63, %70 : vector<18x18xf32>
    %c1_40 = arith.constant 1 : index
    %c2_41 = arith.constant 2 : index
    %72 = memref.load %arg2[%c1_40, %c2_41] : memref<8x3xf32, #tpu.memory_space<smem>>
    %73 = vector.broadcast %72 : f32 to vector<18x18xf32>
    %74 = arith.mulf %5, %73 : vector<18x18xf32>
    %75 = arith.addf %67, %74 : vector<18x18xf32>
    %c1_42 = arith.constant 1 : index
    %c2_43 = arith.constant 2 : index
    %76 = memref.load %arg4[%c1_42, %c2_43] : memref<8x3xf32, #tpu.memory_space<smem>>
    %77 = vector.broadcast %76 : f32 to vector<18x18xf32>
    %78 = arith.mulf %5, %77 : vector<18x18xf32>
    %79 = arith.addf %71, %78 : vector<18x18xf32>
    %c1_44 = arith.constant 1 : index
    %80 = memref.load %arg3[%c1_44] : memref<8xf32, #tpu.memory_space<smem>>
    %81 = vector.broadcast %80 : f32 to vector<18x18xf32>
    %82 = arith.addf %75, %81 : vector<18x18xf32>
    %c1_45 = arith.constant 1 : index
    %83 = memref.load %arg5[%c1_45] : memref<8xf32, #tpu.memory_space<smem>>
    %84 = vector.broadcast %83 : f32 to vector<18x18xf32>
    %85 = arith.addf %79, %84 : vector<18x18xf32>
    %86 = arith.addf %82, %85 : vector<18x18xf32>
    %87 = arith.mulf %82, %85 : vector<18x18xf32>
    %cst_46 = arith.constant 0.0117851133 : f32
    %88 = vector.broadcast %cst_46 : f32 to vector<18x18xf32>
    %89 = arith.mulf %87, %88 : vector<18x18xf32>
    %90 = arith.truncf %86 : vector<18x18xf32> to vector<18x18xbf16>
    %91 = arith.truncf %89 : vector<18x18xf32> to vector<18x18xbf16>
    %cst_47 = arith.constant dense<0.000000e+00> : vector<18x18xf32>
    %92 = tpu.matmul %90, %91, %cst_47 {dimension_numbers = #tpu.dot_dimension_numbers<[1], [0], [0], [1], [0, 0, 1, 1], [], []>} : vector<18x18xbf16>, vector<18x18xbf16>, vector<18x18xf32> -> vector<18x18xf32>
    %cst_48 = arith.constant dense<0xFF800000> : vector<18xf32>
    %93 = vector.multi_reduction <maximumf>, %92, %cst_48 [1] : vector<18x18xf32> to vector<18xf32>
    %94 = vector.shape_cast %93 : vector<18xf32> to vector<18x1xf32>
    %95 = vector.broadcast %94 : vector<18x1xf32> to vector<18x18xf32>
    %96 = arith.subf %92, %95 : vector<18x18xf32>
    %97 = math.exp %96 : vector<18x18xf32>
    %cst_49 = arith.constant dense<0.000000e+00> : vector<18xf32>
    %98 = vector.multi_reduction <add>, %97, %cst_49 [1] : vector<18x18xf32> to vector<18xf32>
    %99 = vector.shape_cast %98 : vector<18xf32> to vector<18x1xf32>
    %100 = tpu.reciprocal %99 {approx = true} : vector<18x1xf32> -> vector<18x1xf32>
    %101 = vector.broadcast %100 : vector<18x1xf32> to vector<18x18xf32>
    %102 = arith.mulf %97, %101 : vector<18x18xf32>
    %103 = arith.truncf %102 : vector<18x18xf32> to vector<18x18xbf16>
    %cst_50 = arith.constant dense<0.000000e+00> : vector<18x18xf32>
    %104 = tpu.matmul %103, %90, %cst_50 {dimension_numbers = #tpu.dot_dimension_numbers<[1], [0], [0], [1], [0, 0, 1, 1], [], []>} : vector<18x18xbf16>, vector<18x18xbf16>, vector<18x18xf32> -> vector<18x18xf32>
    %cst_51 = arith.constant 0.204124153 : f32
    %105 = vector.broadcast %cst_51 : f32 to vector<18x18xf32>
    %106 = arith.mulf %104, %105 : vector<18x18xf32>
    %c0_52 = arith.constant 0 : index
    %c1_53 = arith.constant 1 : index
    %c0_54 = arith.constant 0 : index
    %c0_55 = arith.constant 0 : index
    %107 = vector.load %arg6[%c0_52, %c1_53, %c0_54, %c0_55] : memref<2x8x18x18xf32, #tpu.memory_space<vmem>>, vector<1x1x18x18xf32>
    %108 = vector.shape_cast %107 : vector<1x1x18x18xf32> to vector<18x18xf32>
    %109 = vector.shape_cast %106 : vector<18x18xf32> to vector<1x1x18x18xf32>
    tpu.vector_store %arg6[%c0_52, %c1_53, %c0_54, %c0_55], %109 {strides = array<i32>} : memref<2x8x18x18xf32, #tpu.memory_space<vmem>>, vector<1x1x18x18xf32>,
    %c2_56 = arith.constant 2 : index
    %c0_57 = arith.constant 0 : index
    %110 = memref.load %arg2[%c2_56, %c0_57] : memref<8x3xf32, #tpu.memory_space<smem>>
    %111 = vector.broadcast %110 : f32 to vector<18x18xf32>
    %112 = arith.mulf %1, %111 : vector<18x18xf32>
    %c2_58 = arith.constant 2 : index
    %c0_59 = arith.constant 0 : index
    %113 = memref.load %arg4[%c2_58, %c0_59] : memref<8x3xf32, #tpu.memory_space<smem>>
    %114 = vector.broadcast %113 : f32 to vector<18x18xf32>
    %115 = arith.mulf %1, %114 : vector<18x18xf32>
    %c2_60 = arith.constant 2 : index
    %c1_61 = arith.constant 1 : index
    %116 = memref.load %arg2[%c2_60, %c1_61] : memref<8x3xf32, #tpu.memory_space<smem>>
    %117 = vector.broadcast %116 : f32 to vector<18x18xf32>
    %118 = arith.mulf %3, %117 : vector<18x18xf32>
    %119 = arith.addf %112, %118 : vector<18x18xf32>
    %c2_62 = arith.constant 2 : index
    %c1_63 = arith.constant 1 : index
    %120 = memref.load %arg4[%c2_62, %c1_63] : memref<8x3xf32, #tpu.memory_space<smem>>
    %121 = vector.broadcast %120 : f32 to vector<18x18xf32>
    %122 = arith.mulf %3, %121 : vector<18x18xf32>
    %123 = arith.addf %115, %122 : vector<18x18xf32>
    %c2_64 = arith.constant 2 : index
    %c2_65 = arith.constant 2 : index
    %124 = memref.load %arg2[%c2_64, %c2_65] : memref<8x3xf32, #tpu.memory_space<smem>>
    %125 = vector.broadcast %124 : f32 to vector<18x18xf32>
    %126 = arith.mulf %5, %125 : vector<18x18xf32>
    %127 = arith.addf %119, %126 : vector<18x18xf32>
    %c2_66 = arith.constant 2 : index
    %c2_67 = arith.constant 2 : index
    %128 = memref.load %arg4[%c2_66, %c2_67] : memref<8x3xf32, #tpu.memory_space<smem>>
    %129 = vector.broadcast %128 : f32 to vector<18x18xf32>
    %130 = arith.mulf %5, %129 : vector<18x18xf32>
    %131 = arith.addf %123, %130 : vector<18x18xf32>
    %c2_68 = arith.constant 2 : index
    %132 = memref.load %arg3[%c2_68] : memref<8xf32, #tpu.memory_space<smem>>
    %133 = vector.broadcast %132 : f32 to vector<18x18xf32>
    %134 = arith.addf %127, %133 : vector<18x18xf32>
    %c2_69 = arith.constant 2 : index
    %135 = memref.load %arg5[%c2_69] : memref<8xf32, #tpu.memory_space<smem>>
    %136 = vector.broadcast %135 : f32 to vector<18x18xf32>
    %137 = arith.addf %131, %136 : vector<18x18xf32>
    %138 = arith.addf %134, %137 : vector<18x18xf32>
    %139 = arith.mulf %134, %137 : vector<18x18xf32>
    %cst_70 = arith.constant 0.0117851133 : f32
    %140 = vector.broadcast %cst_70 : f32 to vector<18x18xf32>
    %141 = arith.mulf %139, %140 : vector<18x18xf32>
    %142 = arith.truncf %138 : vector<18x18xf32> to vector<18x18xbf16>
    %143 = arith.truncf %141 : vector<18x18xf32> to vector<18x18xbf16>
    %cst_71 = arith.constant dense<0.000000e+00> : vector<18x18xf32>
    %144 = tpu.matmul %142, %143, %cst_71 {dimension_numbers = #tpu.dot_dimension_numbers<[1], [0], [0], [1], [0, 0, 1, 1], [], []>} : vector<18x18xbf16>, vector<18x18xbf16>, vector<18x18xf32> -> vector<18x18xf32>
    %cst_72 = arith.constant dense<0xFF800000> : vector<18xf32>
    %145 = vector.multi_reduction <maximumf>, %144, %cst_72 [1] : vector<18x18xf32> to vector<18xf32>
    %146 = vector.shape_cast %145 : vector<18xf32> to vector<18x1xf32>
    %147 = vector.broadcast %146 : vector<18x1xf32> to vector<18x18xf32>
    %148 = arith.subf %144, %147 : vector<18x18xf32>
    %149 = math.exp %148 : vector<18x18xf32>
    %cst_73 = arith.constant dense<0.000000e+00> : vector<18xf32>
    %150 = vector.multi_reduction <add>, %149, %cst_73 [1] : vector<18x18xf32> to vector<18xf32>
    %151 = vector.shape_cast %150 : vector<18xf32> to vector<18x1xf32>
    %152 = tpu.reciprocal %151 {approx = true} : vector<18x1xf32> -> vector<18x1xf32>
    %153 = vector.broadcast %152 : vector<18x1xf32> to vector<18x18xf32>
    %154 = arith.mulf %149, %153 : vector<18x18xf32>
    %155 = arith.truncf %154 : vector<18x18xf32> to vector<18x18xbf16>
    %cst_74 = arith.constant dense<0.000000e+00> : vector<18x18xf32>
    %156 = tpu.matmul %155, %142, %cst_74 {dimension_numbers = #tpu.dot_dimension_numbers<[1], [0], [0], [1], [0, 0, 1, 1], [], []>} : vector<18x18xbf16>, vector<18x18xbf16>, vector<18x18xf32> -> vector<18x18xf32>
    %cst_75 = arith.constant 0.204124153 : f32
    %157 = vector.broadcast %cst_75 : f32 to vector<18x18xf32>
    %158 = arith.mulf %156, %157 : vector<18x18xf32>
    %c0_76 = arith.constant 0 : index
    %c2_77 = arith.constant 2 : index
    %c0_78 = arith.constant 0 : index
    %c0_79 = arith.constant 0 : index
    %159 = vector.load %arg6[%c0_76, %c2_77, %c0_78, %c0_79] : memref<2x8x18x18xf32, #tpu.memory_space<vmem>>, vector<1x1x18x18xf32>
    %160 = vector.shape_cast %159 : vector<1x1x18x18xf32> to vector<18x18xf32>
    %161 = vector.shape_cast %158 : vector<18x18xf32> to vector<1x1x18x18xf32>
    tpu.vector_store %arg6[%c0_76, %c2_77, %c0_78, %c0_79], %161 {strides = array<i32>} : memref<2x8x18x18xf32, #tpu.memory_space<vmem>>, vector<1x1x18x18xf32>,
    %c3 = arith.constant 3 : index
    %c0_80 = arith.constant 0 : index
    %162 = memref.load %arg2[%c3, %c0_80] : memref<8x3xf32, #tpu.memory_space<smem>>
    %163 = vector.broadcast %162 : f32 to vector<18x18xf32>
    %164 = arith.mulf %1, %163 : vector<18x18xf32>
    %c3_81 = arith.constant 3 : index
    %c0_82 = arith.constant 0 : index
    %165 = memref.load %arg4[%c3_81, %c0_82] : memref<8x3xf32, #tpu.memory_space<smem>>
    %166 = vector.broadcast %165 : f32 to vector<18x18xf32>
    %167 = arith.mulf %1, %166 : vector<18x18xf32>
    %c3_83 = arith.constant 3 : index
    %c1_84 = arith.constant 1 : index
    %168 = memref.load %arg2[%c3_83, %c1_84] : memref<8x3xf32, #tpu.memory_space<smem>>
    %169 = vector.broadcast %168 : f32 to vector<18x18xf32>
    %170 = arith.mulf %3, %169 : vector<18x18xf32>
    %171 = arith.addf %164, %170 : vector<18x18xf32>
    %c3_85 = arith.constant 3 : index
    %c1_86 = arith.constant 1 : index
    %172 = memref.load %arg4[%c3_85, %c1_86] : memref<8x3xf32, #tpu.memory_space<smem>>
    %173 = vector.broadcast %172 : f32 to vector<18x18xf32>
    %174 = arith.mulf %3, %173 : vector<18x18xf32>
    %175 = arith.addf %167, %174 : vector<18x18xf32>
    %c3_87 = arith.constant 3 : index
    %c2_88 = arith.constant 2 : index
    %176 = memref.load %arg2[%c3_87, %c2_88] : memref<8x3xf32, #tpu.memory_space<smem>>
    %177 = vector.broadcast %176 : f32 to vector<18x18xf32>
    %178 = arith.mulf %5, %177 : vector<18x18xf32>
    %179 = arith.addf %171, %178 : vector<18x18xf32>
    %c3_89 = arith.constant 3 : index
    %c2_90 = arith.constant 2 : index
    %180 = memref.load %arg4[%c3_89, %c2_90] : memref<8x3xf32, #tpu.memory_space<smem>>
    %181 = vector.broadcast %180 : f32 to vector<18x18xf32>
    %182 = arith.mulf %5, %181 : vector<18x18xf32>
    %183 = arith.addf %175, %182 : vector<18x18xf32>
    %c3_91 = arith.constant 3 : index
    %184 = memref.load %arg3[%c3_91] : memref<8xf32, #tpu.memory_space<smem>>
    %185 = vector.broadcast %184 : f32 to vector<18x18xf32>
    %186 = arith.addf %179, %185 : vector<18x18xf32>
    %c3_92 = arith.constant 3 : index
    %187 = memref.load %arg5[%c3_92] : memref<8xf32, #tpu.memory_space<smem>>
    %188 = vector.broadcast %187 : f32 to vector<18x18xf32>
    %189 = arith.addf %183, %188 : vector<18x18xf32>
    %190 = arith.addf %186, %189 : vector<18x18xf32>
    %191 = arith.mulf %186, %189 : vector<18x18xf32>
    %cst_93 = arith.constant 0.0117851133 : f32
    %192 = vector.broadcast %cst_93 : f32 to vector<18x18xf32>
    %193 = arith.mulf %191, %192 : vector<18x18xf32>
    %194 = arith.truncf %190 : vector<18x18xf32> to vector<18x18xbf16>
    %195 = arith.truncf %193 : vector<18x18xf32> to vector<18x18xbf16>
    %cst_94 = arith.constant dense<0.000000e+00> : vector<18x18xf32>
    %196 = tpu.matmul %194, %195, %cst_94 {dimension_numbers = #tpu.dot_dimension_numbers<[1], [0], [0], [1], [0, 0, 1, 1], [], []>} : vector<18x18xbf16>, vector<18x18xbf16>, vector<18x18xf32> -> vector<18x18xf32>
    %cst_95 = arith.constant dense<0xFF800000> : vector<18xf32>
    %197 = vector.multi_reduction <maximumf>, %196, %cst_95 [1] : vector<18x18xf32> to vector<18xf32>
    %198 = vector.shape_cast %197 : vector<18xf32> to vector<18x1xf32>
    %199 = vector.broadcast %198 : vector<18x1xf32> to vector<18x18xf32>
    %200 = arith.subf %196, %199 : vector<18x18xf32>
    %201 = math.exp %200 : vector<18x18xf32>
    %cst_96 = arith.constant dense<0.000000e+00> : vector<18xf32>
    %202 = vector.multi_reduction <add>, %201, %cst_96 [1] : vector<18x18xf32> to vector<18xf32>
    %203 = vector.shape_cast %202 : vector<18xf32> to vector<18x1xf32>
    %204 = tpu.reciprocal %203 {approx = true} : vector<18x1xf32> -> vector<18x1xf32>
    %205 = vector.broadcast %204 : vector<18x1xf32> to vector<18x18xf32>
    %206 = arith.mulf %201, %205 : vector<18x18xf32>
    %207 = arith.truncf %206 : vector<18x18xf32> to vector<18x18xbf16>
    %cst_97 = arith.constant dense<0.000000e+00> : vector<18x18xf32>
    %208 = tpu.matmul %207, %194, %cst_97 {dimension_numbers = #tpu.dot_dimension_numbers<[1], [0], [0], [1], [0, 0, 1, 1], [], []>} : vector<18x18xbf16>, vector<18x18xbf16>, vector<18x18xf32> -> vector<18x18xf32>
    %cst_98 = arith.constant 0.204124153 : f32
    %209 = vector.broadcast %cst_98 : f32 to vector<18x18xf32>
    %210 = arith.mulf %208, %209 : vector<18x18xf32>
    %c0_99 = arith.constant 0 : index
    %c3_100 = arith.constant 3 : index
    %c0_101 = arith.constant 0 : index
    %c0_102 = arith.constant 0 : index
    %211 = vector.load %arg6[%c0_99, %c3_100, %c0_101, %c0_102] : memref<2x8x18x18xf32, #tpu.memory_space<vmem>>, vector<1x1x18x18xf32>
    %212 = vector.shape_cast %211 : vector<1x1x18x18xf32> to vector<18x18xf32>
    %213 = vector.shape_cast %210 : vector<18x18xf32> to vector<1x1x18x18xf32>
    tpu.vector_store %arg6[%c0_99, %c3_100, %c0_101, %c0_102], %213 {strides = array<i32>} : memref<2x8x18x18xf32, #tpu.memory_space<vmem>>, vector<1x1x18x18xf32>,
    %c4 = arith.constant 4 : index
    %c0_103 = arith.constant 0 : index
    %214 = memref.load %arg2[%c4, %c0_103] : memref<8x3xf32, #tpu.memory_space<smem>>
    %215 = vector.broadcast %214 : f32 to vector<18x18xf32>
    %216 = arith.mulf %1, %215 : vector<18x18xf32>
    %c4_104 = arith.constant 4 : index
    %c0_105 = arith.constant 0 : index
    %217 = memref.load %arg4[%c4_104, %c0_105] : memref<8x3xf32, #tpu.memory_space<smem>>
    %218 = vector.broadcast %217 : f32 to vector<18x18xf32>
    %219 = arith.mulf %1, %218 : vector<18x18xf32>
    %c4_106 = arith.constant 4 : index
    %c1_107 = arith.constant 1 : index
    %220 = memref.load %arg2[%c4_106, %c1_107] : memref<8x3xf32, #tpu.memory_space<smem>>
    %221 = vector.broadcast %220 : f32 to vector<18x18xf32>
    %222 = arith.mulf %3, %221 : vector<18x18xf32>
    %223 = arith.addf %216, %222 : vector<18x18xf32>
    %c4_108 = arith.constant 4 : index
    %c1_109 = arith.constant 1 : index
    %224 = memref.load %arg4[%c4_108, %c1_109] : memref<8x3xf32, #tpu.memory_space<smem>>
    %225 = vector.broadcast %224 : f32 to vector<18x18xf32>
    %226 = arith.mulf %3, %225 : vector<18x18xf32>
    %227 = arith.addf %219, %226 : vector<18x18xf32>
    %c4_110 = arith.constant 4 : index
    %c2_111 = arith.constant 2 : index
    %228 = memref.load %arg2[%c4_110, %c2_111] : memref<8x3xf32, #tpu.memory_space<smem>>
    %229 = vector.broadcast %228 : f32 to vector<18x18xf32>
    %230 = arith.mulf %5, %229 : vector<18x18xf32>
    %231 = arith.addf %223, %230 : vector<18x18xf32>
    %c4_112 = arith.constant 4 : index
    %c2_113 = arith.constant 2 : index
    %232 = memref.load %arg4[%c4_112, %c2_113] : memref<8x3xf32, #tpu.memory_space<smem>>
    %233 = vector.broadcast %232 : f32 to vector<18x18xf32>
    %234 = arith.mulf %5, %233 : vector<18x18xf32>
    %235 = arith.addf %227, %234 : vector<18x18xf32>
    %c4_114 = arith.constant 4 : index
    %236 = memref.load %arg3[%c4_114] : memref<8xf32, #tpu.memory_space<smem>>
    %237 = vector.broadcast %236 : f32 to vector<18x18xf32>
    %238 = arith.addf %231, %237 : vector<18x18xf32>
    %c4_115 = arith.constant 4 : index
    %239 = memref.load %arg5[%c4_115] : memref<8xf32, #tpu.memory_space<smem>>
    %240 = vector.broadcast %239 : f32 to vector<18x18xf32>
    %241 = arith.addf %235, %240 : vector<18x18xf32>
    %242 = arith.addf %238, %241 : vector<18x18xf32>
    %243 = arith.mulf %238, %241 : vector<18x18xf32>
    %cst_116 = arith.constant 0.0117851133 : f32
    %244 = vector.broadcast %cst_116 : f32 to vector<18x18xf32>
    %245 = arith.mulf %243, %244 : vector<18x18xf32>
    %246 = arith.truncf %242 : vector<18x18xf32> to vector<18x18xbf16>
    %247 = arith.truncf %245 : vector<18x18xf32> to vector<18x18xbf16>
    %cst_117 = arith.constant dense<0.000000e+00> : vector<18x18xf32>
    %248 = tpu.matmul %246, %247, %cst_117 {dimension_numbers = #tpu.dot_dimension_numbers<[1], [0], [0], [1], [0, 0, 1, 1], [], []>} : vector<18x18xbf16>, vector<18x18xbf16>, vector<18x18xf32> -> vector<18x18xf32>
    %cst_118 = arith.constant dense<0xFF800000> : vector<18xf32>
    %249 = vector.multi_reduction <maximumf>, %248, %cst_118 [1] : vector<18x18xf32> to vector<18xf32>
    %250 = vector.shape_cast %249 : vector<18xf32> to vector<18x1xf32>
    %251 = vector.broadcast %250 : vector<18x1xf32> to vector<18x18xf32>
    %252 = arith.subf %248, %251 : vector<18x18xf32>
    %253 = math.exp %252 : vector<18x18xf32>
    %cst_119 = arith.constant dense<0.000000e+00> : vector<18xf32>
    %254 = vector.multi_reduction <add>, %253, %cst_119 [1] : vector<18x18xf32> to vector<18xf32>
    %255 = vector.shape_cast %254 : vector<18xf32> to vector<18x1xf32>
    %256 = tpu.reciprocal %255 {approx = true} : vector<18x1xf32> -> vector<18x1xf32>
    %257 = vector.broadcast %256 : vector<18x1xf32> to vector<18x18xf32>
    %258 = arith.mulf %253, %257 : vector<18x18xf32>
    %259 = arith.truncf %258 : vector<18x18xf32> to vector<18x18xbf16>
    %cst_120 = arith.constant dense<0.000000e+00> : vector<18x18xf32>
    %260 = tpu.matmul %259, %246, %cst_120 {dimension_numbers = #tpu.dot_dimension_numbers<[1], [0], [0], [1], [0, 0, 1, 1], [], []>} : vector<18x18xbf16>, vector<18x18xbf16>, vector<18x18xf32> -> vector<18x18xf32>
    %cst_121 = arith.constant 0.204124153 : f32
    %261 = vector.broadcast %cst_121 : f32 to vector<18x18xf32>
    %262 = arith.mulf %260, %261 : vector<18x18xf32>
    %c0_122 = arith.constant 0 : index
    %c4_123 = arith.constant 4 : index
    %c0_124 = arith.constant 0 : index
    %c0_125 = arith.constant 0 : index
    %263 = vector.load %arg6[%c0_122, %c4_123, %c0_124, %c0_125] : memref<2x8x18x18xf32, #tpu.memory_space<vmem>>, vector<1x1x18x18xf32>
    %264 = vector.shape_cast %263 : vector<1x1x18x18xf32> to vector<18x18xf32>
    %265 = vector.shape_cast %262 : vector<18x18xf32> to vector<1x1x18x18xf32>
    tpu.vector_store %arg6[%c0_122, %c4_123, %c0_124, %c0_125], %265 {strides = array<i32>} : memref<2x8x18x18xf32, #tpu.memory_space<vmem>>, vector<1x1x18x18xf32>,
    %c5 = arith.constant 5 : index
    %c0_126 = arith.constant 0 : index
    %266 = memref.load %arg2[%c5, %c0_126] : memref<8x3xf32, #tpu.memory_space<smem>>
    %267 = vector.broadcast %266 : f32 to vector<18x18xf32>
    %268 = arith.mulf %1, %267 : vector<18x18xf32>
    %c5_127 = arith.constant 5 : index
    %c0_128 = arith.constant 0 : index
    %269 = memref.load %arg4[%c5_127, %c0_128] : memref<8x3xf32, #tpu.memory_space<smem>>
    %270 = vector.broadcast %269 : f32 to vector<18x18xf32>
    %271 = arith.mulf %1, %270 : vector<18x18xf32>
    %c5_129 = arith.constant 5 : index
    %c1_130 = arith.constant 1 : index
    %272 = memref.load %arg2[%c5_129, %c1_130] : memref<8x3xf32, #tpu.memory_space<smem>>
    %273 = vector.broadcast %272 : f32 to vector<18x18xf32>
    %274 = arith.mulf %3, %273 : vector<18x18xf32>
    %275 = arith.addf %268, %274 : vector<18x18xf32>
    %c5_131 = arith.constant 5 : index
    %c1_132 = arith.constant 1 : index
    %276 = memref.load %arg4[%c5_131, %c1_132] : memref<8x3xf32, #tpu.memory_space<smem>>
    %277 = vector.broadcast %276 : f32 to vector<18x18xf32>
    %278 = arith.mulf %3, %277 : vector<18x18xf32>
    %279 = arith.addf %271, %278 : vector<18x18xf32>
    %c5_133 = arith.constant 5 : index
    %c2_134 = arith.constant 2 : index
    %280 = memref.load %arg2[%c5_133, %c2_134] : memref<8x3xf32, #tpu.memory_space<smem>>
    %281 = vector.broadcast %280 : f32 to vector<18x18xf32>
    %282 = arith.mulf %5, %281 : vector<18x18xf32>
    %283 = arith.addf %275, %282 : vector<18x18xf32>
    %c5_135 = arith.constant 5 : index
    %c2_136 = arith.constant 2 : index
    %284 = memref.load %arg4[%c5_135, %c2_136] : memref<8x3xf32, #tpu.memory_space<smem>>
    %285 = vector.broadcast %284 : f32 to vector<18x18xf32>
    %286 = arith.mulf %5, %285 : vector<18x18xf32>
    %287 = arith.addf %279, %286 : vector<18x18xf32>
    %c5_137 = arith.constant 5 : index
    %288 = memref.load %arg3[%c5_137] : memref<8xf32, #tpu.memory_space<smem>>
    %289 = vector.broadcast %288 : f32 to vector<18x18xf32>
    %290 = arith.addf %283, %289 : vector<18x18xf32>
    %c5_138 = arith.constant 5 : index
    %291 = memref.load %arg5[%c5_138] : memref<8xf32, #tpu.memory_space<smem>>
    %292 = vector.broadcast %291 : f32 to vector<18x18xf32>
    %293 = arith.addf %287, %292 : vector<18x18xf32>
    %294 = arith.addf %290, %293 : vector<18x18xf32>
    %295 = arith.mulf %290, %293 : vector<18x18xf32>
    %cst_139 = arith.constant 0.0117851133 : f32
    %296 = vector.broadcast %cst_139 : f32 to vector<18x18xf32>
    %297 = arith.mulf %295, %296 : vector<18x18xf32>
    %298 = arith.truncf %294 : vector<18x18xf32> to vector<18x18xbf16>
    %299 = arith.truncf %297 : vector<18x18xf32> to vector<18x18xbf16>
    %cst_140 = arith.constant dense<0.000000e+00> : vector<18x18xf32>
    %300 = tpu.matmul %298, %299, %cst_140 {dimension_numbers = #tpu.dot_dimension_numbers<[1], [0], [0], [1], [0, 0, 1, 1], [], []>} : vector<18x18xbf16>, vector<18x18xbf16>, vector<18x18xf32> -> vector<18x18xf32>
    %cst_141 = arith.constant dense<0xFF800000> : vector<18xf32>
    %301 = vector.multi_reduction <maximumf>, %300, %cst_141 [1] : vector<18x18xf32> to vector<18xf32>
    %302 = vector.shape_cast %301 : vector<18xf32> to vector<18x1xf32>
    %303 = vector.broadcast %302 : vector<18x1xf32> to vector<18x18xf32>
    %304 = arith.subf %300, %303 : vector<18x18xf32>
    %305 = math.exp %304 : vector<18x18xf32>
    %cst_142 = arith.constant dense<0.000000e+00> : vector<18xf32>
    %306 = vector.multi_reduction <add>, %305, %cst_142 [1] : vector<18x18xf32> to vector<18xf32>
    %307 = vector.shape_cast %306 : vector<18xf32> to vector<18x1xf32>
    %308 = tpu.reciprocal %307 {approx = true} : vector<18x1xf32> -> vector<18x1xf32>
    %309 = vector.broadcast %308 : vector<18x1xf32> to vector<18x18xf32>
    %310 = arith.mulf %305, %309 : vector<18x18xf32>
    %311 = arith.truncf %310 : vector<18x18xf32> to vector<18x18xbf16>
    %cst_143 = arith.constant dense<0.000000e+00> : vector<18x18xf32>
    %312 = tpu.matmul %311, %298, %cst_143 {dimension_numbers = #tpu.dot_dimension_numbers<[1], [0], [0], [1], [0, 0, 1, 1], [], []>} : vector<18x18xbf16>, vector<18x18xbf16>, vector<18x18xf32> -> vector<18x18xf32>
    %cst_144 = arith.constant 0.204124153 : f32
    %313 = vector.broadcast %cst_144 : f32 to vector<18x18xf32>
    %314 = arith.mulf %312, %313 : vector<18x18xf32>
    %c0_145 = arith.constant 0 : index
    %c5_146 = arith.constant 5 : index
    %c0_147 = arith.constant 0 : index
    %c0_148 = arith.constant 0 : index
    %315 = vector.load %arg6[%c0_145, %c5_146, %c0_147, %c0_148] : memref<2x8x18x18xf32, #tpu.memory_space<vmem>>, vector<1x1x18x18xf32>
    %316 = vector.shape_cast %315 : vector<1x1x18x18xf32> to vector<18x18xf32>
    %317 = vector.shape_cast %314 : vector<18x18xf32> to vector<1x1x18x18xf32>
    tpu.vector_store %arg6[%c0_145, %c5_146, %c0_147, %c0_148], %317 {strides = array<i32>} : memref<2x8x18x18xf32, #tpu.memory_space<vmem>>, vector<1x1x18x18xf32>,
    %c6 = arith.constant 6 : index
    %c0_149 = arith.constant 0 : index
    %318 = memref.load %arg2[%c6, %c0_149] : memref<8x3xf32, #tpu.memory_space<smem>>
    %319 = vector.broadcast %318 : f32 to vector<18x18xf32>
    %320 = arith.mulf %1, %319 : vector<18x18xf32>
    %c6_150 = arith.constant 6 : index
    %c0_151 = arith.constant 0 : index
    %321 = memref.load %arg4[%c6_150, %c0_151] : memref<8x3xf32, #tpu.memory_space<smem>>
    %322 = vector.broadcast %321 : f32 to vector<18x18xf32>
    %323 = arith.mulf %1, %322 : vector<18x18xf32>
    %c6_152 = arith.constant 6 : index
    %c1_153 = arith.constant 1 : index
    %324 = memref.load %arg2[%c6_152, %c1_153] : memref<8x3xf32, #tpu.memory_space<smem>>
    %325 = vector.broadcast %324 : f32 to vector<18x18xf32>
    %326 = arith.mulf %3, %325 : vector<18x18xf32>
    %327 = arith.addf %320, %326 : vector<18x18xf32>
    %c6_154 = arith.constant 6 : index
    %c1_155 = arith.constant 1 : index
    %328 = memref.load %arg4[%c6_154, %c1_155] : memref<8x3xf32, #tpu.memory_space<smem>>
    %329 = vector.broadcast %328 : f32 to vector<18x18xf32>
    %330 = arith.mulf %3, %329 : vector<18x18xf32>
    %331 = arith.addf %323, %330 : vector<18x18xf32>
    %c6_156 = arith.constant 6 : index
    %c2_157 = arith.constant 2 : index
    %332 = memref.load %arg2[%c6_156, %c2_157] : memref<8x3xf32, #tpu.memory_space<smem>>
    %333 = vector.broadcast %332 : f32 to vector<18x18xf32>
    %334 = arith.mulf %5, %333 : vector<18x18xf32>
    %335 = arith.addf %327, %334 : vector<18x18xf32>
    %c6_158 = arith.constant 6 : index
    %c2_159 = arith.constant 2 : index
    %336 = memref.load %arg4[%c6_158, %c2_159] : memref<8x3xf32, #tpu.memory_space<smem>>
    %337 = vector.broadcast %336 : f32 to vector<18x18xf32>
    %338 = arith.mulf %5, %337 : vector<18x18xf32>
    %339 = arith.addf %331, %338 : vector<18x18xf32>
    %c6_160 = arith.constant 6 : index
    %340 = memref.load %arg3[%c6_160] : memref<8xf32, #tpu.memory_space<smem>>
    %341 = vector.broadcast %340 : f32 to vector<18x18xf32>
    %342 = arith.addf %335, %341 : vector<18x18xf32>
    %c6_161 = arith.constant 6 : index
    %343 = memref.load %arg5[%c6_161] : memref<8xf32, #tpu.memory_space<smem>>
    %344 = vector.broadcast %343 : f32 to vector<18x18xf32>
    %345 = arith.addf %339, %344 : vector<18x18xf32>
    %346 = arith.addf %342, %345 : vector<18x18xf32>
    %347 = arith.mulf %342, %345 : vector<18x18xf32>
    %cst_162 = arith.constant 0.0117851133 : f32
    %348 = vector.broadcast %cst_162 : f32 to vector<18x18xf32>
    %349 = arith.mulf %347, %348 : vector<18x18xf32>
    %350 = arith.truncf %346 : vector<18x18xf32> to vector<18x18xbf16>
    %351 = arith.truncf %349 : vector<18x18xf32> to vector<18x18xbf16>
    %cst_163 = arith.constant dense<0.000000e+00> : vector<18x18xf32>
    %352 = tpu.matmul %350, %351, %cst_163 {dimension_numbers = #tpu.dot_dimension_numbers<[1], [0], [0], [1], [0, 0, 1, 1], [], []>} : vector<18x18xbf16>, vector<18x18xbf16>, vector<18x18xf32> -> vector<18x18xf32>
    %cst_164 = arith.constant dense<0xFF800000> : vector<18xf32>
    %353 = vector.multi_reduction <maximumf>, %352, %cst_164 [1] : vector<18x18xf32> to vector<18xf32>
    %354 = vector.shape_cast %353 : vector<18xf32> to vector<18x1xf32>
    %355 = vector.broadcast %354 : vector<18x1xf32> to vector<18x18xf32>
    %356 = arith.subf %352, %355 : vector<18x18xf32>
    %357 = math.exp %356 : vector<18x18xf32>
    %cst_165 = arith.constant dense<0.000000e+00> : vector<18xf32>
    %358 = vector.multi_reduction <add>, %357, %cst_165 [1] : vector<18x18xf32> to vector<18xf32>
    %359 = vector.shape_cast %358 : vector<18xf32> to vector<18x1xf32>
    %360 = tpu.reciprocal %359 {approx = true} : vector<18x1xf32> -> vector<18x1xf32>
    %361 = vector.broadcast %360 : vector<18x1xf32> to vector<18x18xf32>
    %362 = arith.mulf %357, %361 : vector<18x18xf32>
    %363 = arith.truncf %362 : vector<18x18xf32> to vector<18x18xbf16>
    %cst_166 = arith.constant dense<0.000000e+00> : vector<18x18xf32>
    %364 = tpu.matmul %363, %350, %cst_166 {dimension_numbers = #tpu.dot_dimension_numbers<[1], [0], [0], [1], [0, 0, 1, 1], [], []>} : vector<18x18xbf16>, vector<18x18xbf16>, vector<18x18xf32> -> vector<18x18xf32>
    %cst_167 = arith.constant 0.204124153 : f32
    %365 = vector.broadcast %cst_167 : f32 to vector<18x18xf32>
    %366 = arith.mulf %364, %365 : vector<18x18xf32>
    %c0_168 = arith.constant 0 : index
    %c6_169 = arith.constant 6 : index
    %c0_170 = arith.constant 0 : index
    %c0_171 = arith.constant 0 : index
    %367 = vector.load %arg6[%c0_168, %c6_169, %c0_170, %c0_171] : memref<2x8x18x18xf32, #tpu.memory_space<vmem>>, vector<1x1x18x18xf32>
    %368 = vector.shape_cast %367 : vector<1x1x18x18xf32> to vector<18x18xf32>
    %369 = vector.shape_cast %366 : vector<18x18xf32> to vector<1x1x18x18xf32>
    tpu.vector_store %arg6[%c0_168, %c6_169, %c0_170, %c0_171], %369 {strides = array<i32>} : memref<2x8x18x18xf32, #tpu.memory_space<vmem>>, vector<1x1x18x18xf32>,
    %c7 = arith.constant 7 : index
    %c0_172 = arith.constant 0 : index
    %370 = memref.load %arg2[%c7, %c0_172] : memref<8x3xf32, #tpu.memory_space<smem>>
    %371 = vector.broadcast %370 : f32 to vector<18x18xf32>
    %372 = arith.mulf %1, %371 : vector<18x18xf32>
    %c7_173 = arith.constant 7 : index
    %c0_174 = arith.constant 0 : index
    %373 = memref.load %arg4[%c7_173, %c0_174] : memref<8x3xf32, #tpu.memory_space<smem>>
    %374 = vector.broadcast %373 : f32 to vector<18x18xf32>
    %375 = arith.mulf %1, %374 : vector<18x18xf32>
    %c7_175 = arith.constant 7 : index
    %c1_176 = arith.constant 1 : index
    %376 = memref.load %arg2[%c7_175, %c1_176] : memref<8x3xf32, #tpu.memory_space<smem>>
    %377 = vector.broadcast %376 : f32 to vector<18x18xf32>
    %378 = arith.mulf %3, %377 : vector<18x18xf32>
    %379 = arith.addf %372, %378 : vector<18x18xf32>
    %c7_177 = arith.constant 7 : index
    %c1_178 = arith.constant 1 : index
    %380 = memref.load %arg4[%c7_177, %c1_178] : memref<8x3xf32, #tpu.memory_space<smem>>
    %381 = vector.broadcast %380 : f32 to vector<18x18xf32>
    %382 = arith.mulf %3, %381 : vector<18x18xf32>
    %383 = arith.addf %375, %382 : vector<18x18xf32>
    %c7_179 = arith.constant 7 : index
    %c2_180 = arith.constant 2 : index
    %384 = memref.load %arg2[%c7_179, %c2_180] : memref<8x3xf32, #tpu.memory_space<smem>>
    %385 = vector.broadcast %384 : f32 to vector<18x18xf32>
    %386 = arith.mulf %5, %385 : vector<18x18xf32>
    %387 = arith.addf %379, %386 : vector<18x18xf32>
    %c7_181 = arith.constant 7 : index
    %c2_182 = arith.constant 2 : index
    %388 = memref.load %arg4[%c7_181, %c2_182] : memref<8x3xf32, #tpu.memory_space<smem>>
    %389 = vector.broadcast %388 : f32 to vector<18x18xf32>
    %390 = arith.mulf %5, %389 : vector<18x18xf32>
    %391 = arith.addf %383, %390 : vector<18x18xf32>
    %c7_183 = arith.constant 7 : index
    %392 = memref.load %arg3[%c7_183] : memref<8xf32, #tpu.memory_space<smem>>
    %393 = vector.broadcast %392 : f32 to vector<18x18xf32>
    %394 = arith.addf %387, %393 : vector<18x18xf32>
    %c7_184 = arith.constant 7 : index
    %395 = memref.load %arg5[%c7_184] : memref<8xf32, #tpu.memory_space<smem>>
    %396 = vector.broadcast %395 : f32 to vector<18x18xf32>
    %397 = arith.addf %391, %396 : vector<18x18xf32>
    %398 = arith.addf %394, %397 : vector<18x18xf32>
    %399 = arith.mulf %394, %397 : vector<18x18xf32>
    %cst_185 = arith.constant 0.0117851133 : f32
    %400 = vector.broadcast %cst_185 : f32 to vector<18x18xf32>
    %401 = arith.mulf %399, %400 : vector<18x18xf32>
    %402 = arith.truncf %398 : vector<18x18xf32> to vector<18x18xbf16>
    %403 = arith.truncf %401 : vector<18x18xf32> to vector<18x18xbf16>
    %cst_186 = arith.constant dense<0.000000e+00> : vector<18x18xf32>
    %404 = tpu.matmul %402, %403, %cst_186 {dimension_numbers = #tpu.dot_dimension_numbers<[1], [0], [0], [1], [0, 0, 1, 1], [], []>} : vector<18x18xbf16>, vector<18x18xbf16>, vector<18x18xf32> -> vector<18x18xf32>
    %cst_187 = arith.constant dense<0xFF800000> : vector<18xf32>
    %405 = vector.multi_reduction <maximumf>, %404, %cst_187 [1] : vector<18x18xf32> to vector<18xf32>
    %406 = vector.shape_cast %405 : vector<18xf32> to vector<18x1xf32>
    %407 = vector.broadcast %406 : vector<18x1xf32> to vector<18x18xf32>
    %408 = arith.subf %404, %407 : vector<18x18xf32>
    %409 = math.exp %408 : vector<18x18xf32>
    %cst_188 = arith.constant dense<0.000000e+00> : vector<18xf32>
    %410 = vector.multi_reduction <add>, %409, %cst_188 [1] : vector<18x18xf32> to vector<18xf32>
    %411 = vector.shape_cast %410 : vector<18xf32> to vector<18x1xf32>
    %412 = tpu.reciprocal %411 {approx = true} : vector<18x1xf32> -> vector<18x1xf32>
    %413 = vector.broadcast %412 : vector<18x1xf32> to vector<18x18xf32>
    %414 = arith.mulf %409, %413 : vector<18x18xf32>
    %415 = arith.truncf %414 : vector<18x18xf32> to vector<18x18xbf16>
    %cst_189 = arith.constant dense<0.000000e+00> : vector<18x18xf32>
    %416 = tpu.matmul %415, %402, %cst_189 {dimension_numbers = #tpu.dot_dimension_numbers<[1], [0], [0], [1], [0, 0, 1, 1], [], []>} : vector<18x18xbf16>, vector<18x18xbf16>, vector<18x18xf32> -> vector<18x18xf32>
    %cst_190 = arith.constant 0.204124153 : f32
    %417 = vector.broadcast %cst_190 : f32 to vector<18x18xf32>
    %418 = arith.mulf %416, %417 : vector<18x18xf32>
    %c0_191 = arith.constant 0 : index
    %c7_192 = arith.constant 7 : index
    %c0_193 = arith.constant 0 : index
    %c0_194 = arith.constant 0 : index
    %419 = vector.load %arg6[%c0_191, %c7_192, %c0_193, %c0_194] : memref<2x8x18x18xf32, #tpu.memory_space<vmem>>, vector<1x1x18x18xf32>
    %420 = vector.shape_cast %419 : vector<1x1x18x18xf32> to vector<18x18xf32>
    %421 = vector.shape_cast %418 : vector<18x18xf32> to vector<1x1x18x18xf32>
    tpu.vector_store %arg6[%c0_191, %c7_192, %c0_193, %c0_194], %421 {strides = array<i32>} : memref<2x8x18x18xf32, #tpu.memory_space<vmem>>, vector<1x1x18x18xf32>,
    %c1_195 = arith.constant 1 : index
    %c0_196 = arith.constant 0 : index
    %c0_197 = arith.constant 0 : index
    %c0_198 = arith.constant 0 : index
    %422 = vector.load %arg1[%c1_195, %c0_196, %c0_197, %c0_198] : memref<2x3x18x18xf32, #tpu.memory_space<vmem>>, vector<1x1x18x18xf32>
    %423 = vector.shape_cast %422 : vector<1x1x18x18xf32> to vector<18x18xf32>
    %c1_199 = arith.constant 1 : index
    %c1_200 = arith.constant 1 : index
    %c0_201 = arith.constant 0 : index
    %c0_202 = arith.constant 0 : index
    %424 = vector.load %arg1[%c1_199, %c1_200, %c0_201, %c0_202] : memref<2x3x18x18xf32, #tpu.memory_space<vmem>>, vector<1x1x18x18xf32>
    %425 = vector.shape_cast %424 : vector<1x1x18x18xf32> to vector<18x18xf32>
    %c1_203 = arith.constant 1 : index
    %c2_204 = arith.constant 2 : index
    %c0_205 = arith.constant 0 : index
    %c0_206 = arith.constant 0 : index
    %426 = vector.load %arg1[%c1_203, %c2_204, %c0_205, %c0_206] : memref<2x3x18x18xf32, #tpu.memory_space<vmem>>, vector<1x1x18x18xf32>
    %427 = vector.shape_cast %426 : vector<1x1x18x18xf32> to vector<18x18xf32>
    %c0_207 = arith.constant 0 : index
    %c0_208 = arith.constant 0 : index
    %428 = memref.load %arg2[%c0_207, %c0_208] : memref<8x3xf32, #tpu.memory_space<smem>>
    %429 = vector.broadcast %428 : f32 to vector<18x18xf32>
    %430 = arith.mulf %423, %429 : vector<18x18xf32>
    %c0_209 = arith.constant 0 : index
    %c0_210 = arith.constant 0 : index
    %431 = memref.load %arg4[%c0_209, %c0_210] : memref<8x3xf32, #tpu.memory_space<smem>>
    %432 = vector.broadcast %431 : f32 to vector<18x18xf32>
    %433 = arith.mulf %423, %432 : vector<18x18xf32>
    %c0_211 = arith.constant 0 : index
    %c1_212 = arith.constant 1 : index
    %434 = memref.load %arg2[%c0_211, %c1_212] : memref<8x3xf32, #tpu.memory_space<smem>>
    %435 = vector.broadcast %434 : f32 to vector<18x18xf32>
    %436 = arith.mulf %425, %435 : vector<18x18xf32>
    %437 = arith.addf %430, %436 : vector<18x18xf32>
    %c0_213 = arith.constant 0 : index
    %c1_214 = arith.constant 1 : index
    %438 = memref.load %arg4[%c0_213, %c1_214] : memref<8x3xf32, #tpu.memory_space<smem>>
    %439 = vector.broadcast %438 : f32 to vector<18x18xf32>
    %440 = arith.mulf %425, %439 : vector<18x18xf32>
    %441 = arith.addf %433, %440 : vector<18x18xf32>
    %c0_215 = arith.constant 0 : index
    %c2_216 = arith.constant 2 : index
    %442 = memref.load %arg2[%c0_215, %c2_216] : memref<8x3xf32, #tpu.memory_space<smem>>
    %443 = vector.broadcast %442 : f32 to vector<18x18xf32>
    %444 = arith.mulf %427, %443 : vector<18x18xf32>
    %445 = arith.addf %437, %444 : vector<18x18xf32>
    %c0_217 = arith.constant 0 : index
    %c2_218 = arith.constant 2 : index
    %446 = memref.load %arg4[%c0_217, %c2_218] : memref<8x3xf32, #tpu.memory_space<smem>>
    %447 = vector.broadcast %446 : f32 to vector<18x18xf32>
    %448 = arith.mulf %427, %447 : vector<18x18xf32>
    %449 = arith.addf %441, %448 : vector<18x18xf32>
    %c0_219 = arith.constant 0 : index
    %450 = memref.load %arg3[%c0_219] : memref<8xf32, #tpu.memory_space<smem>>
    %451 = vector.broadcast %450 : f32 to vector<18x18xf32>
    %452 = arith.addf %445, %451 : vector<18x18xf32>
    %c0_220 = arith.constant 0 : index
    %453 = memref.load %arg5[%c0_220] : memref<8xf32, #tpu.memory_space<smem>>
    %454 = vector.broadcast %453 : f32 to vector<18x18xf32>
    %455 = arith.addf %449, %454 : vector<18x18xf32>
    %456 = arith.addf %452, %455 : vector<18x18xf32>
    %457 = arith.mulf %452, %455 : vector<18x18xf32>
    %cst_221 = arith.constant 0.0117851133 : f32
    %458 = vector.broadcast %cst_221 : f32 to vector<18x18xf32>
    %459 = arith.mulf %457, %458 : vector<18x18xf32>
    %460 = arith.truncf %456 : vector<18x18xf32> to vector<18x18xbf16>
    %461 = arith.truncf %459 : vector<18x18xf32> to vector<18x18xbf16>
    %cst_222 = arith.constant dense<0.000000e+00> : vector<18x18xf32>
    %462 = tpu.matmul %460, %461, %cst_222 {dimension_numbers = #tpu.dot_dimension_numbers<[1], [0], [0], [1], [0, 0, 1, 1], [], []>} : vector<18x18xbf16>, vector<18x18xbf16>, vector<18x18xf32> -> vector<18x18xf32>
    %cst_223 = arith.constant dense<0xFF800000> : vector<18xf32>
    %463 = vector.multi_reduction <maximumf>, %462, %cst_223 [1] : vector<18x18xf32> to vector<18xf32>
    %464 = vector.shape_cast %463 : vector<18xf32> to vector<18x1xf32>
    %465 = vector.broadcast %464 : vector<18x1xf32> to vector<18x18xf32>
    %466 = arith.subf %462, %465 : vector<18x18xf32>
    %467 = math.exp %466 : vector<18x18xf32>
    %cst_224 = arith.constant dense<0.000000e+00> : vector<18xf32>
    %468 = vector.multi_reduction <add>, %467, %cst_224 [1] : vector<18x18xf32> to vector<18xf32>
    %469 = vector.shape_cast %468 : vector<18xf32> to vector<18x1xf32>
    %470 = tpu.reciprocal %469 {approx = true} : vector<18x1xf32> -> vector<18x1xf32>
    %471 = vector.broadcast %470 : vector<18x1xf32> to vector<18x18xf32>
    %472 = arith.mulf %467, %471 : vector<18x18xf32>
    %473 = arith.truncf %472 : vector<18x18xf32> to vector<18x18xbf16>
    %cst_225 = arith.constant dense<0.000000e+00> : vector<18x18xf32>
    %474 = tpu.matmul %473, %460, %cst_225 {dimension_numbers = #tpu.dot_dimension_numbers<[1], [0], [0], [1], [0, 0, 1, 1], [], []>} : vector<18x18xbf16>, vector<18x18xbf16>, vector<18x18xf32> -> vector<18x18xf32>
    %cst_226 = arith.constant 0.204124153 : f32
    %475 = vector.broadcast %cst_226 : f32 to vector<18x18xf32>
    %476 = arith.mulf %474, %475 : vector<18x18xf32>
    %c1_227 = arith.constant 1 : index
    %c0_228 = arith.constant 0 : index
    %c0_229 = arith.constant 0 : index
    %c0_230 = arith.constant 0 : index
    %477 = vector.load %arg6[%c1_227, %c0_228, %c0_229, %c0_230] : memref<2x8x18x18xf32, #tpu.memory_space<vmem>>, vector<1x1x18x18xf32>
    %478 = vector.shape_cast %477 : vector<1x1x18x18xf32> to vector<18x18xf32>
    %479 = vector.shape_cast %476 : vector<18x18xf32> to vector<1x1x18x18xf32>
    tpu.vector_store %arg6[%c1_227, %c0_228, %c0_229, %c0_230], %479 {strides = array<i32>} : memref<2x8x18x18xf32, #tpu.memory_space<vmem>>, vector<1x1x18x18xf32>,
    %c1_231 = arith.constant 1 : index
    %c0_232 = arith.constant 0 : index
    %480 = memref.load %arg2[%c1_231, %c0_232] : memref<8x3xf32, #tpu.memory_space<smem>>
    %481 = vector.broadcast %480 : f32 to vector<18x18xf32>
    %482 = arith.mulf %423, %481 : vector<18x18xf32>
    %c1_233 = arith.constant 1 : index
    %c0_234 = arith.constant 0 : index
    %483 = memref.load %arg4[%c1_233, %c0_234] : memref<8x3xf32, #tpu.memory_space<smem>>
    %484 = vector.broadcast %483 : f32 to vector<18x18xf32>
    %485 = arith.mulf %423, %484 : vector<18x18xf32>
    %c1_235 = arith.constant 1 : index
    %c1_236 = arith.constant 1 : index
    %486 = memref.load %arg2[%c1_235, %c1_236] : memref<8x3xf32, #tpu.memory_space<smem>>
    %487 = vector.broadcast %486 : f32 to vector<18x18xf32>
    %488 = arith.mulf %425, %487 : vector<18x18xf32>
    %489 = arith.addf %482, %488 : vector<18x18xf32>
    %c1_237 = arith.constant 1 : index
    %c1_238 = arith.constant 1 : index
    %490 = memref.load %arg4[%c1_237, %c1_238] : memref<8x3xf32, #tpu.memory_space<smem>>
    %491 = vector.broadcast %490 : f32 to vector<18x18xf32>
    %492 = arith.mulf %425, %491 : vector<18x18xf32>
    %493 = arith.addf %485, %492 : vector<18x18xf32>
    %c1_239 = arith.constant 1 : index
    %c2_240 = arith.constant 2 : index
    %494 = memref.load %arg2[%c1_239, %c2_240] : memref<8x3xf32, #tpu.memory_space<smem>>
    %495 = vector.broadcast %494 : f32 to vector<18x18xf32>
    %496 = arith.mulf %427, %495 : vector<18x18xf32>
    %497 = arith.addf %489, %496 : vector<18x18xf32>
    %c1_241 = arith.constant 1 : index
    %c2_242 = arith.constant 2 : index
    %498 = memref.load %arg4[%c1_241, %c2_242] : memref<8x3xf32, #tpu.memory_space<smem>>
    %499 = vector.broadcast %498 : f32 to vector<18x18xf32>
    %500 = arith.mulf %427, %499 : vector<18x18xf32>
    %501 = arith.addf %493, %500 : vector<18x18xf32>
    %c1_243 = arith.constant 1 : index
    %502 = memref.load %arg3[%c1_243] : memref<8xf32, #tpu.memory_space<smem>>
    %503 = vector.broadcast %502 : f32 to vector<18x18xf32>
    %504 = arith.addf %497, %503 : vector<18x18xf32>
    %c1_244 = arith.constant 1 : index
    %505 = memref.load %arg5[%c1_244] : memref<8xf32, #tpu.memory_space<smem>>
    %506 = vector.broadcast %505 : f32 to vector<18x18xf32>
    %507 = arith.addf %501, %506 : vector<18x18xf32>
    %508 = arith.addf %504, %507 : vector<18x18xf32>
    %509 = arith.mulf %504, %507 : vector<18x18xf32>
    %cst_245 = arith.constant 0.0117851133 : f32
    %510 = vector.broadcast %cst_245 : f32 to vector<18x18xf32>
    %511 = arith.mulf %509, %510 : vector<18x18xf32>
    %512 = arith.truncf %508 : vector<18x18xf32> to vector<18x18xbf16>
    %513 = arith.truncf %511 : vector<18x18xf32> to vector<18x18xbf16>
    %cst_246 = arith.constant dense<0.000000e+00> : vector<18x18xf32>
    %514 = tpu.matmul %512, %513, %cst_246 {dimension_numbers = #tpu.dot_dimension_numbers<[1], [0], [0], [1], [0, 0, 1, 1], [], []>} : vector<18x18xbf16>, vector<18x18xbf16>, vector<18x18xf32> -> vector<18x18xf32>
    %cst_247 = arith.constant dense<0xFF800000> : vector<18xf32>
    %515 = vector.multi_reduction <maximumf>, %514, %cst_247 [1] : vector<18x18xf32> to vector<18xf32>
    %516 = vector.shape_cast %515 : vector<18xf32> to vector<18x1xf32>
    %517 = vector.broadcast %516 : vector<18x1xf32> to vector<18x18xf32>
    %518 = arith.subf %514, %517 : vector<18x18xf32>
    %519 = math.exp %518 : vector<18x18xf32>
    %cst_248 = arith.constant dense<0.000000e+00> : vector<18xf32>
    %520 = vector.multi_reduction <add>, %519, %cst_248 [1] : vector<18x18xf32> to vector<18xf32>
    %521 = vector.shape_cast %520 : vector<18xf32> to vector<18x1xf32>
    %522 = tpu.reciprocal %521 {approx = true} : vector<18x1xf32> -> vector<18x1xf32>
    %523 = vector.broadcast %522 : vector<18x1xf32> to vector<18x18xf32>
    %524 = arith.mulf %519, %523 : vector<18x18xf32>
    %525 = arith.truncf %524 : vector<18x18xf32> to vector<18x18xbf16>
    %cst_249 = arith.constant dense<0.000000e+00> : vector<18x18xf32>
    %526 = tpu.matmul %525, %512, %cst_249 {dimension_numbers = #tpu.dot_dimension_numbers<[1], [0], [0], [1], [0, 0, 1, 1], [], []>} : vector<18x18xbf16>, vector<18x18xbf16>, vector<18x18xf32> -> vector<18x18xf32>
    %cst_250 = arith.constant 0.204124153 : f32
    %527 = vector.broadcast %cst_250 : f32 to vector<18x18xf32>
    %528 = arith.mulf %526, %527 : vector<18x18xf32>
    %c1_251 = arith.constant 1 : index
    %c1_252 = arith.constant 1 : index
    %c0_253 = arith.constant 0 : index
    %c0_254 = arith.constant 0 : index
    %529 = vector.load %arg6[%c1_251, %c1_252, %c0_253, %c0_254] : memref<2x8x18x18xf32, #tpu.memory_space<vmem>>, vector<1x1x18x18xf32>
    %530 = vector.shape_cast %529 : vector<1x1x18x18xf32> to vector<18x18xf32>
    %531 = vector.shape_cast %528 : vector<18x18xf32> to vector<1x1x18x18xf32>
    tpu.vector_store %arg6[%c1_251, %c1_252, %c0_253, %c0_254], %531 {strides = array<i32>} : memref<2x8x18x18xf32, #tpu.memory_space<vmem>>, vector<1x1x18x18xf32>,
    %c2_255 = arith.constant 2 : index
    %c0_256 = arith.constant 0 : index
    %532 = memref.load %arg2[%c2_255, %c0_256] : memref<8x3xf32, #tpu.memory_space<smem>>
    %533 = vector.broadcast %532 : f32 to vector<18x18xf32>
    %534 = arith.mulf %423, %533 : vector<18x18xf32>
    %c2_257 = arith.constant 2 : index
    %c0_258 = arith.constant 0 : index
    %535 = memref.load %arg4[%c2_257, %c0_258] : memref<8x3xf32, #tpu.memory_space<smem>>
    %536 = vector.broadcast %535 : f32 to vector<18x18xf32>
    %537 = arith.mulf %423, %536 : vector<18x18xf32>
    %c2_259 = arith.constant 2 : index
    %c1_260 = arith.constant 1 : index
    %538 = memref.load %arg2[%c2_259, %c1_260] : memref<8x3xf32, #tpu.memory_space<smem>>
    %539 = vector.broadcast %538 : f32 to vector<18x18xf32>
    %540 = arith.mulf %425, %539 : vector<18x18xf32>
    %541 = arith.addf %534, %540 : vector<18x18xf32>
    %c2_261 = arith.constant 2 : index
    %c1_262 = arith.constant 1 : index
    %542 = memref.load %arg4[%c2_261, %c1_262] : memref<8x3xf32, #tpu.memory_space<smem>>
    %543 = vector.broadcast %542 : f32 to vector<18x18xf32>
    %544 = arith.mulf %425, %543 : vector<18x18xf32>
    %545 = arith.addf %537, %544 : vector<18x18xf32>
    %c2_263 = arith.constant 2 : index
    %c2_264 = arith.constant 2 : index
    %546 = memref.load %arg2[%c2_263, %c2_264] : memref<8x3xf32, #tpu.memory_space<smem>>
    %547 = vector.broadcast %546 : f32 to vector<18x18xf32>
    %548 = arith.mulf %427, %547 : vector<18x18xf32>
    %549 = arith.addf %541, %548 : vector<18x18xf32>
    %c2_265 = arith.constant 2 : index
    %c2_266 = arith.constant 2 : index
    %550 = memref.load %arg4[%c2_265, %c2_266] : memref<8x3xf32, #tpu.memory_space<smem>>
    %551 = vector.broadcast %550 : f32 to vector<18x18xf32>
    %552 = arith.mulf %427, %551 : vector<18x18xf32>
    %553 = arith.addf %545, %552 : vector<18x18xf32>
    %c2_267 = arith.constant 2 : index
    %554 = memref.load %arg3[%c2_267] : memref<8xf32, #tpu.memory_space<smem>>
    %555 = vector.broadcast %554 : f32 to vector<18x18xf32>
    %556 = arith.addf %549, %555 : vector<18x18xf32>
    %c2_268 = arith.constant 2 : index
    %557 = memref.load %arg5[%c2_268] : memref<8xf32, #tpu.memory_space<smem>>
    %558 = vector.broadcast %557 : f32 to vector<18x18xf32>
    %559 = arith.addf %553, %558 : vector<18x18xf32>
    %560 = arith.addf %556, %559 : vector<18x18xf32>
    %561 = arith.mulf %556, %559 : vector<18x18xf32>
    %cst_269 = arith.constant 0.0117851133 : f32
    %562 = vector.broadcast %cst_269 : f32 to vector<18x18xf32>
    %563 = arith.mulf %561, %562 : vector<18x18xf32>
    %564 = arith.truncf %560 : vector<18x18xf32> to vector<18x18xbf16>
    %565 = arith.truncf %563 : vector<18x18xf32> to vector<18x18xbf16>
    %cst_270 = arith.constant dense<0.000000e+00> : vector<18x18xf32>
    %566 = tpu.matmul %564, %565, %cst_270 {dimension_numbers = #tpu.dot_dimension_numbers<[1], [0], [0], [1], [0, 0, 1, 1], [], []>} : vector<18x18xbf16>, vector<18x18xbf16>, vector<18x18xf32> -> vector<18x18xf32>
    %cst_271 = arith.constant dense<0xFF800000> : vector<18xf32>
    %567 = vector.multi_reduction <maximumf>, %566, %cst_271 [1] : vector<18x18xf32> to vector<18xf32>
    %568 = vector.shape_cast %567 : vector<18xf32> to vector<18x1xf32>
    %569 = vector.broadcast %568 : vector<18x1xf32> to vector<18x18xf32>
    %570 = arith.subf %566, %569 : vector<18x18xf32>
    %571 = math.exp %570 : vector<18x18xf32>
    %cst_272 = arith.constant dense<0.000000e+00> : vector<18xf32>
    %572 = vector.multi_reduction <add>, %571, %cst_272 [1] : vector<18x18xf32> to vector<18xf32>
    %573 = vector.shape_cast %572 : vector<18xf32> to vector<18x1xf32>
    %574 = tpu.reciprocal %573 {approx = true} : vector<18x1xf32> -> vector<18x1xf32>
    %575 = vector.broadcast %574 : vector<18x1xf32> to vector<18x18xf32>
    %576 = arith.mulf %571, %575 : vector<18x18xf32>
    %577 = arith.truncf %576 : vector<18x18xf32> to vector<18x18xbf16>
    %cst_273 = arith.constant dense<0.000000e+00> : vector<18x18xf32>
    %578 = tpu.matmul %577, %564, %cst_273 {dimension_numbers = #tpu.dot_dimension_numbers<[1], [0], [0], [1], [0, 0, 1, 1], [], []>} : vector<18x18xbf16>, vector<18x18xbf16>, vector<18x18xf32> -> vector<18x18xf32>
    %cst_274 = arith.constant 0.204124153 : f32
    %579 = vector.broadcast %cst_274 : f32 to vector<18x18xf32>
    %580 = arith.mulf %578, %579 : vector<18x18xf32>
    %c1_275 = arith.constant 1 : index
    %c2_276 = arith.constant 2 : index
    %c0_277 = arith.constant 0 : index
    %c0_278 = arith.constant 0 : index
    %581 = vector.load %arg6[%c1_275, %c2_276, %c0_277, %c0_278] : memref<2x8x18x18xf32, #tpu.memory_space<vmem>>, vector<1x1x18x18xf32>
    %582 = vector.shape_cast %581 : vector<1x1x18x18xf32> to vector<18x18xf32>
    %583 = vector.shape_cast %580 : vector<18x18xf32> to vector<1x1x18x18xf32>
    tpu.vector_store %arg6[%c1_275, %c2_276, %c0_277, %c0_278], %583 {strides = array<i32>} : memref<2x8x18x18xf32, #tpu.memory_space<vmem>>, vector<1x1x18x18xf32>,
    %c3_279 = arith.constant 3 : index
    %c0_280 = arith.constant 0 : index
    %584 = memref.load %arg2[%c3_279, %c0_280] : memref<8x3xf32, #tpu.memory_space<smem>>
    %585 = vector.broadcast %584 : f32 to vector<18x18xf32>
    %586 = arith.mulf %423, %585 : vector<18x18xf32>
    %c3_281 = arith.constant 3 : index
    %c0_282 = arith.constant 0 : index
    %587 = memref.load %arg4[%c3_281, %c0_282] : memref<8x3xf32, #tpu.memory_space<smem>>
    %588 = vector.broadcast %587 : f32 to vector<18x18xf32>
    %589 = arith.mulf %423, %588 : vector<18x18xf32>
    %c3_283 = arith.constant 3 : index
    %c1_284 = arith.constant 1 : index
    %590 = memref.load %arg2[%c3_283, %c1_284] : memref<8x3xf32, #tpu.memory_space<smem>>
    %591 = vector.broadcast %590 : f32 to vector<18x18xf32>
    %592 = arith.mulf %425, %591 : vector<18x18xf32>
    %593 = arith.addf %586, %592 : vector<18x18xf32>
    %c3_285 = arith.constant 3 : index
    %c1_286 = arith.constant 1 : index
    %594 = memref.load %arg4[%c3_285, %c1_286] : memref<8x3xf32, #tpu.memory_space<smem>>
    %595 = vector.broadcast %594 : f32 to vector<18x18xf32>
    %596 = arith.mulf %425, %595 : vector<18x18xf32>
    %597 = arith.addf %589, %596 : vector<18x18xf32>
    %c3_287 = arith.constant 3 : index
    %c2_288 = arith.constant 2 : index
    %598 = memref.load %arg2[%c3_287, %c2_288] : memref<8x3xf32, #tpu.memory_space<smem>>
    %599 = vector.broadcast %598 : f32 to vector<18x18xf32>
    %600 = arith.mulf %427, %599 : vector<18x18xf32>
    %601 = arith.addf %593, %600 : vector<18x18xf32>
    %c3_289 = arith.constant 3 : index
    %c2_290 = arith.constant 2 : index
    %602 = memref.load %arg4[%c3_289, %c2_290] : memref<8x3xf32, #tpu.memory_space<smem>>
    %603 = vector.broadcast %602 : f32 to vector<18x18xf32>
    %604 = arith.mulf %427, %603 : vector<18x18xf32>
    %605 = arith.addf %597, %604 : vector<18x18xf32>
    %c3_291 = arith.constant 3 : index
    %606 = memref.load %arg3[%c3_291] : memref<8xf32, #tpu.memory_space<smem>>
    %607 = vector.broadcast %606 : f32 to vector<18x18xf32>
    %608 = arith.addf %601, %607 : vector<18x18xf32>
    %c3_292 = arith.constant 3 : index
    %609 = memref.load %arg5[%c3_292] : memref<8xf32, #tpu.memory_space<smem>>
    %610 = vector.broadcast %609 : f32 to vector<18x18xf32>
    %611 = arith.addf %605, %610 : vector<18x18xf32>
    %612 = arith.addf %608, %611 : vector<18x18xf32>
    %613 = arith.mulf %608, %611 : vector<18x18xf32>
    %cst_293 = arith.constant 0.0117851133 : f32
    %614 = vector.broadcast %cst_293 : f32 to vector<18x18xf32>
    %615 = arith.mulf %613, %614 : vector<18x18xf32>
    %616 = arith.truncf %612 : vector<18x18xf32> to vector<18x18xbf16>
    %617 = arith.truncf %615 : vector<18x18xf32> to vector<18x18xbf16>
    %cst_294 = arith.constant dense<0.000000e+00> : vector<18x18xf32>
    %618 = tpu.matmul %616, %617, %cst_294 {dimension_numbers = #tpu.dot_dimension_numbers<[1], [0], [0], [1], [0, 0, 1, 1], [], []>} : vector<18x18xbf16>, vector<18x18xbf16>, vector<18x18xf32> -> vector<18x18xf32>
    %cst_295 = arith.constant dense<0xFF800000> : vector<18xf32>
    %619 = vector.multi_reduction <maximumf>, %618, %cst_295 [1] : vector<18x18xf32> to vector<18xf32>
    %620 = vector.shape_cast %619 : vector<18xf32> to vector<18x1xf32>
    %621 = vector.broadcast %620 : vector<18x1xf32> to vector<18x18xf32>
    %622 = arith.subf %618, %621 : vector<18x18xf32>
    %623 = math.exp %622 : vector<18x18xf32>
    %cst_296 = arith.constant dense<0.000000e+00> : vector<18xf32>
    %624 = vector.multi_reduction <add>, %623, %cst_296 [1] : vector<18x18xf32> to vector<18xf32>
    %625 = vector.shape_cast %624 : vector<18xf32> to vector<18x1xf32>
    %626 = tpu.reciprocal %625 {approx = true} : vector<18x1xf32> -> vector<18x1xf32>
    %627 = vector.broadcast %626 : vector<18x1xf32> to vector<18x18xf32>
    %628 = arith.mulf %623, %627 : vector<18x18xf32>
    %629 = arith.truncf %628 : vector<18x18xf32> to vector<18x18xbf16>
    %cst_297 = arith.constant dense<0.000000e+00> : vector<18x18xf32>
    %630 = tpu.matmul %629, %616, %cst_297 {dimension_numbers = #tpu.dot_dimension_numbers<[1], [0], [0], [1], [0, 0, 1, 1], [], []>} : vector<18x18xbf16>, vector<18x18xbf16>, vector<18x18xf32> -> vector<18x18xf32>
    %cst_298 = arith.constant 0.204124153 : f32
    %631 = vector.broadcast %cst_298 : f32 to vector<18x18xf32>
    %632 = arith.mulf %630, %631 : vector<18x18xf32>
    %c1_299 = arith.constant 1 : index
    %c3_300 = arith.constant 3 : index
    %c0_301 = arith.constant 0 : index
    %c0_302 = arith.constant 0 : index
    %633 = vector.load %arg6[%c1_299, %c3_300, %c0_301, %c0_302] : memref<2x8x18x18xf32, #tpu.memory_space<vmem>>, vector<1x1x18x18xf32>
    %634 = vector.shape_cast %633 : vector<1x1x18x18xf32> to vector<18x18xf32>
    %635 = vector.shape_cast %632 : vector<18x18xf32> to vector<1x1x18x18xf32>
    tpu.vector_store %arg6[%c1_299, %c3_300, %c0_301, %c0_302], %635 {strides = array<i32>} : memref<2x8x18x18xf32, #tpu.memory_space<vmem>>, vector<1x1x18x18xf32>,
    %c4_303 = arith.constant 4 : index
    %c0_304 = arith.constant 0 : index
    %636 = memref.load %arg2[%c4_303, %c0_304] : memref<8x3xf32, #tpu.memory_space<smem>>
    %637 = vector.broadcast %636 : f32 to vector<18x18xf32>
    %638 = arith.mulf %423, %637 : vector<18x18xf32>
    %c4_305 = arith.constant 4 : index
    %c0_306 = arith.constant 0 : index
    %639 = memref.load %arg4[%c4_305, %c0_306] : memref<8x3xf32, #tpu.memory_space<smem>>
    %640 = vector.broadcast %639 : f32 to vector<18x18xf32>
    %641 = arith.mulf %423, %640 : vector<18x18xf32>
    %c4_307 = arith.constant 4 : index
    %c1_308 = arith.constant 1 : index
    %642 = memref.load %arg2[%c4_307, %c1_308] : memref<8x3xf32, #tpu.memory_space<smem>>
    %643 = vector.broadcast %642 : f32 to vector<18x18xf32>
    %644 = arith.mulf %425, %643 : vector<18x18xf32>
    %645 = arith.addf %638, %644 : vector<18x18xf32>
    %c4_309 = arith.constant 4 : index
    %c1_310 = arith.constant 1 : index
    %646 = memref.load %arg4[%c4_309, %c1_310] : memref<8x3xf32, #tpu.memory_space<smem>>
    %647 = vector.broadcast %646 : f32 to vector<18x18xf32>
    %648 = arith.mulf %425, %647 : vector<18x18xf32>
    %649 = arith.addf %641, %648 : vector<18x18xf32>
    %c4_311 = arith.constant 4 : index
    %c2_312 = arith.constant 2 : index
    %650 = memref.load %arg2[%c4_311, %c2_312] : memref<8x3xf32, #tpu.memory_space<smem>>
    %651 = vector.broadcast %650 : f32 to vector<18x18xf32>
    %652 = arith.mulf %427, %651 : vector<18x18xf32>
    %653 = arith.addf %645, %652 : vector<18x18xf32>
    %c4_313 = arith.constant 4 : index
    %c2_314 = arith.constant 2 : index
    %654 = memref.load %arg4[%c4_313, %c2_314] : memref<8x3xf32, #tpu.memory_space<smem>>
    %655 = vector.broadcast %654 : f32 to vector<18x18xf32>
    %656 = arith.mulf %427, %655 : vector<18x18xf32>
    %657 = arith.addf %649, %656 : vector<18x18xf32>
    %c4_315 = arith.constant 4 : index
    %658 = memref.load %arg3[%c4_315] : memref<8xf32, #tpu.memory_space<smem>>
    %659 = vector.broadcast %658 : f32 to vector<18x18xf32>
    %660 = arith.addf %653, %659 : vector<18x18xf32>
    %c4_316 = arith.constant 4 : index
    %661 = memref.load %arg5[%c4_316] : memref<8xf32, #tpu.memory_space<smem>>
    %662 = vector.broadcast %661 : f32 to vector<18x18xf32>
    %663 = arith.addf %657, %662 : vector<18x18xf32>
    %664 = arith.addf %660, %663 : vector<18x18xf32>
    %665 = arith.mulf %660, %663 : vector<18x18xf32>
    %cst_317 = arith.constant 0.0117851133 : f32
    %666 = vector.broadcast %cst_317 : f32 to vector<18x18xf32>
    %667 = arith.mulf %665, %666 : vector<18x18xf32>
    %668 = arith.truncf %664 : vector<18x18xf32> to vector<18x18xbf16>
    %669 = arith.truncf %667 : vector<18x18xf32> to vector<18x18xbf16>
    %cst_318 = arith.constant dense<0.000000e+00> : vector<18x18xf32>
    %670 = tpu.matmul %668, %669, %cst_318 {dimension_numbers = #tpu.dot_dimension_numbers<[1], [0], [0], [1], [0, 0, 1, 1], [], []>} : vector<18x18xbf16>, vector<18x18xbf16>, vector<18x18xf32> -> vector<18x18xf32>
    %cst_319 = arith.constant dense<0xFF800000> : vector<18xf32>
    %671 = vector.multi_reduction <maximumf>, %670, %cst_319 [1] : vector<18x18xf32> to vector<18xf32>
    %672 = vector.shape_cast %671 : vector<18xf32> to vector<18x1xf32>
    %673 = vector.broadcast %672 : vector<18x1xf32> to vector<18x18xf32>
    %674 = arith.subf %670, %673 : vector<18x18xf32>
    %675 = math.exp %674 : vector<18x18xf32>
    %cst_320 = arith.constant dense<0.000000e+00> : vector<18xf32>
    %676 = vector.multi_reduction <add>, %675, %cst_320 [1] : vector<18x18xf32> to vector<18xf32>
    %677 = vector.shape_cast %676 : vector<18xf32> to vector<18x1xf32>
    %678 = tpu.reciprocal %677 {approx = true} : vector<18x1xf32> -> vector<18x1xf32>
    %679 = vector.broadcast %678 : vector<18x1xf32> to vector<18x18xf32>
    %680 = arith.mulf %675, %679 : vector<18x18xf32>
    %681 = arith.truncf %680 : vector<18x18xf32> to vector<18x18xbf16>
    %cst_321 = arith.constant dense<0.000000e+00> : vector<18x18xf32>
    %682 = tpu.matmul %681, %668, %cst_321 {dimension_numbers = #tpu.dot_dimension_numbers<[1], [0], [0], [1], [0, 0, 1, 1], [], []>} : vector<18x18xbf16>, vector<18x18xbf16>, vector<18x18xf32> -> vector<18x18xf32>
    %cst_322 = arith.constant 0.204124153 : f32
    %683 = vector.broadcast %cst_322 : f32 to vector<18x18xf32>
    %684 = arith.mulf %682, %683 : vector<18x18xf32>
    %c1_323 = arith.constant 1 : index
    %c4_324 = arith.constant 4 : index
    %c0_325 = arith.constant 0 : index
    %c0_326 = arith.constant 0 : index
    %685 = vector.load %arg6[%c1_323, %c4_324, %c0_325, %c0_326] : memref<2x8x18x18xf32, #tpu.memory_space<vmem>>, vector<1x1x18x18xf32>
    %686 = vector.shape_cast %685 : vector<1x1x18x18xf32> to vector<18x18xf32>
    %687 = vector.shape_cast %684 : vector<18x18xf32> to vector<1x1x18x18xf32>
    tpu.vector_store %arg6[%c1_323, %c4_324, %c0_325, %c0_326], %687 {strides = array<i32>} : memref<2x8x18x18xf32, #tpu.memory_space<vmem>>, vector<1x1x18x18xf32>,
    %c5_327 = arith.constant 5 : index
    %c0_328 = arith.constant 0 : index
    %688 = memref.load %arg2[%c5_327, %c0_328] : memref<8x3xf32, #tpu.memory_space<smem>>
    %689 = vector.broadcast %688 : f32 to vector<18x18xf32>
    %690 = arith.mulf %423, %689 : vector<18x18xf32>
    %c5_329 = arith.constant 5 : index
    %c0_330 = arith.constant 0 : index
    %691 = memref.load %arg4[%c5_329, %c0_330] : memref<8x3xf32, #tpu.memory_space<smem>>
    %692 = vector.broadcast %691 : f32 to vector<18x18xf32>
    %693 = arith.mulf %423, %692 : vector<18x18xf32>
    %c5_331 = arith.constant 5 : index
    %c1_332 = arith.constant 1 : index
    %694 = memref.load %arg2[%c5_331, %c1_332] : memref<8x3xf32, #tpu.memory_space<smem>>
    %695 = vector.broadcast %694 : f32 to vector<18x18xf32>
    %696 = arith.mulf %425, %695 : vector<18x18xf32>
    %697 = arith.addf %690, %696 : vector<18x18xf32>
    %c5_333 = arith.constant 5 : index
    %c1_334 = arith.constant 1 : index
    %698 = memref.load %arg4[%c5_333, %c1_334] : memref<8x3xf32, #tpu.memory_space<smem>>
    %699 = vector.broadcast %698 : f32 to vector<18x18xf32>
    %700 = arith.mulf %425, %699 : vector<18x18xf32>
    %701 = arith.addf %693, %700 : vector<18x18xf32>
    %c5_335 = arith.constant 5 : index
    %c2_336 = arith.constant 2 : index
    %702 = memref.load %arg2[%c5_335, %c2_336] : memref<8x3xf32, #tpu.memory_space<smem>>
    %703 = vector.broadcast %702 : f32 to vector<18x18xf32>
    %704 = arith.mulf %427, %703 : vector<18x18xf32>
    %705 = arith.addf %697, %704 : vector<18x18xf32>
    %c5_337 = arith.constant 5 : index
    %c2_338 = arith.constant 2 : index
    %706 = memref.load %arg4[%c5_337, %c2_338] : memref<8x3xf32, #tpu.memory_space<smem>>
    %707 = vector.broadcast %706 : f32 to vector<18x18xf32>
    %708 = arith.mulf %427, %707 : vector<18x18xf32>
    %709 = arith.addf %701, %708 : vector<18x18xf32>
    %c5_339 = arith.constant 5 : index
    %710 = memref.load %arg3[%c5_339] : memref<8xf32, #tpu.memory_space<smem>>
    %711 = vector.broadcast %710 : f32 to vector<18x18xf32>
    %712 = arith.addf %705, %711 : vector<18x18xf32>
    %c5_340 = arith.constant 5 : index
    %713 = memref.load %arg5[%c5_340] : memref<8xf32, #tpu.memory_space<smem>>
    %714 = vector.broadcast %713 : f32 to vector<18x18xf32>
    %715 = arith.addf %709, %714 : vector<18x18xf32>
    %716 = arith.addf %712, %715 : vector<18x18xf32>
    %717 = arith.mulf %712, %715 : vector<18x18xf32>
    %cst_341 = arith.constant 0.0117851133 : f32
    %718 = vector.broadcast %cst_341 : f32 to vector<18x18xf32>
    %719 = arith.mulf %717, %718 : vector<18x18xf32>
    %720 = arith.truncf %716 : vector<18x18xf32> to vector<18x18xbf16>
    %721 = arith.truncf %719 : vector<18x18xf32> to vector<18x18xbf16>
    %cst_342 = arith.constant dense<0.000000e+00> : vector<18x18xf32>
    %722 = tpu.matmul %720, %721, %cst_342 {dimension_numbers = #tpu.dot_dimension_numbers<[1], [0], [0], [1], [0, 0, 1, 1], [], []>} : vector<18x18xbf16>, vector<18x18xbf16>, vector<18x18xf32> -> vector<18x18xf32>
    %cst_343 = arith.constant dense<0xFF800000> : vector<18xf32>
    %723 = vector.multi_reduction <maximumf>, %722, %cst_343 [1] : vector<18x18xf32> to vector<18xf32>
    %724 = vector.shape_cast %723 : vector<18xf32> to vector<18x1xf32>
    %725 = vector.broadcast %724 : vector<18x1xf32> to vector<18x18xf32>
    %726 = arith.subf %722, %725 : vector<18x18xf32>
    %727 = math.exp %726 : vector<18x18xf32>
    %cst_344 = arith.constant dense<0.000000e+00> : vector<18xf32>
    %728 = vector.multi_reduction <add>, %727, %cst_344 [1] : vector<18x18xf32> to vector<18xf32>
    %729 = vector.shape_cast %728 : vector<18xf32> to vector<18x1xf32>
    %730 = tpu.reciprocal %729 {approx = true} : vector<18x1xf32> -> vector<18x1xf32>
    %731 = vector.broadcast %730 : vector<18x1xf32> to vector<18x18xf32>
    %732 = arith.mulf %727, %731 : vector<18x18xf32>
    %733 = arith.truncf %732 : vector<18x18xf32> to vector<18x18xbf16>
    %cst_345 = arith.constant dense<0.000000e+00> : vector<18x18xf32>
    %734 = tpu.matmul %733, %720, %cst_345 {dimension_numbers = #tpu.dot_dimension_numbers<[1], [0], [0], [1], [0, 0, 1, 1], [], []>} : vector<18x18xbf16>, vector<18x18xbf16>, vector<18x18xf32> -> vector<18x18xf32>
    %cst_346 = arith.constant 0.204124153 : f32
    %735 = vector.broadcast %cst_346 : f32 to vector<18x18xf32>
    %736 = arith.mulf %734, %735 : vector<18x18xf32>
    %c1_347 = arith.constant 1 : index
    %c5_348 = arith.constant 5 : index
    %c0_349 = arith.constant 0 : index
    %c0_350 = arith.constant 0 : index
    %737 = vector.load %arg6[%c1_347, %c5_348, %c0_349, %c0_350] : memref<2x8x18x18xf32, #tpu.memory_space<vmem>>, vector<1x1x18x18xf32>
    %738 = vector.shape_cast %737 : vector<1x1x18x18xf32> to vector<18x18xf32>
    %739 = vector.shape_cast %736 : vector<18x18xf32> to vector<1x1x18x18xf32>
    tpu.vector_store %arg6[%c1_347, %c5_348, %c0_349, %c0_350], %739 {strides = array<i32>} : memref<2x8x18x18xf32, #tpu.memory_space<vmem>>, vector<1x1x18x18xf32>,
    %c6_351 = arith.constant 6 : index
    %c0_352 = arith.constant 0 : index
    %740 = memref.load %arg2[%c6_351, %c0_352] : memref<8x3xf32, #tpu.memory_space<smem>>
    %741 = vector.broadcast %740 : f32 to vector<18x18xf32>
    %742 = arith.mulf %423, %741 : vector<18x18xf32>
    %c6_353 = arith.constant 6 : index
    %c0_354 = arith.constant 0 : index
    %743 = memref.load %arg4[%c6_353, %c0_354] : memref<8x3xf32, #tpu.memory_space<smem>>
    %744 = vector.broadcast %743 : f32 to vector<18x18xf32>
    %745 = arith.mulf %423, %744 : vector<18x18xf32>
    %c6_355 = arith.constant 6 : index
    %c1_356 = arith.constant 1 : index
    %746 = memref.load %arg2[%c6_355, %c1_356] : memref<8x3xf32, #tpu.memory_space<smem>>
    %747 = vector.broadcast %746 : f32 to vector<18x18xf32>
    %748 = arith.mulf %425, %747 : vector<18x18xf32>
    %749 = arith.addf %742, %748 : vector<18x18xf32>
    %c6_357 = arith.constant 6 : index
    %c1_358 = arith.constant 1 : index
    %750 = memref.load %arg4[%c6_357, %c1_358] : memref<8x3xf32, #tpu.memory_space<smem>>
    %751 = vector.broadcast %750 : f32 to vector<18x18xf32>
    %752 = arith.mulf %425, %751 : vector<18x18xf32>
    %753 = arith.addf %745, %752 : vector<18x18xf32>
    %c6_359 = arith.constant 6 : index
    %c2_360 = arith.constant 2 : index
    %754 = memref.load %arg2[%c6_359, %c2_360] : memref<8x3xf32, #tpu.memory_space<smem>>
    %755 = vector.broadcast %754 : f32 to vector<18x18xf32>
    %756 = arith.mulf %427, %755 : vector<18x18xf32>
    %757 = arith.addf %749, %756 : vector<18x18xf32>
    %c6_361 = arith.constant 6 : index
    %c2_362 = arith.constant 2 : index
    %758 = memref.load %arg4[%c6_361, %c2_362] : memref<8x3xf32, #tpu.memory_space<smem>>
    %759 = vector.broadcast %758 : f32 to vector<18x18xf32>
    %760 = arith.mulf %427, %759 : vector<18x18xf32>
    %761 = arith.addf %753, %760 : vector<18x18xf32>
    %c6_363 = arith.constant 6 : index
    %762 = memref.load %arg3[%c6_363] : memref<8xf32, #tpu.memory_space<smem>>
    %763 = vector.broadcast %762 : f32 to vector<18x18xf32>
    %764 = arith.addf %757, %763 : vector<18x18xf32>
    %c6_364 = arith.constant 6 : index
    %765 = memref.load %arg5[%c6_364] : memref<8xf32, #tpu.memory_space<smem>>
    %766 = vector.broadcast %765 : f32 to vector<18x18xf32>
    %767 = arith.addf %761, %766 : vector<18x18xf32>
    %768 = arith.addf %764, %767 : vector<18x18xf32>
    %769 = arith.mulf %764, %767 : vector<18x18xf32>
    %cst_365 = arith.constant 0.0117851133 : f32
    %770 = vector.broadcast %cst_365 : f32 to vector<18x18xf32>
    %771 = arith.mulf %769, %770 : vector<18x18xf32>
    %772 = arith.truncf %768 : vector<18x18xf32> to vector<18x18xbf16>
    %773 = arith.truncf %771 : vector<18x18xf32> to vector<18x18xbf16>
    %cst_366 = arith.constant dense<0.000000e+00> : vector<18x18xf32>
    %774 = tpu.matmul %772, %773, %cst_366 {dimension_numbers = #tpu.dot_dimension_numbers<[1], [0], [0], [1], [0, 0, 1, 1], [], []>} : vector<18x18xbf16>, vector<18x18xbf16>, vector<18x18xf32> -> vector<18x18xf32>
    %cst_367 = arith.constant dense<0xFF800000> : vector<18xf32>
    %775 = vector.multi_reduction <maximumf>, %774, %cst_367 [1] : vector<18x18xf32> to vector<18xf32>
    %776 = vector.shape_cast %775 : vector<18xf32> to vector<18x1xf32>
    %777 = vector.broadcast %776 : vector<18x1xf32> to vector<18x18xf32>
    %778 = arith.subf %774, %777 : vector<18x18xf32>
    %779 = math.exp %778 : vector<18x18xf32>
    %cst_368 = arith.constant dense<0.000000e+00> : vector<18xf32>
    %780 = vector.multi_reduction <add>, %779, %cst_368 [1] : vector<18x18xf32> to vector<18xf32>
    %781 = vector.shape_cast %780 : vector<18xf32> to vector<18x1xf32>
    %782 = tpu.reciprocal %781 {approx = true} : vector<18x1xf32> -> vector<18x1xf32>
    %783 = vector.broadcast %782 : vector<18x1xf32> to vector<18x18xf32>
    %784 = arith.mulf %779, %783 : vector<18x18xf32>
    %785 = arith.truncf %784 : vector<18x18xf32> to vector<18x18xbf16>
    %cst_369 = arith.constant dense<0.000000e+00> : vector<18x18xf32>
    %786 = tpu.matmul %785, %772, %cst_369 {dimension_numbers = #tpu.dot_dimension_numbers<[1], [0], [0], [1], [0, 0, 1, 1], [], []>} : vector<18x18xbf16>, vector<18x18xbf16>, vector<18x18xf32> -> vector<18x18xf32>
    %cst_370 = arith.constant 0.204124153 : f32
    %787 = vector.broadcast %cst_370 : f32 to vector<18x18xf32>
    %788 = arith.mulf %786, %787 : vector<18x18xf32>
    %c1_371 = arith.constant 1 : index
    %c6_372 = arith.constant 6 : index
    %c0_373 = arith.constant 0 : index
    %c0_374 = arith.constant 0 : index
    %789 = vector.load %arg6[%c1_371, %c6_372, %c0_373, %c0_374] : memref<2x8x18x18xf32, #tpu.memory_space<vmem>>, vector<1x1x18x18xf32>
    %790 = vector.shape_cast %789 : vector<1x1x18x18xf32> to vector<18x18xf32>
    %791 = vector.shape_cast %788 : vector<18x18xf32> to vector<1x1x18x18xf32>
    tpu.vector_store %arg6[%c1_371, %c6_372, %c0_373, %c0_374], %791 {strides = array<i32>} : memref<2x8x18x18xf32, #tpu.memory_space<vmem>>, vector<1x1x18x18xf32>,
    %c7_375 = arith.constant 7 : index
    %c0_376 = arith.constant 0 : index
    %792 = memref.load %arg2[%c7_375, %c0_376] : memref<8x3xf32, #tpu.memory_space<smem>>
    %793 = vector.broadcast %792 : f32 to vector<18x18xf32>
    %794 = arith.mulf %423, %793 : vector<18x18xf32>
    %c7_377 = arith.constant 7 : index
    %c0_378 = arith.constant 0 : index
    %795 = memref.load %arg4[%c7_377, %c0_378] : memref<8x3xf32, #tpu.memory_space<smem>>
    %796 = vector.broadcast %795 : f32 to vector<18x18xf32>
    %797 = arith.mulf %423, %796 : vector<18x18xf32>
    %c7_379 = arith.constant 7 : index
    %c1_380 = arith.constant 1 : index
    %798 = memref.load %arg2[%c7_379, %c1_380] : memref<8x3xf32, #tpu.memory_space<smem>>
    %799 = vector.broadcast %798 : f32 to vector<18x18xf32>
    %800 = arith.mulf %425, %799 : vector<18x18xf32>
    %801 = arith.addf %794, %800 : vector<18x18xf32>
    %c7_381 = arith.constant 7 : index
    %c1_382 = arith.constant 1 : index
    %802 = memref.load %arg4[%c7_381, %c1_382] : memref<8x3xf32, #tpu.memory_space<smem>>
    %803 = vector.broadcast %802 : f32 to vector<18x18xf32>
    %804 = arith.mulf %425, %803 : vector<18x18xf32>
    %805 = arith.addf %797, %804 : vector<18x18xf32>
    %c7_383 = arith.constant 7 : index
    %c2_384 = arith.constant 2 : index
    %806 = memref.load %arg2[%c7_383, %c2_384] : memref<8x3xf32, #tpu.memory_space<smem>>
    %807 = vector.broadcast %806 : f32 to vector<18x18xf32>
    %808 = arith.mulf %427, %807 : vector<18x18xf32>
    %809 = arith.addf %801, %808 : vector<18x18xf32>
    %c7_385 = arith.constant 7 : index
    %c2_386 = arith.constant 2 : index
    %810 = memref.load %arg4[%c7_385, %c2_386] : memref<8x3xf32, #tpu.memory_space<smem>>
    %811 = vector.broadcast %810 : f32 to vector<18x18xf32>
    %812 = arith.mulf %427, %811 : vector<18x18xf32>
    %813 = arith.addf %805, %812 : vector<18x18xf32>
    %c7_387 = arith.constant 7 : index
    %814 = memref.load %arg3[%c7_387] : memref<8xf32, #tpu.memory_space<smem>>
    %815 = vector.broadcast %814 : f32 to vector<18x18xf32>
    %816 = arith.addf %809, %815 : vector<18x18xf32>
    %c7_388 = arith.constant 7 : index
    %817 = memref.load %arg5[%c7_388] : memref<8xf32, #tpu.memory_space<smem>>
    %818 = vector.broadcast %817 : f32 to vector<18x18xf32>
    %819 = arith.addf %813, %818 : vector<18x18xf32>
    %820 = arith.addf %816, %819 : vector<18x18xf32>
    %821 = arith.mulf %816, %819 : vector<18x18xf32>
    %cst_389 = arith.constant 0.0117851133 : f32
    %822 = vector.broadcast %cst_389 : f32 to vector<18x18xf32>
    %823 = arith.mulf %821, %822 : vector<18x18xf32>
    %824 = arith.truncf %820 : vector<18x18xf32> to vector<18x18xbf16>
    %825 = arith.truncf %823 : vector<18x18xf32> to vector<18x18xbf16>
    %cst_390 = arith.constant dense<0.000000e+00> : vector<18x18xf32>
    %826 = tpu.matmul %824, %825, %cst_390 {dimension_numbers = #tpu.dot_dimension_numbers<[1], [0], [0], [1], [0, 0, 1, 1], [], []>} : vector<18x18xbf16>, vector<18x18xbf16>, vector<18x18xf32> -> vector<18x18xf32>
    %cst_391 = arith.constant dense<0xFF800000> : vector<18xf32>
    %827 = vector.multi_reduction <maximumf>, %826, %cst_391 [1] : vector<18x18xf32> to vector<18xf32>
    %828 = vector.shape_cast %827 : vector<18xf32> to vector<18x1xf32>
    %829 = vector.broadcast %828 : vector<18x1xf32> to vector<18x18xf32>
    %830 = arith.subf %826, %829 : vector<18x18xf32>
    %831 = math.exp %830 : vector<18x18xf32>
    %cst_392 = arith.constant dense<0.000000e+00> : vector<18xf32>
    %832 = vector.multi_reduction <add>, %831, %cst_392 [1] : vector<18x18xf32> to vector<18xf32>
    %833 = vector.shape_cast %832 : vector<18xf32> to vector<18x1xf32>
    %834 = tpu.reciprocal %833 {approx = true} : vector<18x1xf32> -> vector<18x1xf32>
    %835 = vector.broadcast %834 : vector<18x1xf32> to vector<18x18xf32>
    %836 = arith.mulf %831, %835 : vector<18x18xf32>
    %837 = arith.truncf %836 : vector<18x18xf32> to vector<18x18xbf16>
    %cst_393 = arith.constant dense<0.000000e+00> : vector<18x18xf32>
    %838 = tpu.matmul %837, %824, %cst_393 {dimension_numbers = #tpu.dot_dimension_numbers<[1], [0], [0], [1], [0, 0, 1, 1], [], []>} : vector<18x18xbf16>, vector<18x18xbf16>, vector<18x18xf32> -> vector<18x18xf32>
    %cst_394 = arith.constant 0.204124153 : f32
    %839 = vector.broadcast %cst_394 : f32 to vector<18x18xf32>
    %840 = arith.mulf %838, %839 : vector<18x18xf32>
    %c1_395 = arith.constant 1 : index
    %c7_396 = arith.constant 7 : index
    %c0_397 = arith.constant 0 : index
    %c0_398 = arith.constant 0 : index
    %841 = vector.load %arg6[%c1_395, %c7_396, %c0_397, %c0_398] : memref<2x8x18x18xf32, #tpu.memory_space<vmem>>, vector<1x1x18x18xf32>
    %842 = vector.shape_cast %841 : vector<1x1x18x18xf32> to vector<18x18xf32>
    %843 = vector.shape_cast %840 : vector<18x18xf32> to vector<1x1x18x18xf32>
    tpu.vector_store %arg6[%c1_395, %c7_396, %c0_397, %c0_398], %843 {strides = array<i32>} : memref<2x8x18x18xf32, #tpu.memory_space<vmem>>, vector<1x1x18x18xf32>,
    return
  }
  func.func @transform_0(%arg0: i32) -> (i32, i32, i32, i32) {
    %c0_i32 = arith.constant 0 : i32
    %c0_i32_0 = arith.constant 0 : i32
    %c0_i32_1 = arith.constant 0 : i32
    %c0_i32_2 = arith.constant 0 : i32
    return %arg0, %c0_i32, %c0_i32_0, %c0_i32_1 : i32, i32, i32, i32
  }
  func.func @transform_1(%arg0: i32) -> (i32, i32) {
    %c0_i32 = arith.constant 0 : i32
    %c0_i32_0 = arith.constant 0 : i32
    %c0_i32_1 = arith.constant 0 : i32
    return %c0_i32, %c0_i32_0 : i32, i32
  }
  func.func @transform_2(%arg0: i32) -> i32 {
    %c0_i32 = arith.constant 0 : i32
    %c0_i32_0 = arith.constant 0 : i32
    return %c0_i32 : i32
  }
  func.func @transform_3(%arg0: i32) -> (i32, i32) {
    %c0_i32 = arith.constant 0 : i32
    %c0_i32_0 = arith.constant 0 : i32
    %c0_i32_1 = arith.constant 0 : i32
    return %c0_i32, %c0_i32_0 : i32, i32
  }
  func.func @transform_4(%arg0: i32) -> i32 {
    %c0_i32 = arith.constant 0 : i32
    %c0_i32_0 = arith.constant 0 : i32
    return %c0_i32 : i32
  }
  func.func @transform_5(%arg0: i32) -> (i32, i32, i32, i32) {
    %c0_i32 = arith.constant 0 : i32
    %c0_i32_0 = arith.constant 0 : i32
    %c0_i32_1 = arith.constant 0 : i32
    %c0_i32_2 = arith.constant 0 : i32
    return %arg0, %c0_i32, %c0_i32_0, %c0_i32_1 : i32, i32, i32, i32
  }
}

</mosaic_0001>

<bundles_post_ra>
// kernel: tpu_custom_call.1
= control target key start
LH: loop header
LB: loop body
LE: loop exit
PB: predicated region body
PF: predicated region fallthrough
CT: control target
= control target key end

     0   :  { %10 = vsyncpa [#allocation3], 0  ;;  %s6314_s0 = inlined_call_operand.vmem [shape: f32[2,3,18,18], index: 0, kind: input, shape index: {}]   ;;  %s6315_s1 = inlined_call_operand.vmem [shape: f32[8,3], index: 1, kind: input, shape index: {}]   ;;  %s6316_s2 = inlined_call_operand.vmem [shape: f32[8], index: 2, kind: input, shape index: {}]   ;;  %s6317_s3 = inlined_call_operand.vmem [shape: f32[8,3], index: 3, kind: input, shape index: {}]   ;;  %s6318_s4 = inlined_call_operand.vmem [shape: f32[8], index: 4, kind: input, shape index: {}]   ;;  %s6319_s5 = inlined_call_operand.vmem [shape: f32[2,8,18,18], index: 5, kind: output, shape index: {}]  }
   0x1   :  { %11 = vsyncpa [#allocation5], 0  ;;  %s31_s20 = sshll.u32 %s6316_s2, 4  ;;  %s32_s20 = int_to_ptr.vmem [resolvable:$true] %s31_s20 }
   0x2   :  { %12 = vsyncpa [#allocation8], 0  ;;  %s21_s23 = sshll.u32 %s6315_s1, 4  ;;  %s4493_s24 = scalar_lea.vmem %s32_s20, 16  ;;  %s22_s23 = int_to_ptr.vmem [resolvable:$true] %s21_s23 }
   0x3   :  { %p4494_p0 = scmp.ne.s32.totalorder %s32_s20, %s4493_s24  ;;  %p4498_p1 = scmp.lt.s32.totalorder %s32_s20, %s32_s20 }
   0x4   :  { %p4499_p2 = scmp.lt.s32.totalorder %s4493_s24, %s4493_s24 }
   0x6   :  { %p4500_p3 = por %p4499_p2, %p4498_p1 }
   0x8   :  { %p4501_p4 = pnand %p4500_p3, %p4494_p0 }
   0xa   :  { %4504 = shalt.err (!%p4501_p4)
}
   0xb   :  { %s4547_s25 = smov [#allocation4]   ;;  %s4505_s26 = scalar_lea.vmem %s22_s23, 128 }
   0xc   :  { %34 = dma.vmem_to_smem %s32_s20, 16, %s4547_s25, [#allocation5]  }
   0xd   :  { %p4506_p5 = scmp.ne.s32.totalorder %s22_s23, %s4505_s26  ;;  %p4510_p6 = scmp.lt.s32.totalorder %s22_s23, %s22_s23 }
   0xe   :  { %p4511_p7 = scmp.lt.s32.totalorder %s4505_s26, %s4505_s26 }
  0x10   :  { %p4512_p8 = por %p4511_p7, %p4510_p6 }
  0x12   :  { %p4513_p9 = pnand %p4512_p8, %p4506_p5 }
  0x14   :  { %4516 = shalt.err (!%p4513_p9)
}
  0x15   :  { %s4548_s2 = smov [#allocation2]   ;;  %s41_s28 = sshll.u32 %s6317_s3, 4  ;;  %s42_s28 = int_to_ptr.vmem [resolvable:$true] %s41_s28 }
  0x16   :  { %24 = dma.vmem_to_smem %s22_s23, 128, %s4548_s2, [#allocation3]  }
  0x17   :  { %s51_s6 = sshll.u32 %s6318_s4, 4  ;;  %s4517_s7 = scalar_lea.vmem %s42_s28, 128  ;;  %s52_s6 = int_to_ptr.vmem [resolvable:$true] %s51_s6 }
  0x18   :  { %p4518_p10 = scmp.ne.s32.totalorder %s42_s28, %s4517_s7  ;;  %p4522_p11 = scmp.lt.s32.totalorder %s42_s28, %s42_s28 }
  0x19   :  { %p4523_p12 = scmp.lt.s32.totalorder %s4517_s7, %s4517_s7 }
  0x1b   :  { %p4524_p13 = por %p4523_p12, %p4522_p11 }
  0x1d   :  { %p4525_p0 = pnand %p4524_p13, %p4518_p10 }
  0x1f   :  { %4528 = shalt.err (!%p4525_p0)
}
  0x20   :  { %s4549_s8 = smov [#allocation6]   ;;  %s4529_s9 = scalar_lea.vmem %s52_s6, 16 }
  0x21   :  { %44 = dma.vmem_to_smem %s42_s28, 128, %s4549_s8, [#allocation5]  }
  0x22   :  { %p4530_p1 = scmp.ne.s32.totalorder %s52_s6, %s4529_s9  ;;  %p4534_p2 = scmp.lt.s32.totalorder %s52_s6, %s52_s6 }
  0x23   :  { %p4535_p3 = scmp.lt.s32.totalorder %s4529_s9, %s4529_s9 }
  0x25   :  { %p4536_p4 = por %p4535_p3, %p4534_p2 }
  0x27   :  { %p4537_p5 = pnand %p4536_p4, %p4530_p1 }
  0x29   :  { %4540 = shalt.err (!%p4537_p5)
}
  0x2a   :  { %s4550_s3 = smov [#allocation7]  }
  0x2b   :  { %54 = dma.vmem_to_smem %s52_s6, 16, %s4550_s3, [#allocation8]  }
  0x2c   :  { %4541 = dma.done.wait [#allocation3], 128  }
  0x2d   :  { %4542 = vsyncadd [#allocation3], 4294967168 }
  0x2e   :  { %4543 = dma.done.wait [#allocation5], 144  }
  0x2f   :  { %4544 = vsyncadd [#allocation5], 4294967152 }
  0x30   :  { %4545 = dma.done.wait [#allocation8], 16  }
  0x31   :  { %4546 = vsyncadd [#allocation8], 4294967280 }
  0x32   :  { %67 = sfence }
  0x33   :  { %s80_s4 = sld [smem:[#allocation2]]  ;;  %s3627_s11 = sld [smem:[#allocation2 + $0x1]]  ;;  %v4596_v0 = vld [vmem:[%s6314_s0] sm:$0xff]  ;;  %v4601_v1 = vld [vmem:[%s6314_s0 + $0x8] sm:$0xff]  ;;  %v4606_v2 = vld [vmem:[%s6314_s0 + $0x10] sm:$0x3] }
  0x34   :  { %s85_s10 = sld [smem:[#allocation6]]  ;;  %s3628_s12 = sld [smem:[#allocation6 + $0x1]]  ;;  %v4611_v3 = vld [vmem:[%s6314_s0 + $0x18] sm:$0xff]  ;;  %v4616_v4 = vld [vmem:[%s6314_s0 + $0x20] sm:$0xff]  ;;  %v4626_v10 = vld [vmem:[%s6314_s0 + $0x30] sm:$0xff]  ;;  %vm145_vm0 = vcmask 146432  }
  0x35   :  { %s3629_s17 = sld [smem:[#allocation2 + $0x2]]  ;;  %s122_s19 = sld [smem:[#allocation4]]  ;;  %v4633_v15 = vld [vmem:[%s6314_s0 + $0x38] sm:$0xff]  ;;  %v4642_v20 = vld [vmem:[%s6314_s0 + $0x28] sm:$0x3]  ;;  %vm152_vm1 = vcmask 1040384  }
  0x36   :  { %s3630_s18 = sld [smem:[#allocation6 + $0x2]]  ;;  %s127_s20 = sld [smem:[#allocation7]]  ;;  %v4647_v21 = vld [vmem:[%s6314_s0 + $0x40] sm:$0x3]  ;;  %vm210_vm2 = vcmask 140288  }
  0x37   :  { %s4621_s2 = sld [smem:[#allocation2 + $0x80]]  ;;  %s4651_s3 = sld [smem:[#allocation2 + $0x81]] }
  0x38   :  { %s4649_s9 = sld [smem:[#allocation6 + $0x80]]  ;;  %s4679_s13 = sld [smem:[#allocation7 + $0x1]] }
  0x39   :  { %v81_v5 = vstv %s80_s4  ;;  %v91_v13 = vstv %s3627_s11  ;;  %s4661_s4 = sld [smem:[#allocation6 + $0x81]]  ;;  %s4673_s11 = sld [smem:[#allocation6 + $0x82]] }
  0x3a   :  { %v82_v6 = vmul.f32 %v81_v5, %v4596_v0  ;;  %v83_v7 = vmul.f32 %v81_v5, %v4601_v1  ;;  %v86_v8 = vstv %s85_s10  ;;  %v84_v9 = vmul.f32 %v81_v5, %v4606_v2  ;;  %s4663_s10 = sld [smem:[#allocation2 + $0x82]]  ;;  %s4688_s14 = sld [smem:[#allocation2 + $0x100]] }
  0x3b   :  { %v87_v11 = vmul.f32 %v86_v8, %v4596_v0  ;;  %v88_v12 = vmul.f32 %v86_v8, %v4601_v1  ;;  %v99_v14 = vstv %s3628_s12  ;;  %v92_v16 = vmul.f32 %v4611_v3, %v91_v13  ;;  %s4675_s12 = sld [smem:[#allocation4 + $0x1]]  ;;  %s4690_s15 = sld [smem:[#allocation6 + $0x100]] }
  0x3c   :  { %v93_v17 = vmul.f32 %v4616_v4, %v91_v13  ;;  %v100_v18 = vmul.f32 %v4611_v3, %v99_v14  ;;  %v101_v19 = vmul.f32 %v4616_v4, %v99_v14  ;;  %v107_v22 = vstv %s3629_s17  ;;  %s4703_s16 = sld [smem:[#allocation2 + $0x101]]  ;;  %s4731_s21 = sld [smem:[#allocation7 + $0x2]] }
  0x3d   :  { %v115_v23 = vstv %s3630_s18  ;;  %v123_v24 = vstv %s122_s19  ;;  %v128_v25 = vstv %s127_s20  ;;  %v95_v26 = vadd.f32 %v92_v16, %v82_v6  ;;  %s4705_s17 = sld [smem:[#allocation6 + $0x101]]  ;;  %s4717_s18 = sld [smem:[#allocation2 + $0x102]] }
  0x3e   :  { %v96_v27 = vadd.f32 %v93_v17, %v83_v7  ;;  %v103_v28 = vadd.f32 %v100_v18, %v87_v11  ;;  %v104_v29 = vadd.f32 %v101_v19, %v88_v12  ;;  %v108_v30 = vmul.f32 %v4626_v10, %v107_v22  ;;  %s4723_s19 = sld [smem:[#allocation6 + $0x102]]  ;;  %s4745_s22 = sld [smem:[#allocation2 + $0x180]] }
  0x3f   :  { %v109_v31 = vmul.f32 %v4633_v15, %v107_v22  ;;  %v116_v32 = vmul.f32 %v4626_v10, %v115_v23  ;;  %v117_v33 = vmul.f32 %v4633_v15, %v115_v23  ;;  %v89_v34 = vmul.f32 %v86_v8, %v4606_v2  ;;  %s4729_s20 = sld [smem:[#allocation4 + $0x2]]  ;;  %s4747_s23 = sld [smem:[#allocation6 + $0x180]] }
  0x40   :  { %v94_v35 = vmul.f32 %v4642_v20, %v91_v13  ;;  %v102_v36 = vmul.f32 %v4642_v20, %v99_v14  ;;  %v110_v37 = vmul.f32 %v4647_v21, %v107_v22  ;;  %v111_v38 = vadd.f32 %v108_v30, %v95_v26  ;;  %s4758_s24 = sld [smem:[#allocation2 + $0x181]]  ;;  %s4769_s26 = sld [smem:[#allocation2 + $0x182]] }
  0x41   :  { %v112_v39 = vadd.f32 %v109_v31, %v96_v27  ;;  %v119_v40 = vadd.f32 %v116_v32, %v103_v28  ;;  %v120_v41 = vadd.f32 %v117_v33, %v104_v29  ;;  %v118_v44 = vmul.f32 %v4647_v21, %v115_v23  ;;  %s4760_s25 = sld [smem:[#allocation6 + $0x181]]  ;;  %s4778_s1 = sld [smem:[#allocation4 + $0x3]] }
  0x42   :  { %v97_v42 = vadd.f32 %v94_v35, %v84_v9  ;;  %v105_v43 = vadd.f32 %v102_v36, %v89_v34  ;;  %v4667_v45 = vstv %s4621_s2  ;;  %v124_v46 = vadd.f32 %v123_v24, %v111_v38  ;;  %s4776_s2 = sld [smem:[#allocation6 + $0x182]]  ;;  %s4783_s27 = sld [smem:[#allocation7 + $0x3]] }
  0x43   :  { %v125_v47 = vadd.f32 %v123_v24, %v112_v39  ;;  %v129_v48 = vadd.f32 %v128_v25, %v119_v40  ;;  %v130_v49 = vadd.f32 %v128_v25, %v120_v41  ;;  %v304_v52 = vmul.f32 %v4667_v45, %v4596_v0  ;;  %s4794_s28 = sld [smem:[#allocation2 + $0x200]]  ;;  %s4801_s30 = sld [smem:[#allocation2 + $0x201]] }
  0x44   :  { %v113_v50 = vadd.f32 %v110_v37, %v97_v42  ;;  %v121_v51 = vadd.f32 %v118_v44, %v105_v43  ;;  %v305_v53 = vmul.f32 %v4667_v45, %v4601_v1  ;;  %v308_v60 = vstv %s4649_s9  ;;  %s4799_s29 = sld [smem:[#allocation6 + $0x200]]  ;;  %s4817_s6 = sld [smem:[#allocation6 + $0x201]] }
  0x45   :  { %v135_v54 = vmul.f32 %v129_v48, %v124_v46  ;;  %v136_v55 = vmul.f32 %v130_v49, %v125_v47  ;;  %v132_v56 = vadd.f32 %v129_v48, %v124_v46  ;;  %v133_v57 = vadd.f32 %v130_v49, %v125_v47  ;;  %s4819_s7 = sld [smem:[#allocation2 + $0x202]]  ;;  %s4833_s9 = sld [smem:[#allocation4 + $0x4]] }
  0x46   :  { %v126_v58 = vadd.f32 %v123_v24, %v113_v50  ;;  %v131_v59 = vadd.f32 %v128_v25, %v121_v51  ;;  %v313_v61 = vstv %s4651_s3  ;;  %v309_v6 = vmul.f32 %v308_v60, %v4596_v0  ;;  %s4827_s8 = sld [smem:[#allocation6 + $0x202]]  ;;  %s4835_s3 = sld [smem:[#allocation7 + $0x4]] }
  0x47   :  { %v138_v62 = vmul.f32 0.011785113, %v135_v54  ;;  %v139_v63 = vmul.f32 0.011785113, %v136_v55  ;;  %v141_v5 = vpack.c.bf16 %v133_v57, %v132_v56  ;;  %v310_v9 = vmul.f32 %v308_v60, %v4601_v1 }
  0x48   :  { %v137_v7 = vmul.f32 %v131_v59, %v126_v58  ;;  %v134_v8 = vadd.f32 %v131_v59, %v126_v58  ;;  %v314_v11 = vmul.f32 %v4611_v3, %v313_v61  ;;  %v315_v13 = vmul.f32 %v4616_v4, %v313_v61 }
  0x49   :  { %v143_v12 = vpack.c.bf16 %v139_v63, %v138_v62  ;;  %3997 = vmatprep.mubr.msk.bf16.mxu0 %vm145_vm0, %v141_v5  ;;  %v321_v14 = vstv %s4661_s4  ;;  %v329_v16 = vstv %s4663_s10  ;;  %4001 = vmatprep.subr.bf16.mxu1 %v141_v5  ;;  %v337_v29 = vstv %s4673_s11  ;;  %s4848_s4 = sld [smem:[#allocation2 + $0x280]]  ;;  %s4862_s11 = sld [smem:[#allocation2 + $0x281]] }
  0x4a   :  { %v140_v17 = vmul.f32 0.011785113, %v137_v7  ;;  %v4692_v18 = vpack.c.bf16 %v134_v8, %v134_v8  ;;  %v317_v19 = vadd.f32 %v314_v11, %v304_v52  ;;  %v322_v22 = vmul.f32 %v4611_v3, %v321_v14  ;;  %4002 = vmatpush3.bf16.msra.mxu1 %v141_v5  ;;  %s4850_s10 = sld [smem:[#allocation6 + $0x280]] }
  0x4b   :  { %3993 = vmatprep.subr.bf16.mxu0 %v143_v12  ;;  %v318_v23 = vadd.f32 %v315_v13, %v305_v53  ;;  %v323_v24 = vmul.f32 %v4616_v4, %v321_v14  ;;  %v330_v25 = vmul.f32 %v4626_v10, %v329_v16  ;;  %v331_v26 = vmul.f32 %v4633_v15, %v329_v16 }
  0x4c   :  { %3994 = vmatpush3.bf16.msra.mxu0 %v143_v12  ;;  %v144_v27 = vpack.c.bf16 %v140_v17, %v140_v17  ;;  %v325_v28 = vadd.f32 %v322_v22, %v309_v6  ;;  %v345_v30 = vstv %s4675_s12  ;;  %4250 = vmatprep.subr.msk.bf16.mxu1 %vm152_vm1, %v4692_v18  ;;  %v338_v34 = vmul.f32 %v4626_v10, %v337_v29  ;;  %s4865_s12 = sld [smem:[#allocation6 + $0x281]] }
  0x4d   :  { %v326_v31 = vadd.f32 %v323_v24, %v310_v9  ;;  %v333_v32 = vadd.f32 %v330_v25, %v317_v19  ;;  %v334_v33 = vadd.f32 %v331_v26, %v318_v23  ;;  %v339_v36 = vmul.f32 %v4633_v15, %v337_v29 }
  0x4e   :  { %4249 = vmatprep.subr.msk.bf16.mxu0 %vm152_vm1, %v144_v27  ;;  %v154_v35 = vsel %vm152_vm1, %v144_v27, 0  ;;  %v350_v37 = vstv %s4679_s13  ;;  %v306_v38 = vmul.f32 %v4667_v45, %v4606_v2  ;;  %v341_v39 = vadd.f32 %v338_v34, %v325_v28  ;;  %s4871_s13 = sld [smem:[#allocation2 + $0x282]] }
  0x4f   :  { %v346_v40 = vadd.f32 %v345_v30, %v333_v32  ;;  %v347_v41 = vadd.f32 %v345_v30, %v334_v33  ;;  %v311_v42 = vmul.f32 %v308_v60, %v4606_v2  ;;  %v342_v43 = vadd.f32 %v339_v36, %v326_v31 }
  0x50   :  { %3996 = vmatpush3.bf16.msra.mxu0 %v154_v35  ;;  %v316_v44 = vmul.f32 %v4642_v20, %v313_v61  ;;  %v324_v46 = vmul.f32 %v4642_v20, %v321_v14  ;;  %v332_v47 = vmul.f32 %v4647_v21, %v329_v16  ;;  %v351_v48 = vadd.f32 %v350_v37, %v341_v39 }
  0x51   :  { %v340_v49 = vmul.f32 %v4647_v21, %v337_v29  ;;  %v523_v50 = vstv %s4688_s14  ;;  %v528_v45 = vstv %s4690_s15  ;;  %v352_v51 = vadd.f32 %v350_v37, %v342_v43  ;;  %s4879_s14 = sld [smem:[#allocation6 + $0x282]]  ;;  %s4881_s15 = sld [smem:[#allocation4 + $0x5]] }
  0x52   :  { %v319_v52 = vadd.f32 %v316_v44, %v306_v38  ;;  %v327_v53 = vadd.f32 %v324_v46, %v311_v42  ;;  %v524_v54 = vmul.f32 %v523_v50, %v4596_v0  ;;  %v357_v55 = vmul.f32 %v351_v48, %v346_v40 }
  0x53   :  { %3998 = vmatmul.mubr.msk.bf16.vlgmr.msra.gmra.mrb[0].mxu0 %vm145_vm0, %v4692_v18  ;;  %v354_v56 = vadd.f32 %v351_v48, %v346_v40  ;;  %v525_v57 = vmul.f32 %v523_v50, %v4601_v1  ;;  %v529_v58 = vmul.f32 %v528_v45, %v4596_v0  ;;  %v358_v59 = vmul.f32 %v352_v51, %v347_v41 }
  0x54   :  { %v335_v60 = vadd.f32 %v332_v47, %v319_v52  ;;  %v343_v61 = vadd.f32 %v340_v49, %v327_v53  ;;  %v355_v62 = vadd.f32 %v352_v51, %v347_v41  ;;  %v360_v63 = vmul.f32 0.011785113, %v357_v55 }
  0x55   :  { %v530_v5 = vmul.f32 %v528_v45, %v4601_v1  ;;  %v533_v6 = vstv %s4703_s16  ;;  %v541_v7 = vstv %s4705_s17  ;;  %v361_v8 = vmul.f32 0.011785113, %v358_v59  ;;  %s4888_s16 = sld [smem:[#allocation7 + $0x5]]  ;;  %s4901_s17 = sld [smem:[#allocation2 + $0x300]] }
  0x56   :  { %v348_v9 = vadd.f32 %v345_v30, %v335_v60  ;;  %v353_v11 = vadd.f32 %v350_v37, %v343_v61  ;;  %v4736_v12 = vpack.c.bf16 %v355_v62, %v354_v56  ;;  %v534_v13 = vmul.f32 %v4611_v3, %v533_v6 }
  0x57   :  { %v535_v14 = vmul.f32 %v4616_v4, %v533_v6  ;;  %v542_v16 = vmul.f32 %v4611_v3, %v541_v7  ;;  %v543_v17 = vmul.f32 %v4616_v4, %v541_v7  ;;  %v365_v19 = vpack.c.bf16 %v361_v8, %v360_v63 }
  0x58   :  { %v359_v22 = vmul.f32 %v353_v11, %v348_v9  ;;  %4013 = vmatprep.mubr.msk.bf16.mxu0 %vm145_vm0, %v4736_v12  ;;  %v356_v23 = vadd.f32 %v353_v11, %v348_v9  ;;  %v549_v24 = vstv %s4717_s18  ;;  %v537_v25 = vadd.f32 %v534_v13, %v524_v54  ;;  %s4909_s18 = sld [smem:[#allocation6 + $0x300]] }
  0x59   :  { %v538_v26 = vadd.f32 %v535_v14, %v525_v57  ;;  %v545_v27 = vadd.f32 %v542_v16, %v529_v58  ;;  %v546_v28 = vadd.f32 %v543_v17, %v530_v5  ;;  %4009 = vmatprep.subr.bf16.mxu0 %v365_v19  ;;  %v550_v31 = vmul.f32 %v4626_v10, %v549_v24 }
  0x5a   :  { %v362_v29 = vmul.f32 0.011785113, %v359_v22  ;;  %v4749_v30 = vpack.c.bf16 %v356_v23, %v356_v23  ;;  %v551_v32 = vmul.f32 %v4633_v15, %v549_v24  ;;  %4010 = vmatpush3.bf16.msra.mxu0 %v365_v19  ;;  %v557_v33 = vstv %s4723_s19  ;;  %s4911_s19 = sld [smem:[#allocation2 + $0x301]] }
  0x5b   :  { %v565_v34 = vstv %s4729_s20  ;;  %v570_v35 = vstv %s4731_s21  ;;  %v526_v36 = vmul.f32 %v523_v50, %v4606_v2  ;;  %v553_v38 = vadd.f32 %v550_v31, %v537_v25  ;;  %s4918_s20 = sld [smem:[#allocation6 + $0x301]]  ;;  %s4920_s21 = sld [smem:[#allocation2 + $0x302]] }
  0x5c   :  { %v366_v37 = vpack.c.bf16 %v362_v29, %v362_v29  ;;  %v554_v39 = vadd.f32 %v551_v32, %v538_v26  ;;  %v558_v40 = vmul.f32 %v4626_v10, %v557_v33  ;;  %v559_v41 = vmul.f32 %v4633_v15, %v557_v33 }
  0x5d   :  { %v531_v42 = vmul.f32 %v528_v45, %v4606_v2  ;;  %v536_v43 = vmul.f32 %v4642_v20, %v533_v6  ;;  %v544_v44 = vmul.f32 %v4642_v20, %v541_v7  ;;  %v566_v48 = vadd.f32 %v565_v34, %v553_v38 }
  0x5e   :  { %4251 = vmatprep.subr.msk.bf16.mxu0 %vm152_vm1, %v366_v37  ;;  %v374_v46 = vsel %vm152_vm1, %v366_v37, 0  ;;  %v561_v47 = vadd.f32 %v558_v40, %v545_v27  ;;  %v567_v49 = vadd.f32 %v565_v34, %v554_v39  ;;  %v562_v50 = vadd.f32 %v559_v41, %v546_v28 }
  0x5f   :  { %4012 = vmatpush3.bf16.msra.mxu0 %v374_v46  ;;  %v539_v51 = vadd.f32 %v536_v43, %v526_v36  ;;  %v547_v52 = vadd.f32 %v544_v44, %v531_v42  ;;  %v552_v53 = vmul.f32 %v4647_v21, %v549_v24  ;;  %v560_v54 = vmul.f32 %v4647_v21, %v557_v33 }
  0x60   :  { %v571_v45 = vadd.f32 %v570_v35, %v561_v47  ;;  %v743_v55 = vstv %s4745_s22  ;;  %v748_v56 = vstv %s4747_s23  ;;  %v572_v57 = vadd.f32 %v570_v35, %v562_v50  ;;  %s4931_s22 = sld [smem:[#allocation6 + $0x302]]  ;;  %s4937_s23 = sld [smem:[#allocation4 + $0x6]] }
  0x61   :  { %v555_v58 = vadd.f32 %v552_v53, %v539_v51  ;;  %v744_v59 = vmul.f32 %v743_v55, %v4596_v0  ;;  %v745_v60 = vmul.f32 %v743_v55, %v4601_v1  ;;  %v563_v62 = vadd.f32 %v560_v54, %v547_v52 }
  0x62   :  { %4014 = vmatmul.mubr.msk.bf16.vlgmr.msra.gmra.mrb[4].mxu0 %vm145_vm0, %v4749_v30  ;;  %v577_v61 = vmul.f32 %v571_v45, %v566_v48  ;;  %v574_v63 = vadd.f32 %v571_v45, %v566_v48  ;;  %v749_v5 = vmul.f32 %v748_v56, %v4596_v0  ;;  %v578_v6 = vmul.f32 %v572_v57, %v567_v49 }
  0x63   :  { %v568_v7 = vadd.f32 %v565_v34, %v555_v58  ;;  %v575_v8 = vadd.f32 %v572_v57, %v567_v49  ;;  %v750_v9 = vmul.f32 %v748_v56, %v4601_v1  ;;  %v573_v13 = vadd.f32 %v570_v35, %v563_v62 }
  0x64   :  { %v580_v11 = vmul.f32 0.011785113, %v577_v61  ;;  %v753_v14 = vstv %s4758_s24  ;;  %v761_v16 = vstv %s4760_s25  ;;  %v581_v17 = vmul.f32 0.011785113, %v578_v6  ;;  %s4939_s24 = sld [smem:[#allocation7 + $0x6]]  ;;  %s4952_s25 = sld [smem:[#allocation2 + $0x380]] }
  0x65   :  { %v4788_v19 = vpack.c.bf16 %v575_v8, %v574_v63  ;;  %v754_v22 = vmul.f32 %v4611_v3, %v753_v14  ;;  %v755_v23 = vmul.f32 %v4616_v4, %v753_v14  ;;  %v579_v24 = vmul.f32 %v573_v13, %v568_v7 }
  0x66   :  { %v576_v25 = vadd.f32 %v573_v13, %v568_v7  ;;  %v762_v26 = vmul.f32 %v4611_v3, %v761_v16  ;;  %v763_v27 = vmul.f32 %v4616_v4, %v761_v16  ;;  %v585_v28 = vpack.c.bf16 %v581_v17, %v580_v11 }
  0x67   :  { %4029 = vmatprep.mubr.msk.bf16.mxu0 %vm145_vm0, %v4788_v19  ;;  %v757_v29 = vadd.f32 %v754_v22, %v744_v59  ;;  %v758_v31 = vadd.f32 %v755_v23, %v745_v60  ;;  %v769_v32 = vstv %s4769_s26  ;;  %v582_v33 = vmul.f32 0.011785113, %v579_v24  ;;  %s4954_s26 = sld [smem:[#allocation6 + $0x380]] }
  0x68   :  { %v4803_v34 = vpack.c.bf16 %v576_v25, %v576_v25  ;;  %v765_v35 = vadd.f32 %v762_v26, %v749_v5  ;;  %v766_v36 = vadd.f32 %v763_v27, %v750_v9  ;;  %4025 = vmatprep.subr.bf16.mxu0 %v585_v28  ;;  %v770_v37 = vmul.f32 %v4626_v10, %v769_v32 }
  0x69   :  { %v771_v38 = vmul.f32 %v4633_v15, %v769_v32  ;;  %v777_v39 = vstv %s4776_s2  ;;  %v785_v40 = vstv %s4778_s1  ;;  %4026 = vmatpush3.bf16.msra.mxu0 %v585_v28  ;;  %v586_v41 = vpack.c.bf16 %v582_v33, %v582_v33  ;;  %s4966_s2 = sld [smem:[#allocation2 + $0x381]] }
  0x6a   :  { %v778_v42 = vmul.f32 %v4626_v10, %v777_v39  ;;  %v779_v43 = vmul.f32 %v4633_v15, %v777_v39  ;;  %v790_v44 = vstv %s4783_s27  ;;  %v773_v46 = vadd.f32 %v770_v37, %v757_v29  ;;  %s4969_s1 = sld [smem:[#allocation6 + $0x381]]  ;;  %s4975_s27 = sld [smem:[#allocation2 + $0x382]] }
  0x6b   :  { %v774_v47 = vadd.f32 %v771_v38, %v758_v31  ;;  %v746_v48 = vmul.f32 %v743_v55, %v4606_v2  ;;  %v751_v49 = vmul.f32 %v748_v56, %v4606_v2  ;;  %4253 = vmatprep.subr.msk.bf16.mxu0 %vm152_vm1, %v586_v41  ;;  %v594_v50 = vsel %vm152_vm1, %v586_v41, 0 }
  0x6c   :  { %v781_v51 = vadd.f32 %v778_v42, %v765_v35  ;;  %v782_v52 = vadd.f32 %v779_v43, %v766_v36  ;;  %v756_v53 = vmul.f32 %v4642_v20, %v753_v14  ;;  %v786_v45 = vadd.f32 %v785_v40, %v773_v46 }
  0x6d   :  { %v787_v54 = vadd.f32 %v785_v40, %v774_v47  ;;  %v764_v55 = vmul.f32 %v4642_v20, %v761_v16  ;;  %v772_v56 = vmul.f32 %v4647_v21, %v769_v32  ;;  %4028 = vmatpush3.bf16.msra.mxu0 %v594_v50  ;;  %v780_v60 = vmul.f32 %v4647_v21, %v777_v39 }
  0x6e   :  { %v791_v57 = vadd.f32 %v790_v44, %v781_v51  ;;  %v792_v58 = vadd.f32 %v790_v44, %v782_v52  ;;  %v759_v59 = vadd.f32 %v756_v53, %v746_v48  ;;  %v963_v62 = vstv %s4794_s28  ;;  %s4983_s28 = sld [smem:[#allocation6 + $0x382]] }
  0x6f   :  { %v767_v61 = vadd.f32 %v764_v55, %v751_v49  ;;  %v968_v63 = vstv %s4799_s29  ;;  %v973_v5 = vstv %s4801_s30  ;;  %v964_v14 = vmul.f32 %v963_v62, %v4596_v0  ;;  %s4985_s29 = sld [smem:[#allocation4 + $0x7]] }
  0x70   :  { %v797_v6 = vmul.f32 %v791_v57, %v786_v45  ;;  %v798_v7 = vmul.f32 %v792_v58, %v787_v54  ;;  %v775_v8 = vadd.f32 %v772_v56, %v759_v59  ;;  %v794_v9 = vadd.f32 %v791_v57, %v786_v45  ;;  %4030 = vmatmul.mubr.msk.bf16.vlgmr.msra.gmra.mrb[8].mxu0 %vm145_vm0, %v4803_v34  ;;  %s4992_s30 = sld [smem:[#allocation7 + $0x7]] }
  0x71   :  { %v783_v11 = vadd.f32 %v780_v60, %v767_v61  ;;  %v795_v13 = vadd.f32 %v792_v58, %v787_v54  ;;  %v965_v16 = vmul.f32 %v963_v62, %v4601_v1  ;;  %v969_v24 = vmul.f32 %v968_v63, %v4596_v0 }
  0x72   :  { %v800_v17 = vmul.f32 0.011785113, %v797_v6  ;;  %v801_v22 = vmul.f32 0.011785113, %v798_v7  ;;  %v788_v23 = vadd.f32 %v785_v40, %v775_v8  ;;  %v970_v27 = vmul.f32 %v968_v63, %v4601_v1 }
  0x73   :  { %v793_v25 = vadd.f32 %v790_v44, %v783_v11  ;;  %v4838_v26 = vpack.c.bf16 %v795_v13, %v794_v9  ;;  %v974_v28 = vmul.f32 %v4611_v3, %v973_v5  ;;  %v975_v31 = vmul.f32 %v4616_v4, %v973_v5 }
  0x74   :  { %v805_v29 = vpack.c.bf16 %v801_v22, %v800_v17  ;;  %v981_v32 = vstv %s4817_s6  ;;  %v989_v33 = vstv %s4819_s7  ;;  %v997_v47 = vstv %s4827_s8  ;;  %s5076_s6 = sld [smem:[#allocation7]]  ;;  %s5236_s7 = sld [smem:[#allocation6 + $0x181]] }
  0x75   :  { %v799_v35 = vmul.f32 %v793_v25, %v788_v23  ;;  %4045 = vmatprep.mubr.msk.bf16.mxu0 %vm145_vm0, %v4838_v26  ;;  %v796_v36 = vadd.f32 %v793_v25, %v788_v23  ;;  %v977_v37 = vadd.f32 %v974_v28, %v964_v14  ;;  %v982_v38 = vmul.f32 %v4611_v3, %v981_v32  ;;  %s5242_s8 = sld [smem:[#allocation2 + $0x182]] }
  0x76   :  { %4041 = vmatprep.subr.bf16.mxu0 %v805_v29  ;;  %v978_v39 = vadd.f32 %v975_v31, %v965_v16  ;;  %v983_v40 = vmul.f32 %v4616_v4, %v981_v32  ;;  %v990_v41 = vmul.f32 %v4626_v10, %v989_v33  ;;  %v991_v42 = vmul.f32 %v4633_v15, %v989_v33 }
  0x77   :  { %4042 = vmatpush3.bf16.msra.mxu0 %v805_v29  ;;  %v802_v43 = vmul.f32 0.011785113, %v799_v35  ;;  %v4855_v44 = vpack.c.bf16 %v796_v36, %v796_v36  ;;  %v985_v46 = vadd.f32 %v982_v38, %v969_v24  ;;  %v998_v51 = vmul.f32 %v4626_v10, %v997_v47 }
  0x78   :  { %v986_v48 = vadd.f32 %v983_v40, %v970_v27  ;;  %v993_v49 = vadd.f32 %v990_v41, %v977_v37  ;;  %v994_v50 = vadd.f32 %v991_v42, %v978_v39  ;;  %v999_v53 = vmul.f32 %v4633_v15, %v997_v47 }
  0x79   :  { %v806_v52 = vpack.c.bf16 %v802_v43, %v802_v43  ;;  %v1005_v45 = vstv %s4833_s9  ;;  %v1010_v54 = vstv %s4835_s3  ;;  %v1001_v55 = vadd.f32 %v998_v51, %v985_v46  ;;  %s5009_s3 = sld [smem:[#allocation2]]  ;;  %s5250_s9 = sld [smem:[#allocation6 + $0x182]] }
  0x7a   :  { %v1006_v56 = vadd.f32 %v1005_v45, %v993_v49  ;;  %v1007_v57 = vadd.f32 %v1005_v45, %v994_v50  ;;  %v966_v58 = vmul.f32 %v963_v62, %v4606_v2  ;;  %v1002_v60 = vadd.f32 %v999_v53, %v986_v48 }
  0x7b   :  { %4255 = vmatprep.subr.msk.bf16.mxu0 %vm152_vm1, %v806_v52  ;;  %v814_v59 = vsel %vm152_vm1, %v806_v52, 0  ;;  %v971_v61 = vmul.f32 %v968_v63, %v4606_v2  ;;  %v976_v6 = vmul.f32 %v4642_v20, %v973_v5  ;;  %v1011_v7 = vadd.f32 %v1010_v54, %v1001_v55 }
  0x7c   :  { %4044 = vmatpush3.bf16.msra.mxu0 %v814_v59  ;;  %v984_v8 = vmul.f32 %v4642_v20, %v981_v32  ;;  %v992_v62 = vmul.f32 %v4647_v21, %v989_v33  ;;  %v1000_v9 = vmul.f32 %v4647_v21, %v997_v47  ;;  %v1012_v11 = vadd.f32 %v1010_v54, %v1002_v60 }
  0x7d   :  { %v979_v13 = vadd.f32 %v976_v6, %v966_v58  ;;  %v1183_v14 = vstv %s4848_s4  ;;  %v1188_v16 = vstv %s4850_s10  ;;  %v1017_v17 = vmul.f32 %v1011_v7, %v1006_v56  ;;  %s5099_s4 = sld [smem:[#allocation2 + $0x80]] }
  0x7e   :  { %v987_v22 = vadd.f32 %v984_v8, %v971_v61  ;;  %v1014_v23 = vadd.f32 %v1011_v7, %v1006_v56  ;;  %v1184_v63 = vmul.f32 %v1183_v14, %v4596_v0  ;;  %v1018_v5 = vmul.f32 %v1012_v11, %v1007_v57  ;;  %s5101_s10 = sld [smem:[#allocation6 + $0x80]] }
  0x7f   :  { %4046 = vmatmul.mubr.msk.bf16.vlgmr.msra.gmra.mrb[12].mxu0 %vm145_vm0, %v4855_v44  ;;  %v995_v24 = vadd.f32 %v992_v62, %v979_v13  ;;  %v1015_v25 = vadd.f32 %v1012_v11, %v1007_v57  ;;  %v1185_v27 = vmul.f32 %v1183_v14, %v4601_v1  ;;  %v1020_v28 = vmul.f32 0.011785113, %v1017_v17 }
  0x80   :  { %v1003_v29 = vadd.f32 %v1000_v9, %v987_v22  ;;  %v1189_v31 = vmul.f32 %v1188_v16, %v4596_v0  ;;  %v1190_v32 = vmul.f32 %v1188_v16, %v4601_v1  ;;  %v1021_v33 = vmul.f32 0.011785113, %v1018_v5 }
  0x81   :  { %v1008_v35 = vadd.f32 %v1005_v45, %v995_v24  ;;  %v4890_v36 = vpack.c.bf16 %v1015_v25, %v1014_v23  ;;  %v1193_v37 = vstv %s4862_s11  ;;  %v1201_v41 = vstv %s4865_s12  ;;  %s5280_s11 = sld [smem:[#allocation6 + $0x200]]  ;;  %s5282_s12 = sld [smem:[#allocation2 + $0x201]] }
  0x82   :  { %v1013_v38 = vadd.f32 %v1010_v54, %v1003_v29  ;;  %v1194_v39 = vmul.f32 %v4611_v3, %v1193_v37  ;;  %v1195_v40 = vmul.f32 %v4616_v4, %v1193_v37  ;;  %v1025_v42 = vpack.c.bf16 %v1021_v33, %v1020_v28 }
  0x83   :  { %6373 = vst [vmem:[#allocation12_spill] sm:$0xff] %v4890_v36  ;;  %4061 = vmatprep.mubr.msk.bf16.mxu0 %vm145_vm0, %v4890_v36  ;;  %v1202_v43 = vmul.f32 %v4611_v3, %v1201_v41  ;;  %v1203_v46 = vmul.f32 %v4616_v4, %v1201_v41  ;;  %v1209_v47 = vstv %s4871_s13  ;;  %v1217_v57 = vstv %s4879_s14  ;;  %s5021_s13 = sld [smem:[#allocation6]]  ;;  %s5023_s14 = sld [smem:[#allocation2 + $0x1]] }
  0x84   :  { %v1019_v48 = vmul.f32 %v1013_v38, %v1008_v35  ;;  %v1016_v49 = vadd.f32 %v1013_v38, %v1008_v35  ;;  %v1197_v50 = vadd.f32 %v1194_v39, %v1184_v63  ;;  %v1198_v51 = vadd.f32 %v1195_v40, %v1185_v27  ;;  %4057 = vmatprep.subr.bf16.mxu0 %v1025_v42 }
  0x85   :  { %v1205_v52 = vadd.f32 %v1202_v43, %v1189_v31  ;;  %v1206_v53 = vadd.f32 %v1203_v46, %v1190_v32  ;;  %v1210_v45 = vmul.f32 %v4626_v10, %v1209_v47  ;;  %v1211_v54 = vmul.f32 %v4633_v15, %v1209_v47  ;;  %4058 = vmatpush3.bf16.msra.mxu0 %v1025_v42 }
  0x86   :  { %v1022_v55 = vmul.f32 0.011785113, %v1019_v48  ;;  %v4905_v56 = vpack.c.bf16 %v1016_v49, %v1016_v49  ;;  %v1225_v58 = vstv %s4881_s15  ;;  %v1218_v61 = vmul.f32 %v4626_v10, %v1217_v57  ;;  %s5302_s15 = sld [smem:[#allocation6 + $0x202]] }
  0x87   :  { %v1213_v59 = vadd.f32 %v1210_v45, %v1197_v50  ;;  %v1214_v60 = vadd.f32 %v1211_v54, %v1198_v51  ;;  %v1219_v6 = vmul.f32 %v4633_v15, %v1217_v57  ;;  %v1230_v8 = vstv %s4888_s16  ;;  %s5308_s16 = sld [smem:[#allocation4 + $0x4]] }
  0x88   :  { %6374 = vst [vmem:[#allocation13_spill] sm:$0xff] %v4905_v56  ;;  %v1026_v7 = vpack.c.bf16 %v1022_v55, %v1022_v55  ;;  %v1186_v62 = vmul.f32 %v1183_v14, %v4606_v2  ;;  %v1191_v9 = vmul.f32 %v1188_v16, %v4606_v2  ;;  %v1221_v11 = vadd.f32 %v1218_v61, %v1205_v52 }
  0x89   :  { %v1222_v13 = vadd.f32 %v1219_v6, %v1206_v53  ;;  %v1226_v17 = vadd.f32 %v1225_v58, %v1213_v59  ;;  %v1227_v22 = vadd.f32 %v1225_v58, %v1214_v60  ;;  %v1196_v63 = vmul.f32 %v4642_v20, %v1193_v37 }
  0x8a   :  { %4257 = vmatprep.subr.msk.bf16.mxu0 %vm152_vm1, %v1026_v7  ;;  %v1034_v23 = vsel %vm152_vm1, %v1026_v7, 0  ;;  %v1204_v5 = vmul.f32 %v4642_v20, %v1201_v41  ;;  %v1212_v14 = vmul.f32 %v4647_v21, %v1209_v47  ;;  %v1231_v16 = vadd.f32 %v1230_v8, %v1221_v11 }
  0x8b   :  { %4060 = vmatpush3.bf16.msra.mxu0 %v1034_v23  ;;  %v1232_v24 = vadd.f32 %v1230_v8, %v1222_v13  ;;  %v1220_v25 = vmul.f32 %v4647_v21, %v1217_v57  ;;  %v1403_v27 = vstv %s4901_s17  ;;  %v1199_v28 = vadd.f32 %v1196_v63, %v1186_v62  ;;  %s5128_s17 = sld [smem:[#allocation2 + $0x81]] }
  0x8c   :  { %v1207_v29 = vadd.f32 %v1204_v5, %v1191_v9  ;;  %v1404_v31 = vmul.f32 %v1403_v27, %v4596_v0  ;;  %v1405_v32 = vmul.f32 %v1403_v27, %v4601_v1  ;;  %v1237_v33 = vmul.f32 %v1231_v16, %v1226_v17 }
  0x8d   :  { %v1238_v35 = vmul.f32 %v1232_v24, %v1227_v22  ;;  %v1234_v37 = vadd.f32 %v1231_v16, %v1226_v17  ;;  %v1235_v38 = vadd.f32 %v1232_v24, %v1227_v22  ;;  %v1215_v39 = vadd.f32 %v1212_v14, %v1199_v28 }
  0x8e   :  { %4062 = vmatmul.mubr.msk.bf16.vlgmr.msra.gmra.mrb[16].mxu0 %vm145_vm0, %v4905_v56  ;;  %v1223_v40 = vadd.f32 %v1220_v25, %v1207_v29  ;;  %v1408_v41 = vstv %s4909_s18  ;;  %v1413_v42 = vstv %s4911_s19  ;;  %v1240_v43 = vmul.f32 0.011785113, %v1237_v33  ;;  %s5132_s18 = sld [smem:[#allocation6 + $0x81]]  ;;  %s5138_s19 = sld [smem:[#allocation2 + $0x82]] }
  0x8f   :  { %v1241_v46 = vmul.f32 0.011785113, %v1238_v35  ;;  %v4941_v47 = vpack.c.bf16 %v1235_v38, %v1234_v37  ;;  %v1409_v48 = vmul.f32 %v1408_v41, %v4596_v0  ;;  %v1228_v49 = vadd.f32 %v1225_v58, %v1215_v39 }
  0x90   :  { %v1233_v50 = vadd.f32 %v1230_v8, %v1223_v40  ;;  %v1410_v51 = vmul.f32 %v1408_v41, %v4601_v1  ;;  %v1414_v52 = vmul.f32 %v4611_v3, %v1413_v42  ;;  %v1415_v45 = vmul.f32 %v4616_v4, %v1413_v42 }
  0x91   :  { %6375 = vst [vmem:[#allocation14_spill] sm:$0xff] %v4941_v47  ;;  %v1245_v53 = vpack.c.bf16 %v1241_v46, %v1240_v43  ;;  %4077 = vmatprep.mubr.msk.bf16.mxu0 %vm145_vm0, %v4941_v47  ;;  %v1421_v54 = vstv %s4918_s20  ;;  %v1429_v55 = vstv %s4920_s21  ;;  %v1437_v13 = vstv %s4931_s22  ;;  %s5039_s21 = sld [smem:[#allocation6 + $0x1]]  ;;  %s5041_s22 = sld [smem:[#allocation2 + $0x2]] }
  0x92   :  { %v1239_v57 = vmul.f32 %v1233_v50, %v1228_v49  ;;  %v1236_v59 = vadd.f32 %v1233_v50, %v1228_v49  ;;  %v1417_v60 = vadd.f32 %v1414_v52, %v1404_v31  ;;  %v1422_v61 = vmul.f32 %v4611_v3, %v1421_v54  ;;  %s5146_s20 = sld [smem:[#allocation6 + $0x82]] }
  0x93   :  { %4073 = vmatprep.subr.bf16.mxu0 %v1245_v53  ;;  %v1418_v58 = vadd.f32 %v1415_v45, %v1405_v32  ;;  %v1423_v6 = vmul.f32 %v4616_v4, %v1421_v54  ;;  %v1430_v7 = vmul.f32 %v4626_v10, %v1429_v55  ;;  %v1431_v8 = vmul.f32 %v4633_v15, %v1429_v55 }
  0x94   :  { %4074 = vmatpush3.bf16.msra.mxu0 %v1245_v53  ;;  %v1242_v62 = vmul.f32 0.011785113, %v1239_v57  ;;  %v4959_v9 = vpack.c.bf16 %v1236_v59, %v1236_v59  ;;  %v1425_v11 = vadd.f32 %v1422_v61, %v1409_v48  ;;  %v1438_v63 = vmul.f32 %v4626_v10, %v1437_v13 }
  0x95   :  { %v1426_v17 = vadd.f32 %v1423_v6, %v1410_v51  ;;  %v1433_v22 = vadd.f32 %v1430_v7, %v1417_v60  ;;  %v1434_v23 = vadd.f32 %v1431_v8, %v1418_v58  ;;  %v1439_v14 = vmul.f32 %v4633_v15, %v1437_v13  ;;  %v4478_v8 = vld [vmem:[%s6314_s0 + $0x20] sm:$0xff] }
  0x96   :  { %6376 = vst [vmem:[#allocation15_spill] sm:$0xff] %v4959_v9  ;;  %v1246_v5 = vpack.c.bf16 %v1242_v62, %v1242_v62  ;;  %v1445_v16 = vstv %s4937_s23  ;;  %v1450_v24 = vstv %s4939_s24  ;;  %v1441_v25 = vadd.f32 %v1438_v63, %v1425_v11  ;;  %v4479_v63 = vld [vmem:[%s6314_s0 + $0x30] sm:$0xff]  ;;  %s5168_s23 = sld [smem:[#allocation2 + $0x100]] }
  0x97   :  { %v1446_v28 = vadd.f32 %v1445_v16, %v1433_v22  ;;  %v1447_v29 = vadd.f32 %v1445_v16, %v1434_v23  ;;  %v1406_v31 = vmul.f32 %v1403_v27, %v4606_v2  ;;  %v1442_v32 = vadd.f32 %v1439_v14, %v1426_v17  ;;  %v4480_v14 = vld [vmem:[%s6314_s0 + $0x38] sm:$0xff]  ;;  %s5176_s24 = sld [smem:[#allocation6 + $0x100]] }
  0x98   :  { %4259 = vmatprep.subr.msk.bf16.mxu0 %vm152_vm1, %v1246_v5  ;;  %v1254_v10 = vsel %vm152_vm1, %v1246_v5, 0  ;;  %v1411_v15 = vmul.f32 %v1408_v41, %v4606_v2  ;;  %v1416_v33 = vmul.f32 %v4642_v20, %v1413_v42  ;;  %v1451_v35 = vadd.f32 %v1450_v24, %v1441_v25 }
  0x99   :  { %4076 = vmatpush3.bf16.msra.mxu0 %v1254_v10  ;;  %v1424_v37 = vmul.f32 %v4642_v20, %v1421_v54  ;;  %v1432_v27 = vmul.f32 %v4647_v21, %v1429_v55  ;;  %v1440_v38 = vmul.f32 %v4647_v21, %v1437_v13  ;;  %v1452_v39 = vadd.f32 %v1450_v24, %v1442_v32 }
  0x9a   :  { %v1419_v40 = vadd.f32 %v1416_v33, %v1406_v31  ;;  %v1623_v43 = vstv %s4952_s25  ;;  %v1628_v46 = vstv %s4954_s26  ;;  %v1457_v48 = vmul.f32 %v1451_v35, %v1446_v28  ;;  %s5178_s25 = sld [smem:[#allocation2 + $0x101]] }
  0x9b   :  { %v1427_v49 = vadd.f32 %v1424_v37, %v1411_v15  ;;  %v1454_v50 = vadd.f32 %v1451_v35, %v1446_v28  ;;  %v1624_v2 = vmul.f32 %v1623_v43, %v4596_v0  ;;  %v1458_v20 = vmul.f32 %v1452_v39, %v1447_v29  ;;  %v4481_v37 = vld [vmem:[%s6314_s0 + $0x10] sm:$0x3]  ;;  %s5185_s26 = sld [smem:[#allocation6 + $0x101]] }
  0x9c   :  { %4078 = vmatmul.mubr.msk.bf16.vlgmr.msra.gmra.mrb[20].mxu0 %vm145_vm0, %v4959_v9  ;;  %v1435_v21 = vadd.f32 %v1432_v27, %v1419_v40  ;;  %v1455_v41 = vadd.f32 %v1452_v39, %v1447_v29  ;;  %v1625_v42 = vmul.f32 %v1623_v43, %v4601_v1  ;;  %v1460_v51 = vmul.f32 0.011785113, %v1457_v48 }
  0x9d   :  { %v1443_v52 = vadd.f32 %v1440_v38, %v1427_v49  ;;  %v1629_v53 = vmul.f32 %v1628_v46, %v4596_v0  ;;  %v1630_v45 = vmul.f32 %v1628_v46, %v4601_v1  ;;  %v1461_v54 = vmul.f32 0.011785113, %v1458_v20  ;;  %v4477_v0 = vld [vmem:[%s6314_s0 + $0x18] sm:$0xff] }
  0x9e   :  { %v1448_v55 = vadd.f32 %v1445_v16, %v1435_v21  ;;  %v4994_v57 = vpack.c.bf16 %v1455_v41, %v1454_v50  ;;  %v1633_v59 = vstv %s4966_s2  ;;  %v1641_v6 = vstv %s4969_s1  ;;  %v5032_v50 = vld [vmem:[%s6314_s0 + $0x48] sm:$0xff]  ;;  %v4483_v41 = vld [vmem:[%s6314_s0 + $0x40] sm:$0x3]  ;;  %s5058_s2 = sld [smem:[#allocation6 + $0x2]] }
  0x9f   :  { %v1453_v60 = vadd.f32 %v1450_v24, %v1443_v52  ;;  %v1634_v61 = vmul.f32 %v4611_v3, %v1633_v59  ;;  %v1635_v58 = vmul.f32 %v4616_v4, %v1633_v59  ;;  %v1465_v7 = vpack.c.bf16 %v1461_v54, %v1460_v51  ;;  %s5198_s1 = sld [smem:[#allocation6 + $0x102]] }
  0xa0   :  { %6377 = vst [vmem:[#allocation16_spill] sm:$0xff] %v4994_v57  ;;  %4093 = vmatprep.mubr.msk.bf16.mxu0 %vm145_vm0, %v4994_v57  ;;  %v1642_v1 = vmul.f32 %v4477_v0, %v1641_v6  ;;  %v1643_v62 = vmul.f32 %v4478_v8, %v1641_v6  ;;  %v1649_v11 = vstv %s4975_s27  ;;  %v1657_v28 = vstv %s4983_s28  ;;  %v5063_v0 = vld [vmem:[%s6314_s0 + $0x60] sm:$0xff]  ;;  %s5204_s27 = sld [smem:[#allocation4 + $0x2]] }
  0xa1   :  { %v1459_v3 = vmul.f32 %v1453_v60, %v1448_v55  ;;  %v1456_v4 = vadd.f32 %v1453_v60, %v1448_v55  ;;  %v1637_v13 = vadd.f32 %v1634_v61, %v1624_v2  ;;  %v1638_v17 = vadd.f32 %v1635_v58, %v1625_v42  ;;  %4089 = vmatprep.subr.bf16.mxu0 %v1465_v7  ;;  %v5037_v2 = vld [vmem:[%s6314_s0 + $0x50] sm:$0xff]  ;;  %s5206_s28 = sld [smem:[#allocation7 + $0x2]] }
  0xa2   :  { %v1645_v22 = vadd.f32 %v1642_v1, %v1629_v53  ;;  %v1646_v23 = vadd.f32 %v1643_v62, %v1630_v45  ;;  %v1650_v5 = vmul.f32 %v4479_v63, %v1649_v11  ;;  %v1651_v16 = vmul.f32 %v4480_v14, %v1649_v11  ;;  %4090 = vmatpush3.bf16.msra.mxu0 %v1465_v7  ;;  %v5070_v62 = vld [vmem:[%s6314_s0 + $0x68] sm:$0xff] }
  0xa3   :  { %v1462_v24 = vmul.f32 0.011785113, %v1459_v3  ;;  %v5017_v25 = vpack.c.bf16 %v1456_v4, %v1456_v4  ;;  %v1665_v29 = vstv %s4985_s29  ;;  %v1658_v32 = vmul.f32 %v4479_v63, %v1657_v28  ;;  %s5219_s29 = sld [smem:[#allocation2 + $0x180]] }
  0xa4   :  { %v1653_v31 = vadd.f32 %v1650_v5, %v1637_v13  ;;  %v1654_v10 = vadd.f32 %v1651_v16, %v1638_v17  ;;  %v1659_v15 = vmul.f32 %v4480_v14, %v1657_v28  ;;  %v1670_v35 = vstv %s4992_s30  ;;  %s5074_s30 = sld [smem:[#allocation4]]  ;;  %v5084_v5 = vld [vmem:[%s6314_s0 + $0x78] sm:$0xff]  ;;  %v5089_v14 = vld [vmem:[%s6314_s0 + $0x80] sm:$0xff] }
  0xa5   :  { %6378 = vst [vmem:[#allocation17_spill] sm:$0xff] %v5017_v25  ;;  %v1466_v33 = vpack.c.bf16 %v1462_v24, %v1462_v24  ;;  %v1626_v27 = vmul.f32 %v4481_v37, %v1623_v43  ;;  %v1631_v38 = vmul.f32 %v4481_v37, %v1628_v46  ;;  %v1661_v39 = vadd.f32 %v1658_v32, %v1645_v22  ;;  %v4482_v46 = vld [vmem:[%s6314_s0 + $0x28] sm:$0x3] }
  0xa6   :  { %v1662_v40 = vadd.f32 %v1659_v15, %v1646_v23  ;;  %v1666_v48 = vadd.f32 %v1665_v29, %v1653_v31  ;;  %v1667_v49 = vadd.f32 %v1665_v29, %v1654_v10  ;;  %v1636_v20 = vmul.f32 %v4482_v46, %v1633_v59 }
  0xa7   :  { %4261 = vmatprep.subr.msk.bf16.mxu0 %vm152_vm1, %v1466_v33  ;;  %v1474_v43 = vsel %vm152_vm1, %v1466_v33, 0  ;;  %v1644_v21 = vmul.f32 %v4482_v46, %v1641_v6  ;;  %v1652_v42 = vmul.f32 %v4483_v41, %v1649_v11  ;;  %v1671_v51 = vadd.f32 %v1670_v35, %v1661_v39  ;;  %v5112_v46 = vld [vmem:[%s6314_s0 + $0x58] sm:$0x3] }
  0xa8   :  { %4092 = vmatpush3.bf16.msra.mxu0 %v1474_v43  ;;  %v1672_v52 = vadd.f32 %v1670_v35, %v1662_v40  ;;  %v1660_v53 = vmul.f32 %v4483_v41, %v1657_v28  ;;  %v5052_v45 = vstv %s5009_s3  ;;  %v1639_v54 = vadd.f32 %v1636_v20, %v1626_v27  ;;  %s5252_s3 = sld [smem:[#allocation4 + $0x3]] }
  0xa9   :  { %v1647_v55 = vadd.f32 %v1644_v21, %v1631_v38  ;;  %v1856_v60 = vmul.f32 %v5032_v50, %v5052_v45  ;;  %v1857_v59 = vmul.f32 %v5037_v2, %v5052_v45  ;;  %v1677_v61 = vmul.f32 %v1671_v51, %v1666_v48 }
  0xaa   :  { %v1678_v58 = vmul.f32 %v1672_v52, %v1667_v49  ;;  %v1674_v6 = vadd.f32 %v1671_v51, %v1666_v48  ;;  %v1675_v7 = vadd.f32 %v1672_v52, %v1667_v49  ;;  %v1655_v1 = vadd.f32 %v1652_v42, %v1639_v54  ;;  %v5118_v51 = vld [vmem:[%s6314_s0 + $0x70] sm:$0x3] }
  0xab   :  { %4094 = vmatmul.mubr.msk.bf16.vlgmr.msra.gmra.mrb[24].mxu0 %vm145_vm0, %v5017_v25  ;;  %v1663_v8 = vadd.f32 %v1660_v53, %v1647_v55  ;;  %v1860_v11 = vstv %s5021_s13  ;;  %v1865_v3 = vstv %s5023_s14  ;;  %v1680_v4 = vmul.f32 0.011785113, %v1677_v61  ;;  %s5289_s13 = sld [smem:[#allocation6 + $0x201]]  ;;  %s5291_s14 = sld [smem:[#allocation2 + $0x202]] }
  0xac   :  { %v1681_v13 = vmul.f32 0.011785113, %v1678_v58  ;;  %v5078_v17 = vpack.c.bf16 %v1675_v7, %v1674_v6  ;;  %v1861_v22 = vmul.f32 %v5032_v50, %v1860_v11  ;;  %v1668_v23 = vadd.f32 %v1665_v29, %v1655_v1 }
  0xad   :  { %v1673_v63 = vadd.f32 %v1670_v35, %v1663_v8  ;;  %v1862_v16 = vmul.f32 %v5037_v2, %v1860_v11  ;;  %v1866_v24 = vmul.f32 %v5063_v0, %v1865_v3  ;;  %v1867_v29 = vmul.f32 %v5070_v62, %v1865_v3 }
  0xae   :  { %6379 = vst [vmem:[#allocation18_spill] sm:$0xff] %v5078_v17  ;;  %v1685_v28 = vpack.c.bf16 %v1681_v13, %v1680_v4  ;;  %4109 = vmatprep.mubr.msk.bf16.mxu0 %vm145_vm0, %v5078_v17  ;;  %v1873_v31 = vstv %s5039_s21  ;;  %v1881_v10 = vstv %s5041_s22  ;;  %v1889_v43 = vstv %s5058_s2  ;;  %s5148_s21 = sld [smem:[#allocation4 + $0x1]]  ;;  %s5187_s2 = sld [smem:[#allocation2 + $0x102]] }
  0xaf   :  { %v1679_v32 = vmul.f32 %v1673_v63, %v1668_v23  ;;  %v1676_v15 = vadd.f32 %v1673_v63, %v1668_v23  ;;  %v1869_v33 = vadd.f32 %v1866_v24, %v1856_v60  ;;  %v1874_v35 = vmul.f32 %v5063_v0, %v1873_v31  ;;  %v5126_v60 = vld [vmem:[%s6314_s0 + $0x88] sm:$0x3]  ;;  %s5155_s22 = sld [smem:[#allocation7 + $0x1]] }
  0xb0   :  { %4105 = vmatprep.subr.bf16.mxu0 %v1685_v28  ;;  %v1870_v37 = vadd.f32 %v1867_v29, %v1857_v59  ;;  %v1875_v27 = vmul.f32 %v5070_v62, %v1873_v31  ;;  %v1882_v38 = vmul.f32 %v5084_v5, %v1881_v10  ;;  %v1883_v39 = vmul.f32 %v5089_v14, %v1881_v10 }
  0xb1   :  { %4106 = vmatpush3.bf16.msra.mxu0 %v1685_v28  ;;  %v1682_v40 = vmul.f32 0.011785113, %v1679_v32  ;;  %v5106_v48 = vpack.c.bf16 %v1676_v15, %v1676_v15  ;;  %v1877_v49 = vadd.f32 %v1874_v35, %v1861_v22  ;;  %v1890_v42 = vmul.f32 %v5084_v5, %v1889_v43 }
  0xb2   :  { %v1878_v20 = vadd.f32 %v1875_v27, %v1862_v16  ;;  %v1885_v21 = vadd.f32 %v1882_v38, %v1869_v33  ;;  %v1886_v41 = vadd.f32 %v1883_v39, %v1870_v37  ;;  %v1891_v53 = vmul.f32 %v5089_v14, %v1889_v43 }
  0xb3   :  { %6380 = vst [vmem:[#allocation19_spill] sm:$0xff] %v5106_v48  ;;  %v1686_v52 = vpack.c.bf16 %v1682_v40, %v1682_v40  ;;  %v1897_v54 = vstv %s5074_s30  ;;  %v1902_v55 = vstv %s5076_s6  ;;  %v1893_v59 = vadd.f32 %v1890_v42, %v1877_v49  ;;  %s5221_s30 = sld [smem:[#allocation6 + $0x180]]  ;;  %s5233_s6 = sld [smem:[#allocation2 + $0x181]] }
  0xb4   :  { %v1898_v61 = vadd.f32 %v1897_v54, %v1885_v21  ;;  %v1899_v58 = vadd.f32 %v1897_v54, %v1886_v41  ;;  %v1858_v6 = vmul.f32 %v5112_v46, %v5052_v45  ;;  %v1894_v1 = vadd.f32 %v1891_v53, %v1878_v20 }
  0xb5   :  { %4263 = vmatprep.subr.msk.bf16.mxu0 %vm152_vm1, %v1686_v52  ;;  %v1694_v7 = vsel %vm152_vm1, %v1686_v52, 0  ;;  %v1863_v8 = vmul.f32 %v5112_v46, %v1860_v11  ;;  %v1868_v4 = vmul.f32 %v5118_v51, %v1865_v3  ;;  %v1903_v13 = vadd.f32 %v1902_v55, %v1893_v59 }
  0xb6   :  { %4108 = vmatpush3.bf16.msra.mxu0 %v1694_v7  ;;  %v1876_v22 = vmul.f32 %v5118_v51, %v1873_v31  ;;  %v1884_v45 = vmul.f32 %v5126_v60, %v1881_v10  ;;  %v1892_v23 = vmul.f32 %v5126_v60, %v1889_v43  ;;  %v1904_v63 = vadd.f32 %v1902_v55, %v1894_v1 }
  0xb7   :  { %v1871_v16 = vadd.f32 %v1868_v4, %v1858_v6  ;;  %v2075_v24 = vstv %s5099_s4  ;;  %v2080_v28 = vstv %s5101_s10  ;;  %v1909_v29 = vmul.f32 %v1903_v13, %v1898_v61  ;;  %s5259_s4 = sld [smem:[#allocation7 + $0x3]]  ;;  %s5272_s10 = sld [smem:[#allocation2 + $0x200]] }
  0xb8   :  { %v1879_v32 = vadd.f32 %v1876_v22, %v1863_v8  ;;  %v1906_v15 = vadd.f32 %v1903_v13, %v1898_v61  ;;  %v2076_v11 = vmul.f32 %v5032_v50, %v2075_v24  ;;  %v1910_v3 = vmul.f32 %v1904_v63, %v1899_v58 }
  0xb9   :  { %4110 = vmatmul.mubr.msk.bf16.vlgmr.msra.gmra.mrb[28].mxu0 %vm145_vm0, %v5106_v48  ;;  %v1887_v31 = vadd.f32 %v1884_v45, %v1871_v16  ;;  %v1907_v10 = vadd.f32 %v1904_v63, %v1899_v58  ;;  %v2077_v33 = vmul.f32 %v5037_v2, %v2075_v24  ;;  %v1912_v35 = vmul.f32 0.011785113, %v1909_v29 }
  0xba   :  { %v1895_v37 = vadd.f32 %v1892_v23, %v1879_v32  ;;  %v2081_v27 = vmul.f32 %v5032_v50, %v2080_v28  ;;  %v2082_v38 = vmul.f32 %v5037_v2, %v2080_v28  ;;  %v1913_v39 = vmul.f32 0.011785113, %v1910_v3 }
  0xbb   :  { %v1900_v40 = vadd.f32 %v1897_v54, %v1887_v31  ;;  %v5157_v49 = vpack.c.bf16 %v1907_v10, %v1906_v15  ;;  %v2085_v43 = vstv %s5128_s17  ;;  %v2093_v42 = vstv %s5132_s18  ;;  %s5310_s17 = sld [smem:[#allocation7 + $0x4]]  ;;  %s5323_s18 = sld [smem:[#allocation2 + $0x280]] }
  0xbc   :  { %v1905_v20 = vadd.f32 %v1902_v55, %v1895_v37  ;;  %v2086_v21 = vmul.f32 %v5063_v0, %v2085_v43  ;;  %v2087_v41 = vmul.f32 %v5070_v62, %v2085_v43  ;;  %v1917_v52 = vpack.c.bf16 %v1913_v39, %v1912_v35 }
  0xbd   :  { %6381 = vst [vmem:[#allocation20_spill] sm:$0xff] %v5157_v49  ;;  %4125 = vmatprep.mubr.msk.bf16.mxu0 %vm145_vm0, %v5157_v49  ;;  %v2094_v53 = vmul.f32 %v5063_v0, %v2093_v42  ;;  %v2095_v59 = vmul.f32 %v5070_v62, %v2093_v42  ;;  %v2101_v54 = vstv %s5138_s19  ;;  %v2109_v45 = vstv %s5146_s20  ;;  %s5325_s19 = sld [smem:[#allocation6 + $0x280]]  ;;  %s5337_s20 = sld [smem:[#allocation2 + $0x281]] }
  0xbe   :  { %v1911_v61 = vmul.f32 %v1905_v20, %v1900_v40  ;;  %v1908_v55 = vadd.f32 %v1905_v20, %v1900_v40  ;;  %v2089_v58 = vadd.f32 %v2086_v21, %v2076_v11  ;;  %v2090_v6 = vadd.f32 %v2087_v41, %v2077_v33  ;;  %4121 = vmatprep.subr.bf16.mxu0 %v1917_v52 }
  0xbf   :  { %v2097_v7 = vadd.f32 %v2094_v53, %v2081_v27  ;;  %v2098_v1 = vadd.f32 %v2095_v59, %v2082_v38  ;;  %v2102_v8 = vmul.f32 %v5084_v5, %v2101_v54  ;;  %v2103_v4 = vmul.f32 %v5089_v14, %v2101_v54  ;;  %4122 = vmatpush3.bf16.msra.mxu0 %v1917_v52 }
  0xc0   :  { %v1914_v13 = vmul.f32 0.011785113, %v1911_v61  ;;  %v5172_v22 = vpack.c.bf16 %v1908_v55, %v1908_v55  ;;  %v2117_v23 = vstv %s5148_s21  ;;  %v2110_v29 = vmul.f32 %v5084_v5, %v2109_v45  ;;  %s5340_s21 = sld [smem:[#allocation6 + $0x281]] }
  0xc1   :  { %v2105_v63 = vadd.f32 %v2102_v8, %v2089_v58  ;;  %v2106_v16 = vadd.f32 %v2103_v4, %v2090_v6  ;;  %v2111_v32 = vmul.f32 %v5089_v14, %v2109_v45  ;;  %v2122_v11 = vstv %s5155_s22  ;;  %s5346_s22 = sld [smem:[#allocation2 + $0x282]] }
  0xc2   :  { %6382 = vst [vmem:[#allocation21_spill] sm:$0xff] %v5172_v22  ;;  %v1918_v15 = vpack.c.bf16 %v1914_v13, %v1914_v13  ;;  %v2078_v3 = vmul.f32 %v5112_v46, %v2075_v24  ;;  %v2083_v31 = vmul.f32 %v5112_v46, %v2080_v28  ;;  %v2113_v10 = vadd.f32 %v2110_v29, %v2097_v7 }
  0xc3   :  { %v2114_v33 = vadd.f32 %v2111_v32, %v2098_v1  ;;  %v2118_v35 = vadd.f32 %v2117_v23, %v2105_v63  ;;  %v2119_v37 = vadd.f32 %v2117_v23, %v2106_v16  ;;  %v2088_v38 = vmul.f32 %v5118_v51, %v2085_v43 }
  0xc4   :  { %4265 = vmatprep.subr.msk.bf16.mxu0 %vm152_vm1, %v1918_v15  ;;  %v1926_v27 = vsel %vm152_vm1, %v1918_v15, 0  ;;  %v2096_v39 = vmul.f32 %v5118_v51, %v2093_v42  ;;  %v2104_v24 = vmul.f32 %v5126_v60, %v2101_v54  ;;  %v2123_v28 = vadd.f32 %v2122_v11, %v2113_v10 }
  0xc5   :  { %4124 = vmatpush3.bf16.msra.mxu0 %v1926_v27  ;;  %v2124_v40 = vadd.f32 %v2122_v11, %v2114_v33  ;;  %v2112_v20 = vmul.f32 %v5126_v60, %v2109_v45  ;;  %v2295_v21 = vstv %s5168_s23  ;;  %v2091_v41 = vadd.f32 %v2088_v38, %v2078_v3  ;;  %s5354_s23 = sld [smem:[#allocation6 + $0x282]] }
  0xc6   :  { %v2099_v52 = vadd.f32 %v2096_v39, %v2083_v31  ;;  %v2296_v53 = vmul.f32 %v5032_v50, %v2295_v21  ;;  %v2297_v59 = vmul.f32 %v5037_v2, %v2295_v21  ;;  %v2129_v43 = vmul.f32 %v2123_v28, %v2118_v35 }
  0xc7   :  { %v2130_v42 = vmul.f32 %v2124_v40, %v2119_v37  ;;  %v2126_v61 = vadd.f32 %v2123_v28, %v2118_v35  ;;  %v2127_v54 = vadd.f32 %v2124_v40, %v2119_v37  ;;  %v2107_v55 = vadd.f32 %v2104_v24, %v2091_v41 }
  0xc8   :  { %4126 = vmatmul.mubr.msk.bf16.vlgmr.msra.gmra.mrb[32].mxu0 %vm145_vm0, %v5172_v22  ;;  %v2115_v58 = vadd.f32 %v2112_v20, %v2099_v52  ;;  %v2300_v6 = vstv %s5176_s24  ;;  %v2305_v7 = vstv %s5178_s25  ;;  %v2132_v1 = vmul.f32 0.011785113, %v2129_v43  ;;  %s5356_s24 = sld [smem:[#allocation4 + $0x5]] }
  0xc9   :  { %v2133_v8 = vmul.f32 0.011785113, %v2130_v42  ;;  %v5208_v4 = vpack.c.bf16 %v2127_v54, %v2126_v61  ;;  %v2301_v13 = vmul.f32 %v5032_v50, %v2300_v6  ;;  %v2120_v45 = vadd.f32 %v2117_v23, %v2107_v55  ;;  %s5363_s25 = sld [smem:[#allocation7 + $0x5]] }
  0xca   :  { %v2125_v63 = vadd.f32 %v2122_v11, %v2115_v58  ;;  %v2302_v16 = vmul.f32 %v5037_v2, %v2300_v6  ;;  %v2306_v29 = vmul.f32 %v5063_v0, %v2305_v7  ;;  %v2307_v15 = vmul.f32 %v5070_v62, %v2305_v7 }
  0xcb   :  { %6383 = vst [vmem:[#allocation22_spill] sm:$0xff] %v5208_v4  ;;  %v2137_v32 = vpack.c.bf16 %v2133_v8, %v2132_v1  ;;  %4141 = vmatprep.mubr.msk.bf16.mxu0 %vm145_vm0, %v5208_v4  ;;  %v2313_v3 = vstv %s5185_s26  ;;  %v2321_v31 = vstv %s5187_s2  ;;  %v2329_v40 = vstv %s5198_s1  ;;  %s5376_s26 = sld [smem:[#allocation2 + $0x300]]  ;;  %s5386_s1 = sld [smem:[#allocation2 + $0x301]] }
  0xcc   :  { %v2131_v10 = vmul.f32 %v2125_v63, %v2120_v45  ;;  %v2128_v33 = vadd.f32 %v2125_v63, %v2120_v45  ;;  %v2309_v35 = vadd.f32 %v2306_v29, %v2296_v53  ;;  %v2314_v37 = vmul.f32 %v5063_v0, %v2313_v3  ;;  %s5384_s2 = sld [smem:[#allocation6 + $0x300]] }
  0xcd   :  { %4137 = vmatprep.subr.bf16.mxu0 %v2137_v32  ;;  %v2310_v23 = vadd.f32 %v2307_v15, %v2297_v59  ;;  %v2315_v11 = vmul.f32 %v5070_v62, %v2313_v3  ;;  %v2322_v27 = vmul.f32 %v5084_v5, %v2321_v31  ;;  %v2323_v38 = vmul.f32 %v5089_v14, %v2321_v31 }
  0xce   :  { %4138 = vmatpush3.bf16.msra.mxu0 %v2137_v32  ;;  %v2134_v39 = vmul.f32 0.011785113, %v2131_v10  ;;  %v5226_v24 = vpack.c.bf16 %v2128_v33, %v2128_v33  ;;  %v2317_v28 = vadd.f32 %v2314_v37, %v2301_v13  ;;  %v2330_v53 = vmul.f32 %v5084_v5, %v2329_v40 }
  0xcf   :  { %v2318_v20 = vadd.f32 %v2315_v11, %v2302_v16  ;;  %v2325_v41 = vadd.f32 %v2322_v27, %v2309_v35  ;;  %v2326_v52 = vadd.f32 %v2323_v38, %v2310_v23  ;;  %v2331_v59 = vmul.f32 %v5089_v14, %v2329_v40 }
  0xd0   :  { %6384 = vst [vmem:[#allocation23_spill] sm:$0xff] %v5226_v24  ;;  %v2138_v43 = vpack.c.bf16 %v2134_v39, %v2134_v39  ;;  %v2337_v42 = vstv %s5204_s27  ;;  %v2342_v61 = vstv %s5206_s28  ;;  %v2333_v54 = vadd.f32 %v2330_v53, %v2317_v28  ;;  %s5393_s27 = sld [smem:[#allocation6 + $0x301]]  ;;  %s5395_s28 = sld [smem:[#allocation2 + $0x302]] }
  0xd1   :  { %v2338_v55 = vadd.f32 %v2337_v42, %v2325_v41  ;;  %v2339_v58 = vadd.f32 %v2337_v42, %v2326_v52  ;;  %v2298_v1 = vmul.f32 %v5112_v46, %v2295_v21  ;;  %v2334_v13 = vadd.f32 %v2331_v59, %v2318_v20 }
  0xd2   :  { %4267 = vmatprep.subr.msk.bf16.mxu0 %vm152_vm1, %v2138_v43  ;;  %v2146_v8 = vsel %vm152_vm1, %v2138_v43, 0  ;;  %v2303_v45 = vmul.f32 %v5112_v46, %v2300_v6  ;;  %v2308_v63 = vmul.f32 %v5118_v51, %v2305_v7  ;;  %v2343_v16 = vadd.f32 %v2342_v61, %v2333_v54 }
  0xd3   :  { %4140 = vmatpush3.bf16.msra.mxu0 %v2146_v8  ;;  %v2316_v29 = vmul.f32 %v5118_v51, %v2313_v3  ;;  %v2324_v21 = vmul.f32 %v5126_v60, %v2321_v31  ;;  %v2332_v32 = vmul.f32 %v5126_v60, %v2329_v40  ;;  %v2344_v15 = vadd.f32 %v2342_v61, %v2334_v13 }
  0xd4   :  { %v2311_v10 = vadd.f32 %v2308_v63, %v2298_v1  ;;  %v2515_v33 = vstv %s5219_s29  ;;  %v2520_v35 = vstv %s5221_s30  ;;  %v2349_v37 = vmul.f32 %v2343_v16, %v2338_v55  ;;  %s5406_s29 = sld [smem:[#allocation6 + $0x302]]  ;;  %s5412_s30 = sld [smem:[#allocation4 + $0x6]] }
  0xd5   :  { %v2319_v23 = vadd.f32 %v2316_v29, %v2303_v45  ;;  %v2346_v11 = vadd.f32 %v2343_v16, %v2338_v55  ;;  %v2516_v6 = vmul.f32 %v5032_v50, %v2515_v33  ;;  %v2350_v7 = vmul.f32 %v2344_v15, %v2339_v58 }
  0xd6   :  { %4142 = vmatmul.mubr.msk.bf16.vlgmr.msra.gmra.mrb[36].mxu0 %vm145_vm0, %v5226_v24  ;;  %v2327_v3 = vadd.f32 %v2324_v21, %v2311_v10  ;;  %v2347_v31 = vadd.f32 %v2344_v15, %v2339_v58  ;;  %v2517_v27 = vmul.f32 %v5037_v2, %v2515_v33  ;;  %v2352_v38 = vmul.f32 0.011785113, %v2349_v37 }
  0xd7   :  { %v2335_v39 = vadd.f32 %v2332_v32, %v2319_v23  ;;  %v2521_v28 = vmul.f32 %v5032_v50, %v2520_v35  ;;  %v2522_v40 = vmul.f32 %v5037_v2, %v2520_v35  ;;  %v2353_v20 = vmul.f32 0.011785113, %v2350_v7 }
  0xd8   :  { %v2340_v41 = vadd.f32 %v2337_v42, %v2327_v3  ;;  %v5261_v52 = vpack.c.bf16 %v2347_v31, %v2346_v11  ;;  %v2525_v53 = vstv %s5233_s6  ;;  %v2533_v55 = vstv %s5236_s7  ;;  %s5414_s6 = sld [smem:[#allocation7 + $0x6]]  ;;  %s5427_s7 = sld [smem:[#allocation2 + $0x380]] }
  0xd9   :  { %v2345_v43 = vadd.f32 %v2342_v61, %v2335_v39  ;;  %v2526_v59 = vmul.f32 %v5063_v0, %v2525_v53  ;;  %v2527_v54 = vmul.f32 %v5070_v62, %v2525_v53  ;;  %v2357_v58 = vpack.c.bf16 %v2353_v20, %v2352_v38 }
  0xda   :  { %6385 = vst [vmem:[#allocation24_spill] sm:$0xff] %v5261_v52  ;;  %4157 = vmatprep.mubr.msk.bf16.mxu0 %vm145_vm0, %v5261_v52  ;;  %v2534_v1 = vmul.f32 %v5063_v0, %v2533_v55  ;;  %v2535_v8 = vmul.f32 %v5070_v62, %v2533_v55  ;;  %v2541_v42 = vstv %s5242_s8  ;;  %v2549_v37 = vstv %s5250_s9  ;;  %s5429_s8 = sld [smem:[#allocation6 + $0x380]]  ;;  %s5441_s9 = sld [smem:[#allocation2 + $0x381]] }
  0xdb   :  { %v2351_v13 = vmul.f32 %v2345_v43, %v2340_v41  ;;  %v2348_v61 = vadd.f32 %v2345_v43, %v2340_v41  ;;  %v2529_v45 = vadd.f32 %v2526_v59, %v2516_v6  ;;  %v2530_v63 = vadd.f32 %v2527_v54, %v2517_v27  ;;  %4153 = vmatprep.subr.bf16.mxu0 %v2357_v58 }
  0xdc   :  { %v2537_v16 = vadd.f32 %v2534_v1, %v2521_v28  ;;  %v2538_v29 = vadd.f32 %v2535_v8, %v2522_v40  ;;  %v2542_v21 = vmul.f32 %v5084_v5, %v2541_v42  ;;  %v2543_v32 = vmul.f32 %v5089_v14, %v2541_v42  ;;  %4154 = vmatpush3.bf16.msra.mxu0 %v2357_v58 }
  0xdd   :  { %v2354_v15 = vmul.f32 0.011785113, %v2351_v13  ;;  %v5276_v10 = vpack.c.bf16 %v2348_v61, %v2348_v61  ;;  %v2557_v23 = vstv %s5252_s3  ;;  %v2550_v7 = vmul.f32 %v5084_v5, %v2549_v37  ;;  %s5444_s3 = sld [smem:[#allocation6 + $0x381]] }
  0xde   :  { %v2545_v11 = vadd.f32 %v2542_v21, %v2529_v45  ;;  %v2546_v6 = vadd.f32 %v2543_v32, %v2530_v63  ;;  %v2551_v3 = vmul.f32 %v5089_v14, %v2549_v37  ;;  %v2562_v27 = vstv %s5259_s4  ;;  %s5450_s4 = sld [smem:[#allocation2 + $0x382]] }
  0xdf   :  { %6386 = vst [vmem:[#allocation25_spill] sm:$0xff] %v5276_v10  ;;  %v2358_v31 = vpack.c.bf16 %v2354_v15, %v2354_v15  ;;  %v2518_v38 = vmul.f32 %v5112_v46, %v2515_v33  ;;  %v2523_v39 = vmul.f32 %v5112_v46, %v2520_v35  ;;  %v2553_v28 = vadd.f32 %v2550_v7, %v2537_v16 }
  0xe0   :  { %v2554_v40 = vadd.f32 %v2551_v3, %v2538_v29  ;;  %v2558_v20 = vadd.f32 %v2557_v23, %v2545_v11  ;;  %v2559_v41 = vadd.f32 %v2557_v23, %v2546_v6  ;;  %v2528_v59 = vmul.f32 %v5118_v51, %v2525_v53 }
  0xe1   :  { %4269 = vmatprep.subr.msk.bf16.mxu0 %vm152_vm1, %v2358_v31  ;;  %v2366_v43 = vsel %vm152_vm1, %v2358_v31, 0  ;;  %v2536_v54 = vmul.f32 %v5118_v51, %v2533_v55  ;;  %v2544_v33 = vmul.f32 %v5126_v60, %v2541_v42  ;;  %v2563_v35 = vadd.f32 %v2562_v27, %v2553_v28 }
  0xe2   :  { %4156 = vmatpush3.bf16.msra.mxu0 %v2366_v43  ;;  %v2564_v58 = vadd.f32 %v2562_v27, %v2554_v40  ;;  %v2552_v1 = vmul.f32 %v5126_v60, %v2549_v37  ;;  %v2735_v8 = vstv %s5272_s10  ;;  %v2531_v13 = vadd.f32 %v2528_v59, %v2518_v38 }
  0xe3   :  { %v2539_v61 = vadd.f32 %v2536_v54, %v2523_v39  ;;  %v2736_v45 = vmul.f32 %v5032_v50, %v2735_v8  ;;  %v2737_v63 = vmul.f32 %v5037_v2, %v2735_v8  ;;  %v2569_v53 = vmul.f32 %v2563_v35, %v2558_v20 }
  0xe4   :  { %v2570_v55 = vmul.f32 %v2564_v58, %v2559_v41  ;;  %v2566_v16 = vadd.f32 %v2563_v35, %v2558_v20  ;;  %v2567_v42 = vadd.f32 %v2564_v58, %v2559_v41  ;;  %v2547_v29 = vadd.f32 %v2544_v33, %v2531_v13 }
  0xe5   :  { %4158 = vmatmul.mubr.msk.bf16.vlgmr.msra.gmra.mrb[40].mxu0 %vm145_vm0, %v5276_v10  ;;  %v2555_v21 = vadd.f32 %v2552_v1, %v2539_v61  ;;  %v2740_v32 = vstv %s5280_s11  ;;  %v2745_v15 = vstv %s5282_s12  ;;  %v2572_v37 = vmul.f32 0.011785113, %v2569_v53  ;;  %s5460_s12 = sld [smem:[#allocation6 + $0x382]] }
  0xe6   :  { %v2573_v11 = vmul.f32 0.011785113, %v2570_v55  ;;  %v5312_v6 = vpack.c.bf16 %v2567_v42, %v2566_v16  ;;  %v2741_v7 = vmul.f32 %v5032_v50, %v2740_v32  ;;  %v2560_v3 = vadd.f32 %v2557_v23, %v2547_v29 }
  0xe7   :  { %v2565_v31 = vadd.f32 %v2562_v27, %v2555_v21  ;;  %v2742_v38 = vmul.f32 %v5037_v2, %v2740_v32  ;;  %v2746_v39 = vmul.f32 %v5063_v0, %v2745_v15  ;;  %v2747_v40 = vmul.f32 %v5070_v62, %v2745_v15 }
  0xe8   :  { %6387 = vst [vmem:[#allocation26_spill] sm:$0xff] %v5312_v6  ;;  %v2577_v28 = vpack.c.bf16 %v2573_v11, %v2572_v37  ;;  %4173 = vmatprep.mubr.msk.bf16.mxu0 %vm145_vm0, %v5312_v6  ;;  %v2753_v20 = vstv %s5289_s13  ;;  %v2761_v41 = vstv %s5291_s14  ;;  %v2777_v21 = vstv %s5308_s16  ;;  %s5462_s13 = sld [smem:[#allocation4 + $0x7]] }
  0xe9   :  { %v2571_v43 = vmul.f32 %v2565_v31, %v2560_v3  ;;  %v2568_v59 = vadd.f32 %v2565_v31, %v2560_v3  ;;  %v2749_v54 = vadd.f32 %v2746_v39, %v2736_v45  ;;  %v2754_v33 = vmul.f32 %v5063_v0, %v2753_v20  ;;  %s5469_s16 = sld [smem:[#allocation7 + $0x7]] }
  0xea   :  { %4169 = vmatprep.subr.bf16.mxu0 %v2577_v28  ;;  %v2750_v23 = vadd.f32 %v2747_v40, %v2737_v63  ;;  %v2755_v27 = vmul.f32 %v5070_v62, %v2753_v20  ;;  %v2762_v35 = vmul.f32 %v5084_v5, %v2761_v41  ;;  %v2763_v58 = vmul.f32 %v5089_v14, %v2761_v41 }
  0xeb   :  { %4170 = vmatpush3.bf16.msra.mxu0 %v2577_v28  ;;  %v2574_v1 = vmul.f32 0.011785113, %v2571_v43  ;;  %v5330_v13 = vpack.c.bf16 %v2568_v59, %v2568_v59  ;;  %v2757_v61 = vadd.f32 %v2754_v33, %v2741_v7  ;;  %v2769_v45 = vstv %s5302_s15 }
  0xec   :  { %v2758_v53 = vadd.f32 %v2755_v27, %v2742_v38  ;;  %v2765_v55 = vadd.f32 %v2762_v35, %v2749_v54  ;;  %v2766_v16 = vadd.f32 %v2763_v58, %v2750_v23  ;;  %v2770_v42 = vmul.f32 %v5084_v5, %v2769_v45 }
  0xed   :  { %6388 = vst [vmem:[#allocation27_spill] sm:$0xff] %v5330_v13  ;;  %v2578_v29 = vpack.c.bf16 %v2574_v1, %v2574_v1  ;;  %v2771_v63 = vmul.f32 %v5089_v14, %v2769_v45  ;;  %v2782_v37 = vstv %s5310_s17  ;;  %v2738_v39 = vmul.f32 %v5112_v46, %v2735_v8 }
  0xee   :  { %v2773_v11 = vadd.f32 %v2770_v42, %v2757_v61  ;;  %v2778_v3 = vadd.f32 %v2777_v21, %v2765_v55  ;;  %v2779_v31 = vadd.f32 %v2777_v21, %v2766_v16  ;;  %v2743_v28 = vmul.f32 %v5112_v46, %v2740_v32 }
  0xef   :  { %4271 = vmatprep.subr.msk.bf16.mxu0 %vm152_vm1, %v2578_v29  ;;  %v2586_v7 = vsel %vm152_vm1, %v2578_v29, 0  ;;  %v2774_v38 = vadd.f32 %v2771_v63, %v2758_v53  ;;  %v2748_v40 = vmul.f32 %v5118_v51, %v2745_v15  ;;  %v2756_v59 = vmul.f32 %v5118_v51, %v2753_v20 }
  0xf0   :  { %4172 = vmatpush3.bf16.msra.mxu0 %v2586_v7  ;;  %v2783_v43 = vadd.f32 %v2782_v37, %v2773_v11  ;;  %v2764_v8 = vmul.f32 %v5126_v60, %v2761_v41  ;;  %v2772_v54 = vmul.f32 %v5126_v60, %v2769_v45  ;;  %v2955_v27 = vstv %s5323_s18 }
  0xf1   :  { %v2784_v33 = vadd.f32 %v2782_v37, %v2774_v38  ;;  %v2751_v23 = vadd.f32 %v2748_v40, %v2738_v39  ;;  %v2960_v35 = vstv %s5325_s19  ;;  %v2759_v1 = vadd.f32 %v2756_v59, %v2743_v28 }
  0xf2   :  { %v2789_v58 = vmul.f32 %v2783_v43, %v2778_v3  ;;  %v2786_v61 = vadd.f32 %v2783_v43, %v2778_v3  ;;  %v2956_v32 = vmul.f32 %v5032_v50, %v2955_v27  ;;  %v2957_v45 = vmul.f32 %v5037_v2, %v2955_v27 }
  0xf3   :  { %4174 = vmatmul.mubr.msk.bf16.vlgmr.msra.gmra.mrb[44].mxu0 %vm145_vm0, %v5330_v13  ;;  %v2790_v15 = vmul.f32 %v2784_v33, %v2779_v31  ;;  %v2767_v20 = vadd.f32 %v2764_v8, %v2751_v23  ;;  %v2787_v41 = vadd.f32 %v2784_v33, %v2779_v31  ;;  %v2775_v55 = vadd.f32 %v2772_v54, %v2759_v1 }
  0xf4   :  { %v2792_v53 = vmul.f32 0.011785113, %v2789_v58  ;;  %v2961_v16 = vmul.f32 %v5032_v50, %v2960_v35  ;;  %v2962_v42 = vmul.f32 %v5037_v2, %v2960_v35  ;;  %v2965_v3 = vstv %s5337_s20 }
  0xf5   :  { %v2793_v29 = vmul.f32 0.011785113, %v2790_v15  ;;  %v2780_v63 = vadd.f32 %v2777_v21, %v2767_v20  ;;  %v5365_v11 = vpack.c.bf16 %v2787_v41, %v2786_v61  ;;  %v2785_v39 = vadd.f32 %v2782_v37, %v2775_v55 }
  0xf6   :  { %v2966_v7 = vmul.f32 %v5063_v0, %v2965_v3  ;;  %v2967_v31 = vmul.f32 %v5070_v62, %v2965_v3  ;;  %v2973_v38 = vstv %s5340_s21  ;;  %v2981_v21 = vstv %s5346_s22 }
  0xf7   :  { %6389 = vst [vmem:[#allocation28_spill] sm:$0xff] %v5365_v11  ;;  %v2797_v28 = vpack.c.bf16 %v2793_v29, %v2792_v53  ;;  %4189 = vmatprep.mubr.msk.bf16.mxu0 %vm145_vm0, %v5365_v11  ;;  %v2974_v40 = vmul.f32 %v5063_v0, %v2973_v38  ;;  %v2975_v43 = vmul.f32 %v5070_v62, %v2973_v38  ;;  %v2989_v20 = vstv %s5354_s23 }
  0xf8   :  { %v2791_v59 = vmul.f32 %v2785_v39, %v2780_v63  ;;  %v2788_v37 = vadd.f32 %v2785_v39, %v2780_v63  ;;  %v2969_v8 = vadd.f32 %v2966_v7, %v2956_v32  ;;  %v2970_v54 = vadd.f32 %v2967_v31, %v2957_v45 }
  0xf9   :  { %4185 = vmatprep.subr.bf16.mxu0 %v2797_v28  ;;  %v2977_v33 = vadd.f32 %v2974_v40, %v2961_v16  ;;  %v2978_v23 = vadd.f32 %v2975_v43, %v2962_v42  ;;  %v2982_v58 = vmul.f32 %v5084_v5, %v2981_v21  ;;  %v2983_v1 = vmul.f32 %v5089_v14, %v2981_v21 }
  0xfa   :  { %4186 = vmatpush3.bf16.msra.mxu0 %v2797_v28  ;;  %v2794_v61 = vmul.f32 0.011785113, %v2791_v59  ;;  %v5380_v15 = vpack.c.bf16 %v2788_v37, %v2788_v37  ;;  %v2997_v41 = vstv %s5356_s24  ;;  %v2990_v53 = vmul.f32 %v5084_v5, %v2989_v20 }
  0xfb   :  { %v2985_v32 = vadd.f32 %v2982_v58, %v2969_v8  ;;  %v2986_v45 = vadd.f32 %v2983_v1, %v2970_v54  ;;  %v2991_v55 = vmul.f32 %v5089_v14, %v2989_v20  ;;  %v3002_v42 = vstv %s5363_s25 }
  0xfc   :  { %6390 = vst [vmem:[#allocation29_spill] sm:$0xff] %v5380_v15  ;;  %v2798_v16 = vpack.c.bf16 %v2794_v61, %v2794_v61  ;;  %v2958_v29 = vmul.f32 %v5112_v46, %v2955_v27  ;;  %v2963_v63 = vmul.f32 %v5112_v46, %v2960_v35  ;;  %v2993_v39 = vadd.f32 %v2990_v53, %v2977_v33 }
  0xfd   :  { %v2994_v7 = vadd.f32 %v2991_v55, %v2978_v23  ;;  %v2998_v31 = vadd.f32 %v2997_v41, %v2985_v32  ;;  %v2999_v28 = vadd.f32 %v2997_v41, %v2986_v45  ;;  %v2968_v43 = vmul.f32 %v5118_v51, %v2965_v3 }
  0xfe   :  { %4273 = vmatprep.subr.msk.bf16.mxu0 %vm152_vm1, %v2798_v16  ;;  %v2806_v40 = vsel %vm152_vm1, %v2798_v16, 0  ;;  %v2976_v59 = vmul.f32 %v5118_v51, %v2973_v38  ;;  %v2984_v27 = vmul.f32 %v5126_v60, %v2981_v21  ;;  %v3003_v35 = vadd.f32 %v3002_v42, %v2993_v39 }
  0xff   :  { %4188 = vmatpush3.bf16.msra.mxu0 %v2806_v40  ;;  %v3004_v37 = vadd.f32 %v3002_v42, %v2994_v7  ;;  %v2992_v8 = vmul.f32 %v5126_v60, %v2989_v20  ;;  %v3175_v54 = vstv %s5376_s26  ;;  %v2971_v33 = vadd.f32 %v2968_v43, %v2958_v29 }
 0x100   :  { %v2979_v23 = vadd.f32 %v2976_v59, %v2963_v63  ;;  %v3176_v58 = vmul.f32 %v5032_v50, %v3175_v54  ;;  %v3177_v1 = vmul.f32 %v5037_v2, %v3175_v54  ;;  %v3009_v3 = vmul.f32 %v3003_v35, %v2998_v31 }
 0x101   :  { %v3010_v38 = vmul.f32 %v3004_v37, %v2999_v28  ;;  %v3006_v61 = vadd.f32 %v3003_v35, %v2998_v31  ;;  %v3007_v21 = vadd.f32 %v3004_v37, %v2999_v28  ;;  %v2987_v32 = vadd.f32 %v2984_v27, %v2971_v33 }
 0x102   :  { %4190 = vmatmul.mubr.msk.bf16.vlgmr.msra.gmra.mrb[48].mxu0 %vm145_vm0, %v5380_v15  ;;  %v2995_v45 = vadd.f32 %v2992_v8, %v2979_v23  ;;  %v3180_v20 = vstv %s5384_s2  ;;  %v3185_v53 = vstv %s5386_s1  ;;  %v3012_v55 = vmul.f32 0.011785113, %v3009_v3 }
 0x103   :  { %v3013_v16 = vmul.f32 0.011785113, %v3010_v38  ;;  %v5416_v29 = vpack.c.bf16 %v3007_v21, %v3006_v61  ;;  %v3181_v63 = vmul.f32 %v5032_v50, %v3180_v20  ;;  %v3000_v39 = vadd.f32 %v2997_v41, %v2987_v32 }
 0x104   :  { %v3005_v7 = vadd.f32 %v3002_v42, %v2995_v45  ;;  %v3182_v31 = vmul.f32 %v5037_v2, %v3180_v20  ;;  %v3186_v28 = vmul.f32 %v5063_v0, %v3185_v53  ;;  %v3187_v43 = vmul.f32 %v5070_v62, %v3185_v53 }
 0x105   :  { %6391 = vst [vmem:[#allocation30_spill] sm:$0xff] %v5416_v29  ;;  %v3017_v40 = vpack.c.bf16 %v3013_v16, %v3012_v55  ;;  %4205 = vmatprep.mubr.msk.bf16.mxu0 %vm145_vm0, %v5416_v29  ;;  %v3193_v59 = vstv %s5393_s27  ;;  %v3201_v27 = vstv %s5395_s28  ;;  %v3217_v55 = vstv %s5412_s30 }
 0x106   :  { %v3011_v35 = vmul.f32 %v3005_v7, %v3000_v39  ;;  %v3008_v37 = vadd.f32 %v3005_v7, %v3000_v39  ;;  %v3189_v8 = vadd.f32 %v3186_v28, %v3176_v58  ;;  %v3194_v50 = vmul.f32 %v5063_v0, %v3193_v59 }
 0x107   :  { %4201 = vmatprep.subr.bf16.mxu0 %v3017_v40  ;;  %v3190_v2 = vadd.f32 %v3187_v43, %v3177_v1  ;;  %v3195_v41 = vmul.f32 %v5070_v62, %v3193_v59  ;;  %v3202_v42 = vmul.f32 %v5084_v5, %v3201_v27  ;;  %v3203_v33 = vmul.f32 %v5089_v14, %v3201_v27 }
 0x108   :  { %4202 = vmatpush3.bf16.msra.mxu0 %v3017_v40  ;;  %v3014_v23 = vmul.f32 0.011785113, %v3011_v35  ;;  %v5434_v3 = vpack.c.bf16 %v3008_v37, %v3008_v37  ;;  %v3197_v58 = vadd.f32 %v3194_v50, %v3181_v63  ;;  %v3209_v0 = vstv %s5406_s29 }
 0x109   :  { %v3198_v38 = vadd.f32 %v3195_v41, %v3182_v31  ;;  %v3205_v61 = vadd.f32 %v3202_v42, %v3189_v8  ;;  %v3206_v21 = vadd.f32 %v3203_v33, %v3190_v2  ;;  %v3210_v32 = vmul.f32 %v5084_v5, %v3209_v0 }
 0x10a   :  { %6392 = vst [vmem:[#allocation31_spill] sm:$0xff] %v5434_v3  ;;  %v3018_v45 = vpack.c.bf16 %v3014_v23, %v3014_v23  ;;  %v3211_v1 = vmul.f32 %v5089_v14, %v3209_v0  ;;  %v3222_v62 = vstv %s5414_s6  ;;  %v3178_v28 = vmul.f32 %v5112_v46, %v3175_v54 }
 0x10b   :  { %v3213_v16 = vadd.f32 %v3210_v32, %v3197_v58  ;;  %v3218_v39 = vadd.f32 %v3217_v55, %v3205_v61  ;;  %v3219_v7 = vadd.f32 %v3217_v55, %v3206_v21  ;;  %v3183_v14 = vmul.f32 %v5112_v46, %v3180_v20  ;;  %v4484_v46 = vld [vmem:[%s6314_s0 + $0x48] sm:$0xff] }
 0x10c   :  { %4275 = vmatprep.subr.msk.bf16.mxu0 %vm152_vm1, %v3018_v45  ;;  %v3026_v5 = vsel %vm152_vm1, %v3018_v45, 0  ;;  %v3214_v63 = vadd.f32 %v3211_v1, %v3198_v38  ;;  %v3188_v31 = vmul.f32 %v5118_v51, %v3185_v53  ;;  %v3196_v43 = vmul.f32 %v5118_v51, %v3193_v59  ;;  %v4485_v59 = vld [vmem:[%s6314_s0 + $0x50] sm:$0xff] }
 0x10d   :  { %4204 = vmatpush3.bf16.msra.mxu0 %v3026_v5  ;;  %v3223_v40 = vadd.f32 %v3222_v62, %v3213_v16  ;;  %v3204_v54 = vmul.f32 %v5126_v60, %v3201_v27  ;;  %v3212_v35 = vmul.f32 %v5126_v60, %v3209_v0  ;;  %v3395_v50 = vstv %s5427_s7  ;;  %v4486_v16 = vld [vmem:[%s6314_s0 + $0x60] sm:$0xff] }
 0x10e   :  { %v3224_v37 = vadd.f32 %v3222_v62, %v3214_v63  ;;  %v3191_v8 = vadd.f32 %v3188_v31, %v3178_v28  ;;  %v3400_v2 = vstv %s5429_s8  ;;  %v3199_v42 = vadd.f32 %v3196_v43, %v3183_v14 }
 0x10f   :  { %v3229_v41 = vmul.f32 %v3223_v40, %v3218_v39  ;;  %v3226_v33 = vadd.f32 %v3223_v40, %v3218_v39  ;;  %v3396_v20 = vmul.f32 %v4484_v46, %v3395_v50  ;;  %v3397_v27 = vmul.f32 %v4485_v59, %v3395_v50 }
 0x110   :  { %4206 = vmatmul.mubr.msk.bf16.vlgmr.msra.gmra.mrb[52].mxu0 %vm145_vm0, %v5434_v3  ;;  %v3230_v51 = vmul.f32 %v3224_v37, %v3219_v7  ;;  %v3207_v60 = vadd.f32 %v3204_v54, %v3191_v8  ;;  %v3227_v53 = vadd.f32 %v3224_v37, %v3219_v7  ;;  %v3215_v58 = vadd.f32 %v3212_v35, %v3199_v42  ;;  %v4487_v7 = vld [vmem:[%s6314_s0 + $0x68] sm:$0xff]  ;;  %v4488_v8 = vld [vmem:[%s6314_s0 + $0x78] sm:$0xff]  ;;  %v4489_v42 = vld [vmem:[%s6314_s0 + $0x80] sm:$0xff] }
 0x111   :  { %v3232_v23 = vmul.f32 0.011785113, %v3229_v41  ;;  %v3401_v0 = vmul.f32 %v4484_v46, %v3400_v2  ;;  %v3402_v38 = vmul.f32 %v4485_v59, %v3400_v2  ;;  %v3405_v45 = vstv %s5441_s9 }
 0x112   :  { %v3233_v61 = vmul.f32 0.011785113, %v3230_v51  ;;  %v3220_v21 = vadd.f32 %v3217_v55, %v3207_v60  ;;  %v5471_v32 = vpack.c.bf16 %v3227_v53, %v3226_v33  ;;  %v3225_v1 = vadd.f32 %v3222_v62, %v3215_v58 }
 0x113   :  { %v3406_v39 = vmul.f32 %v4486_v16, %v3405_v45  ;;  %v3407_v28 = vmul.f32 %v4487_v7, %v3405_v45  ;;  %v3413_v5 = vstv %s5444_s3  ;;  %v3421_v31 = vstv %s5450_s4 }
 0x114   :  { %6393 = vst [vmem:[#allocation32_spill] sm:$0xff] %v5471_v32  ;;  %v3237_v63 = vpack.c.bf16 %v3233_v61, %v3232_v23  ;;  %4221 = vmatprep.mubr.msk.bf16.mxu0 %vm145_vm0, %v5471_v32  ;;  %v3414_v55 = vmul.f32 %v4486_v16, %v3413_v5  ;;  %v3415_v14 = vmul.f32 %v4487_v7, %v3413_v5  ;;  %v3437_v60 = vstv %s5462_s13 }
 0x115   :  { %v3231_v62 = vmul.f32 %v3225_v1, %v3220_v21  ;;  %v3228_v40 = vadd.f32 %v3225_v1, %v3220_v21  ;;  %v3409_v43 = vadd.f32 %v3406_v39, %v3396_v20  ;;  %v3410_v54 = vadd.f32 %v3407_v28, %v3397_v27 }
 0x116   :  { %4217 = vmatprep.subr.bf16.mxu0 %v3237_v63  ;;  %v3417_v35 = vadd.f32 %v3414_v55, %v3401_v0  ;;  %v3418_v37 = vadd.f32 %v3415_v14, %v3402_v38  ;;  %v3422_v41 = vmul.f32 %v4488_v8, %v3421_v31  ;;  %v3423_v33 = vmul.f32 %v4489_v42, %v3421_v31  ;;  %v4490_v38 = vld [vmem:[%s6314_s0 + $0x58] sm:$0x3] }
 0x117   :  { %4218 = vmatpush3.bf16.msra.mxu0 %v3237_v63  ;;  %v3234_v46 = vmul.f32 0.011785113, %v3231_v62  ;;  %v5490_v51 = vpack.c.bf16 %v3228_v40, %v3228_v40  ;;  %v3429_v20 = vstv %s5460_s12  ;;  %v3442_v0 = vstv %s5469_s16  ;;  %v4491_v63 = vld [vmem:[%s6314_s0 + $0x70] sm:$0x3]  ;;  %v4492_v62 = vld [vmem:[%s6314_s0 + $0x88] sm:$0x3] }
 0x118   :  { %v3425_v53 = vadd.f32 %v3422_v41, %v3409_v43  ;;  %v3426_v59 = vadd.f32 %v3423_v33, %v3410_v54  ;;  %v3430_v27 = vmul.f32 %v4488_v8, %v3429_v20  ;;  %v3431_v23 = vmul.f32 %v4489_v42, %v3429_v20 }
 0x119   :  { %6394 = vst [vmem:[#allocation33_spill] sm:$0xff] %v5490_v51  ;;  %v3238_v58 = vpack.c.bf16 %v3234_v46, %v3234_v46  ;;  %v3398_v61 = vmul.f32 %v4490_v38, %v3395_v50  ;;  %v3403_v21 = vmul.f32 %v4490_v38, %v3400_v2  ;;  %v3408_v55 = vmul.f32 %v4491_v63, %v3405_v45 }
 0x11a   :  { %v3433_v1 = vadd.f32 %v3430_v27, %v3417_v35  ;;  %v3434_v16 = vadd.f32 %v3431_v23, %v3418_v37  ;;  %v3438_v39 = vadd.f32 %v3437_v60, %v3425_v53  ;;  %v3439_v7 = vadd.f32 %v3437_v60, %v3426_v59 }
 0x11b   :  { %4277 = vmatprep.subr.msk.bf16.mxu0 %vm152_vm1, %v3238_v58  ;;  %v3246_v28 = vsel %vm152_vm1, %v3238_v58, 0  ;;  %v3416_v14 = vmul.f32 %v4491_v63, %v3413_v5  ;;  %v3424_v50 = vmul.f32 %v4492_v62, %v3421_v31  ;;  %v3432_v43 = vmul.f32 %v4492_v62, %v3429_v20 }
 0x11c   :  { %4220 = vmatpush3.bf16.msra.mxu0 %v3246_v28  ;;  %v3443_v2 = vadd.f32 %v3442_v0, %v3433_v1  ;;  %v3444_v40 = vadd.f32 %v3442_v0, %v3434_v16  ;;  %v3411_v54 = vadd.f32 %v3408_v55, %v3398_v61 }
 0x11d   :  { %v3419_v35 = vadd.f32 %v3416_v14, %v3403_v21 }
 0x11e   :  { %v3449_v37 = vmul.f32 %v3443_v2, %v3438_v39  ;;  %v3450_v8 = vmul.f32 %v3444_v40, %v3439_v7  ;;  %v3446_v41 = vadd.f32 %v3443_v2, %v3438_v39  ;;  %v3447_v42 = vadd.f32 %v3444_v40, %v3439_v7 }
 0x11f   :  { %4222 = vmatmul.mubr.msk.bf16.vlgmr.msra.gmra.mrb[56].mxu0 %vm145_vm0, %v5490_v51  ;;  %v3427_v45 = vadd.f32 %v3424_v50, %v3411_v54  ;;  %v3435_v5 = vadd.f32 %v3432_v43, %v3419_v35 }
 0x120   :  { %v3452_v33 = vmul.f32 0.011785113, %v3449_v37  ;;  %v3453_v46 = vmul.f32 0.011785113, %v3450_v8  ;;  %v5508_v53 = vpack.c.bf16 %v3447_v42, %v3446_v41 }
 0x121   :  { %v3440_v31 = vadd.f32 %v3437_v60, %v3427_v45  ;;  %v3445_v59 = vadd.f32 %v3442_v0, %v3435_v5 }
 0x122   :  { %6395 = vst [vmem:[#allocation34_spill] sm:$0xff] %v5508_v53  ;;  %v3457_v27 = vpack.c.bf16 %v3453_v46, %v3452_v33  ;;  %4237 = vmatprep.mubr.msk.bf16.mxu0 %vm145_vm0, %v5508_v53 }
 0x123   :  { %v3451_v20 = vmul.f32 %v3445_v59, %v3440_v31  ;;  %v3448_v58 = vadd.f32 %v3445_v59, %v3440_v31 }
 0x124   :  { %4233 = vmatprep.subr.bf16.mxu0 %v3457_v27 }
 0x125   :  { %4234 = vmatpush3.bf16.msra.mxu0 %v3457_v27  ;;  %v3454_v23 = vmul.f32 0.011785113, %v3451_v20  ;;  %v5522_v39 = vpack.c.bf16 %v3448_v58, %v3448_v58 }
 0x126   :  { %v5512_v38 = vpop.f32.mrb[0].mxu0 }
 0x127   :  { %v3458_v61 = vpack.c.bf16 %v3454_v23, %v3454_v23  ;;  %v5514_v21 = vpop.f32.mrb[1].mxu0  ;;  %v211_v1 = vsel %vm210_vm2, %v5512_v38, -inf  ;;  %6396 = vst [vmem:[#allocation35_spill] sm:$0xff] %v5522_v39 }
 0x128   :  { %212 = vmax.xlane.f32.xlu1 %v211_v1  ;;  %v4000_v60 = vpop.f32.mrb[2].mxu0  ;;  %v204_v0 = vsel %vm145_vm0, %v5514_v21, -inf }
 0x129   :  { %4279 = vmatprep.subr.msk.bf16.mxu0 %vm152_vm1, %v3458_v61  ;;  %v3466_v16 = vsel %vm152_vm1, %v3458_v61, 0  ;;  %205 = vmax.xlane.f32.xlu0 %v204_v0  ;;  %v5524_v7 = vpop.f32.mrb[3].mxu0 }
 0x12a   :  { %4236 = vmatpush3.bf16.msra.mxu0 %v3466_v16  ;;  %v207_v28 = vsel %vm145_vm0, %v5524_v7, -inf }
 0x12d   :  { %4238 = vmatmul.mubr.msk.bf16.vlgmr.msra.gmra.mrb[60].mxu0 %vm145_vm0, %v5522_v39  ;;  %208 = vmax.xlane.f32.xlu0 %v207_v28 }
 0x135   :  { %v5530_v63 = vpop.f32.mrb[4].mxu0 }
 0x136   :  { %v5532_v55 = vpop.f32.mrb[5].mxu0  ;;  %v430_v40 = vsel %vm210_vm2, %v5530_v63, -inf }
 0x137   :  { %v4016_v14 = vpop.f32.mrb[6].mxu0  ;;  %v424_v62 = vsel %vm145_vm0, %v5532_v55, -inf }
 0x138   :  { %425 = vmax.xlane.f32.xlu1 %v424_v62  ;;  %v5536_v50 = vpop.f32.mrb[7].mxu0 }
 0x139   :  { %v427_v2 = vsel %vm145_vm0, %v5536_v50, -inf }
 0x13a   :  { %428 = vmax.xlane.f32.xlu0 %v427_v2 }
 0x13c   :  { %431 = vmax.xlane.f32.xlu1 %v430_v40 }
 0x143   :  { %v5542_v43 = vpop.f32.mrb[8].mxu0 }
 0x144   :  { %v5544_v54 = vpop.f32.mrb[9].mxu0  ;;  %v650_v35 = vsel %vm210_vm2, %v5542_v43, -inf }
 0x145   :  { %v4032_v37 = vpop.f32.mrb[10].mxu0  ;;  %651 = vmax.xlane.f32.xlu0 %v650_v35  ;;  %v644_v42 = vsel %vm145_vm0, %v5544_v54, -inf }
 0x146   :  { %v5548_v8 = vpop.f32.mrb[11].mxu0 }
 0x147   :  { %v647_v41 = vsel %vm145_vm0, %v5548_v8, -inf }
 0x148   :  { %648 = vmax.xlane.f32.xlu1 %v647_v41 }
 0x149   :  { %645 = vmax.xlane.f32.xlu0 %v644_v42 }
 0x152   :  { %v5554_v45 = vpop.f32.mrb[12].mxu0 }
 0x153   :  { %v5556_v5 = vpop.f32.mrb[13].mxu0  ;;  %v870_v33 = vsel %vm210_vm2, %v5554_v45, -inf }
 0x154   :  { %v4048_v46 = vpop.f32.mrb[14].mxu0  ;;  %871 = vmax.xlane.f32.xlu1 %v870_v33  ;;  %v864_v27 = vsel %vm145_vm0, %v5556_v5, -inf }
 0x155   :  { %v5560_v31 = vpop.f32.mrb[15].mxu0 }
 0x156   :  { %v867_v59 = vsel %vm145_vm0, %v5560_v31, -inf }
 0x157   :  { %868 = vmax.xlane.f32.xlu0 %v867_v59 }
 0x158   :  { %865 = vmax.xlane.f32.xlu1 %v864_v27 }
 0x161   :  { %v5566_v20 = vpop.f32.mrb[16].mxu0 }
 0x162   :  { %v5568_v23 = vpop.f32.mrb[17].mxu0  ;;  %v1090_v58 = vsel %vm210_vm2, %v5566_v20, -inf }
 0x163   :  { %v4064_v61 = vpop.f32.mrb[18].mxu0  ;;  %1091 = vmax.xlane.f32.xlu0 %v1090_v58  ;;  %v1084_v0 = vsel %vm145_vm0, %v5568_v23, -inf }
 0x164   :  { %v5572_v1 = vpop.f32.mrb[19].mxu0 }
 0x165   :  { %v1087_v60 = vsel %vm145_vm0, %v5572_v1, -inf }
 0x166   :  { %1088 = vmax.xlane.f32.xlu1 %v1087_v60 }
 0x167   :  { %1085 = vmax.xlane.f32.xlu0 %v1084_v0 }
 0x16f   :  { %v5578_v16 = vpop.f32.mrb[20].mxu0 }
 0x170   :  { %v5580_v28 = vpop.f32.mrb[21].mxu0  ;;  %v1310_v14 = vsel %vm210_vm2, %v5578_v16, -inf }
 0x171   :  { %v4080_v62 = vpop.f32.mrb[22].mxu0  ;;  %1311 = vmax.xlane.f32.xlu1 %v1310_v14  ;;  %v1304_v40 = vsel %vm145_vm0, %v5580_v28, -inf }
 0x172   :  { %v5584_v2 = vpop.f32.mrb[23].mxu0 }
 0x173   :  { %v1307_v35 = vsel %vm145_vm0, %v5584_v2, -inf }
 0x174   :  { %1308 = vmax.xlane.f32.xlu0 %v1307_v35 }
 0x175   :  { %1305 = vmax.xlane.f32.xlu1 %v1304_v40 }
 0x17e   :  { %v5590_v37 = vpop.f32.mrb[24].mxu0 }
 0x17f   :  { %v5592_v41 = vpop.f32.mrb[25].mxu0  ;;  %v1530_v42 = vsel %vm210_vm2, %v5590_v37, -inf }
 0x180   :  { %v4096_v33 = vpop.f32.mrb[26].mxu0  ;;  %1531 = vmax.xlane.f32.xlu0 %v1530_v42  ;;  %v1524_v59 = vsel %vm145_vm0, %v5592_v41, -inf }
 0x181   :  { %v5596_v46 = vpop.f32.mrb[27].mxu0 }
 0x182   :  { %v1527_v27 = vsel %vm145_vm0, %v5596_v46, -inf }
 0x183   :  { %1528 = vmax.xlane.f32.xlu1 %v1527_v27 }
 0x184   :  { %1525 = vmax.xlane.f32.xlu0 %v1524_v59 }
 0x18c   :  { %v5602_v58 = vpop.f32.mrb[28].mxu0 }
 0x18d   :  { %v5604_v61 = vpop.f32.mrb[29].mxu0  ;;  %v1750_v60 = vsel %vm210_vm2, %v5602_v58, -inf }
 0x18e   :  { %v4112_v0 = vpop.f32.mrb[30].mxu0  ;;  %1751 = vmax.xlane.f32.xlu1 %v1750_v60  ;;  %v1744_v62 = vsel %vm145_vm0, %v5604_v61, -inf }
 0x18f   :  { %v5608_v14 = vpop.f32.mrb[31].mxu0 }
 0x190   :  { %v1747_v40 = vsel %vm145_vm0, %v5608_v14, -inf }
 0x191   :  { %1748 = vmax.xlane.f32.xlu0 %v1747_v40 }
 0x192   :  { %1745 = vmax.xlane.f32.xlu1 %v1744_v62 }
 0x19b   :  { %v5614_v35 = vpop.f32.mrb[32].mxu0 }
 0x19c   :  { %v5616_v42 = vpop.f32.mrb[33].mxu0  ;;  %v1982_v33 = vsel %vm210_vm2, %v5614_v35, -inf }
 0x19d   :  { %v4128_v59 = vpop.f32.mrb[34].mxu0  ;;  %1983 = vmax.xlane.f32.xlu0 %v1982_v33  ;;  %v1976_v60 = vsel %vm145_vm0, %v5616_v42, -inf }
 0x19e   :  { %v5620_v27 = vpop.f32.mrb[35].mxu0 }
 0x19f   :  { %v1979_v0 = vsel %vm145_vm0, %v5620_v27, -inf }
 0x1a0   :  { %1980 = vmax.xlane.f32.xlu1 %v1979_v0 }
 0x1a1   :  { %1977 = vmax.xlane.f32.xlu0 %v1976_v60 }
 0x1a9   :  { %v5626_v62 = vpop.f32.mrb[36].mxu0 }
 0x1aa   :  { %v5628_v40 = vpop.f32.mrb[37].mxu0  ;;  %v2202_v39 = vsel %vm210_vm2, %v5626_v62, -inf }
 0x1ab   :  { %v4144_v53 = vpop.f32.mrb[38].mxu0  ;;  %2203 = vmax.xlane.f32.xlu1 %v2202_v39  ;;  %v2196_v59 = vsel %vm145_vm0, %v5628_v40, -inf }
 0x1ac   :  { %v5632_v33 = vpop.f32.mrb[39].mxu0 }
 0x1ad   :  { %v2199_v51 = vsel %vm145_vm0, %v5632_v33, -inf }
 0x1ae   :  { %2200 = vmax.xlane.f32.xlu0 %v2199_v51 }
 0x1af   :  { %2197 = vmax.xlane.f32.xlu1 %v2196_v59 }
 0x1b8   :  { %v5638_v60 = vpop.f32.mrb[40].mxu0 }
 0x1b9   :  { %v5640_v0 = vpop.f32.mrb[41].mxu0  ;;  %v2422_v32 = vsel %vm210_vm2, %v5638_v60, -inf }
 0x1ba   :  { %v4160_v3 = vpop.f32.mrb[42].mxu0  ;;  %2423 = vmax.xlane.f32.xlu0 %v2422_v32  ;;  %v2416_v39 = vsel %vm145_vm0, %v5640_v0, -inf }
 0x1bb   :  { %v5644_v53 = vpop.f32.mrb[43].mxu0 }
 0x1bc   :  { %v2419_v29 = vsel %vm145_vm0, %v5644_v53, -inf }
 0x1bd   :  { %2420 = vmax.xlane.f32.xlu1 %v2419_v29  ;;  %v206_v29 = vpop.xlane.xlu0 %205 }
 0x1be   :  { %2417 = vmax.xlane.f32.xlu0 %v2416_v39  ;;  %v213_v39 = vpop.xlane.xlu1 %212 }
 0x1bf   :  { %v216_v10 = vsub.f32 %v5512_v38, %v213_v39  ;;  %v214_v38 = vsub.f32 %v5514_v21, %v206_v29 }
 0x1c1   :  { %v209_v6 = vpop.xlane.xlu0 %208  ;;  %v217_v48 = vmul.f32 1.442695, %v214_v38 }
 0x1c2   :  { %v215_v52 = vsub.f32 %v5524_v7, %v209_v6 }
 0x1c4   :  { %v219_v39 = vmul.f32 1.442695, %v215_v52 }
 0x1c5   :  { %v426_v6 = vpop.xlane.xlu1 %425 }
 0x1c6   :  { %v5650_v51 = vpop.f32.mrb[44].mxu0 }
 0x1c7   :  { %v5652_v59 = vpop.f32.mrb[45].mxu0  ;;  %v2642_v15 = vsel %vm210_vm2, %v5650_v51, -inf  ;;  %v429_v49 = vpop.xlane.xlu0 %428 }
 0x1c8   :  { %2643 = vmax.xlane.f32.xlu0 %v2642_v15  ;;  %v4176_v3 = vpop.f32.mrb[46].mxu0  ;;  %v2636_v32 = vsel %vm145_vm0, %v5652_v59, -inf }
 0x1c9   :  { %2637 = vmax.xlane.f32.xlu1 %v2636_v32  ;;  %v5658_v11 = vpop.f32.mrb[47].mxu0  ;;  %v221_v32 = vmul.f32 1.442695, %v216_v10  ;;  %v432_v10 = vpop.xlane.xlu1 %431 }
 0x1ca   :  { %v2639_v13 = vsel %vm145_vm0, %v5658_v11, -inf }
 0x1cb   :  { %4285 = vpow2.f32 %v221_v32 }
 0x1cc   :  { %2640 = vmax.xlane.f32.xlu0 %v2639_v13  ;;  %4287 = vpow2.f32 %v219_v39 }
 0x1cd   :  { %4289 = vpow2.f32 %v217_v48 }
 0x1d5   :  { %v5664_v24 = vpop.f32.mrb[48].mxu0  ;;  %v649_v52 = vpop.xlane.xlu1 %648 }
 0x1d6   :  { %v5666_v15 = vpop.f32.mrb[49].mxu0  ;;  %v2862_v3 = vsel %vm210_vm2, %v5664_v24, -inf  ;;  %v5681_v21 = vpop.eup %4285  ;;  %v654_v48 = vsub.f32 %v5548_v8, %v649_v52 }
 0x1d7   :  { %2863 = vmax.xlane.f32.xlu0 %v2862_v3  ;;  %v4192_v4 = vpop.f32.mrb[50].mxu0  ;;  %v2856_v22 = vsel %vm145_vm0, %v5666_v15, -inf  ;;  %v652_v3 = vpop.xlane.xlu0 %651 }
 0x1d8   :  { %2857 = vmax.xlane.f32.xlu1 %v2856_v22  ;;  %v5672_v13 = vpop.f32.mrb[51].mxu0  ;;  %v434_v4 = vsub.f32 %v5536_v50, %v429_v49  ;;  %v435_v22 = vsub.f32 %v5530_v63, %v432_v10  ;;  %v433_v50 = vsub.f32 %v5532_v55, %v426_v6  ;;  %v655_v52 = vsub.f32 %v5542_v43, %v652_v3 }
 0x1d9   :  { %v2859_v7 = vsel %vm145_vm0, %v5672_v13, -inf }
 0x1da   :  { %v438_v17 = vmul.f32 1.442695, %v434_v4  ;;  %v440_v39 = vmul.f32 1.442695, %v435_v22  ;;  %v229_v4 = vsel %vm210_vm2, %v5681_v21, 0.0 }
 0x1db   :  { %2860 = vmax.xlane.f32.xlu0 %v2859_v7  ;;  %v5687_v7 = vpop.eup %4287  ;;  %v646_v10 = vpop.xlane.xlu0 %645  ;;  %v436_v8 = vmul.f32 1.442695, %v433_v50 }
 0x1dc   :  { %4291 = vpow2.f32 %v438_v17  ;;  %v226_v22 = vsel %vm145_vm0, %v5687_v7, 0.0  ;;  %v5699_v57 = vpop.eup %4289  ;;  %v658_v17 = vmul.f32 1.442695, %v654_v48 }
 0x1dd   :  { %4293 = vpow2.f32 %v440_v39  ;;  %v223_v55 = vsel %vm145_vm0, %v5699_v57, 0.0  ;;  %v660_v39 = vmul.f32 1.442695, %v655_v52 }
 0x1de   :  { %4295 = vpow2.f32 %v658_v17 }
 0x1df   :  { %4297 = vpow2.f32 %v436_v8 }
 0x1e0   :  { %4299 = vpow2.f32 %v660_v39 }
 0x1e3   :  { %v5679_v25 = vpop.f32.mrb[52].mxu0 }
 0x1e4   :  { %v5683_v29 = vpop.f32.mrb[53].mxu0 }
 0x1e5   :  { %v4208_v32 = vpop.f32.mrb[54].mxu0  ;;  %v3076_v38 = vsel %vm145_vm0, %v5683_v29, -inf }
 0x1e6   :  { %v5689_v49 = vpop.f32.mrb[55].mxu0  ;;  %3077 = vmax.xlane.f32.xlu1 %v3076_v38  ;;  %v872_v32 = vpop.xlane.xlu1 %871 }
 0x1e7   :  { %v3079_v63 = vsel %vm145_vm0, %v5689_v49, -inf  ;;  %v869_v38 = vpop.xlane.xlu0 %868  ;;  %v5708_v50 = vpop.eup %4291 }
 0x1e8   :  { %3080 = vmax.xlane.f32.xlu0 %v3079_v63  ;;  %v874_v6 = vsub.f32 %v5560_v31, %v869_v38  ;;  %v653_v63 = vsub.f32 %v5544_v54, %v646_v10  ;;  %v875_v31 = vsub.f32 %v5554_v45, %v872_v32  ;;  %v445_v54 = vsel %vm145_vm0, %v5708_v50, 0.0 }
 0x1ea   :  { %230 = vadd.xlane.f32.xlu1 %v229_v4  ;;  %v3082_v4 = vsel %vm210_vm2, %v5679_v25, -inf  ;;  %v866_v48 = vpop.xlane.xlu1 %865  ;;  %v878_v3 = vmul.f32 1.442695, %v874_v6  ;;  %v656_v17 = vmul.f32 1.442695, %v653_v63 }
 0x1eb   :  { %v880_v45 = vmul.f32 1.442695, %v875_v31  ;;  %v873_v32 = vsub.f32 %v5556_v5, %v866_v48 }
 0x1ec   :  { %227 = vadd.xlane.f32.xlu0 %v226_v22  ;;  %v5712_v22 = vpop.eup %4293  ;;  %4301 = vpow2.f32 %v878_v3 }
 0x1ed   :  { %v448_v6 = vsel %vm210_vm2, %v5712_v22, 0.0  ;;  %4303 = vpow2.f32 %v656_v17 }
 0x1ee   :  { %224 = vadd.xlane.f32.xlu1 %v223_v55  ;;  %4305 = vpow2.f32 %v880_v45 }
 0x1f0   :  { %3083 = vmax.xlane.f32.xlu0 %v3082_v4  ;;  %v1092_v39 = vpop.xlane.xlu0 %1091 }
 0x1f2   :  { %v5710_v43 = vpop.f32.mrb[56].mxu0 }
 0x1f3   :  { %v5714_v55 = vpop.f32.mrb[57].mxu0  ;;  %v1089_v10 = vpop.xlane.xlu1 %1088 }
 0x1f4   :  { %v4224_v8 = vpop.f32.mrb[58].mxu0  ;;  %v3296_v52 = vsel %vm145_vm0, %v5714_v55, -inf  ;;  %446 = vadd.xlane.f32.xlu0 %v445_v54  ;;  %v1094_v63 = vsub.f32 %v5572_v1, %v1089_v10  ;;  %v1086_v17 = vpop.xlane.xlu0 %1085  ;;  %v3302_v10 = vsel %vm210_vm2, %v5710_v43, -inf }
 0x1f5   :  { %v5721_v38 = vpop.f32.mrb[59].mxu0  ;;  %3297 = vmax.xlane.f32.xlu1 %v3296_v52  ;;  %v5729_v8 = vpop.eup %4295  ;;  %v876_v52 = vmul.f32 1.442695, %v873_v32  ;;  %v1093_v31 = vsub.f32 %v5568_v23, %v1086_v17 }
 0x1f6   :  { %v3299_v4 = vsel %vm145_vm0, %v5721_v38, -inf  ;;  %v5731_v54 = vpop.eup %4297  ;;  %v1098_v3 = vmul.f32 1.442695, %v1094_v63  ;;  %v665_v9 = vsel %vm145_vm0, %v5729_v8, 0.0 }
 0x1f7   :  { %v442_v1 = vsel %vm145_vm0, %v5731_v54, 0.0  ;;  %v5737_v5 = vpop.eup %4299 }
 0x1f8   :  { %3300 = vmax.xlane.f32.xlu0 %v3299_v4  ;;  %4307 = vpow2.f32 %v1098_v3  ;;  %v668_v63 = vsel %vm210_vm2, %v5737_v5, 0.0 }
 0x1f9   :  { %449 = vadd.xlane.f32.xlu1 %v448_v6  ;;  %4309 = vpow2.f32 %v876_v52  ;;  %v5742_v6 = vpop.eup %4301  ;;  %v1095_v52 = vsub.f32 %v5566_v20, %v1092_v39 }
 0x1fa   :  { %v885_v47 = vsel %vm145_vm0, %v5742_v6, 0.0 }
 0x1fc   :  { %666 = vadd.xlane.f32.xlu0 %v665_v9  ;;  %v5748_v9 = vpop.eup %4303 }
 0x1fd   :  { %443 = vadd.xlane.f32.xlu1 %v442_v1  ;;  %v1096_v1 = vmul.f32 1.442695, %v1093_v31 }
 0x1fe   :  { %v1312_v48 = vpop.xlane.xlu1 %1311 }
 0x200   :  { %3303 = vmax.xlane.f32.xlu0 %v3302_v10  ;;  %v5746_v45 = vpop.f32.mrb[60].mxu0  ;;  %v662_v10 = vsel %vm145_vm0, %v5748_v9, 0.0 }
 0x201   :  { %669 = vadd.xlane.f32.xlu1 %v668_v63  ;;  %v1309_v32 = vpop.xlane.xlu0 %1308  ;;  %v5750_v4 = vpop.f32.mrb[61].mxu0 }
 0x202   :  { %v1314_v3 = vsub.f32 %v5584_v2, %v1309_v32  ;;  %v4240_v23 = vpop.f32.mrb[62].mxu0  ;;  %v1306_v36 = vpop.xlane.xlu1 %1305  ;;  %v1100_v2 = vmul.f32 1.442695, %v1095_v52 }
 0x203   :  { %v5754_v17 = vpop.f32.mrb[63].mxu0  ;;  %v5760_v63 = vpop.eup %4305  ;;  %v1313_v20 = vsub.f32 %v5580_v28, %v1306_v36 }
 0x204   :  { %v1318_v56 = vmul.f32 1.442695, %v1314_v3  ;;  %886 = vadd.xlane.f32.xlu0 %v885_v47  ;;  %v3519_v39 = vsel %vm145_vm0, %v5754_v17, -inf  ;;  %v5765_v31 = vpop.eup %4307  ;;  %v888_v32 = vsel %vm210_vm2, %v5760_v63, 0.0  ;;  %v1315_v47 = vsub.f32 %v5578_v16, %v1312_v48 }
 0x205   :  { %663 = vadd.xlane.f32.xlu1 %v662_v10  ;;  %v5769_v3 = vpop.eup %4309  ;;  %v1105_v23 = vsel %vm145_vm0, %v5765_v31, 0.0  ;;  %v3516_v48 = vsel %vm145_vm0, %v5750_v4, -inf }
 0x206   :  { %4311 = vpow2.f32 %v1318_v56  ;;  %v1316_v56 = vmul.f32 1.442695, %v1313_v20  ;;  %v882_v36 = vsel %vm145_vm0, %v5769_v3, 0.0  ;;  %v1320_v52 = vmul.f32 1.442695, %v1315_v47 }
 0x207   :  { %4313 = vpow2.f32 %v1096_v1  ;;  %v3522_v1 = vsel %vm210_vm2, %v5746_v45, -inf }
 0x208   :  { %3520 = vmax.xlane.f32.xlu0 %v3519_v39  ;;  %4315 = vpow2.f32 %v1100_v2 }
 0x209   :  { %889 = vadd.xlane.f32.xlu1 %v888_v32  ;;  %4317 = vpow2.f32 %v1316_v56 }
 0x20a   :  { %4319 = vpow2.f32 %v1320_v52 }
 0x20c   :  { %1106 = vadd.xlane.f32.xlu0 %v1105_v23 }
 0x20d   :  { %v1532_v28 = vpop.xlane.xlu0 %1531  ;;  %883 = vadd.xlane.f32.xlu1 %v882_v36 }
 0x20e   :  { %v1535_v2 = vsub.f32 %v5590_v37, %v1532_v28  ;;  %v246_v37 = vsel %vm152_vm1, %v4692_v18, 0 }
 0x20f   :  { %4004 = vmatpush3.bf16.msra.mxu1 %v246_v37 }
 0x210   :  { %v5778_v10 = vpop.eup %4311  ;;  %v1529_v16 = vpop.xlane.xlu1 %1528  ;;  %3523 = vmax.xlane.f32.xlu0 %v3522_v1  ;;  %v1540_v36 = vmul.f32 1.442695, %v1535_v2  ;;  %4017 = vmatprep.subr.bf16.mxu1 %v4736_v12 }
 0x211   :  { %v5783_v20 = vpop.eup %4313  ;;  %v1534_v39 = vsub.f32 %v5596_v46, %v1529_v16  ;;  %v1526_v32 = vpop.xlane.xlu0 %1525  ;;  %3517 = vmax.xlane.f32.xlu1 %v3516_v48  ;;  %v1325_v23 = vsel %vm145_vm0, %v5778_v10, 0.0 }
 0x212   :  { %v1533_v47 = vsub.f32 %v5592_v41, %v1526_v32  ;;  %v1102_v1 = vsel %vm145_vm0, %v5783_v20, 0.0  ;;  %v5793_v46 = vpop.eup %4315 }
 0x213   :  { %v1538_v56 = vmul.f32 1.442695, %v1534_v39  ;;  %v1108_v41 = vsel %vm210_vm2, %v5793_v46, 0.0  ;;  %v5798_v52 = vpop.eup %4317 }
 0x214   :  { %v1536_v28 = vmul.f32 1.442695, %v1533_v47  ;;  %1326 = vadd.xlane.f32.xlu0 %v1325_v23  ;;  %v1322_v2 = vsel %vm145_vm0, %v5798_v52, 0.0  ;;  %v5802_v16 = vpop.eup %4319 }
 0x215   :  { %1103 = vadd.xlane.f32.xlu1 %v1102_v1  ;;  %v1328_v37 = vsel %vm210_vm2, %v5802_v16, 0.0 }
 0x216   :  { %4321 = vpow2.f32 %v1536_v28 }
 0x217   :  { %4323 = vpow2.f32 %v1538_v56 }
 0x218   :  { %4325 = vpow2.f32 %v1540_v36 }
 0x219   :  { %1109 = vadd.xlane.f32.xlu1 %v1108_v41 }
 0x21b   :  { %v1752_v18 = vpop.xlane.xlu1 %1751 }
 0x21c   :  { %v1755_v48 = vsub.f32 %v5602_v58, %v1752_v18 }
 0x21d   :  { %1323 = vadd.xlane.f32.xlu1 %v1322_v2 }
 0x21e   :  { %v1749_v39 = vpop.xlane.xlu0 %1748  ;;  %v1760_v58 = vmul.f32 1.442695, %v1755_v48 }
 0x21f   :  { %v1754_v32 = vsub.f32 %v5608_v14, %v1749_v39  ;;  %v1746_v47 = vpop.xlane.xlu1 %1745 }
 0x220   :  { %v5806_v56 = vpop.eup %4321  ;;  %v1753_v23 = vsub.f32 %v5604_v61, %v1746_v47 }
 0x221   :  { %v5811_v36 = vpop.eup %4323  ;;  %v1758_v28 = vmul.f32 1.442695, %v1754_v32  ;;  %v1542_v1 = vsel %vm145_vm0, %v5806_v56, 0.0  ;;  %1329 = vadd.xlane.f32.xlu1 %v1328_v37 }
 0x222   :  { %v5815_v41 = vpop.eup %4325  ;;  %v1756_v18 = vmul.f32 1.442695, %v1753_v23  ;;  %1543 = vadd.xlane.f32.xlu0 %v1542_v1  ;;  %v1545_v61 = vsel %vm145_vm0, %v5811_v36, 0.0 }
 0x223   :  { %4327 = vpow2.f32 %v1758_v28  ;;  %v1548_v14 = vsel %vm210_vm2, %v5815_v41, 0.0 }
 0x224   :  { %4329 = vpow2.f32 %v1756_v18 }
 0x225   :  { %1546 = vadd.xlane.f32.xlu1 %v1545_v61  ;;  %4331 = vpow2.f32 %v1760_v58 }
 0x226   :  { %1549 = vadd.xlane.f32.xlu0 %v1548_v14 }
 0x22a   :  { %v1984_v2 = vpop.xlane.xlu0 %1983 }
 0x22b   :  { %v1987_v32 = vsub.f32 %v5614_v35, %v1984_v2 }
 0x22d   :  { %v5821_v39 = vpop.eup %4327  ;;  %v1981_v47 = vpop.xlane.xlu1 %1980  ;;  %v1992_v35 = vmul.f32 1.442695, %v1987_v32 }
 0x22e   :  { %v5824_v48 = vpop.eup %4329  ;;  %v1986_v23 = vsub.f32 %v5620_v27, %v1981_v47  ;;  %v1978_v37 = vpop.xlane.xlu0 %1977  ;;  %v1765_v28 = vsel %vm145_vm0, %v5821_v39, 0.0 }
 0x22f   :  { %6397 = vst [vmem:[#allocation36_spill] sm:$0xff] %v5824_v48  ;;  %v1985_v1 = vsub.f32 %v5616_v42, %v1978_v37  ;;  %1766 = vadd.xlane.f32.xlu0 %v1765_v28  ;;  %v1762_v58 = vsel %vm145_vm0, %v5824_v48, 0.0  ;;  %v5832_v18 = vpop.eup %4331 }
 0x230   :  { %v1990_v61 = vmul.f32 1.442695, %v1986_v23  ;;  %1763 = vadd.xlane.f32.xlu1 %v1762_v58  ;;  %v1768_v27 = vsel %vm210_vm2, %v5832_v18, 0.0 }
 0x231   :  { %v1988_v14 = vmul.f32 1.442695, %v1985_v1 }
 0x232   :  { %4333 = vpow2.f32 %v1990_v61 }
 0x233   :  { %4335 = vpow2.f32 %v1988_v14 }
 0x234   :  { %1769 = vadd.xlane.f32.xlu1 %v1768_v27  ;;  %4337 = vpow2.f32 %v1992_v35 }
 0x238   :  { %v2204_v2 = vpop.xlane.xlu1 %2203 }
 0x239   :  { %v2207_v42 = vsub.f32 %v5626_v62, %v2204_v2 }
 0x23b   :  { %v2201_v47 = vpop.xlane.xlu0 %2200  ;;  %v2212_v62 = vmul.f32 1.442695, %v2207_v42 }
 0x23c   :  { %v5837_v37 = vpop.eup %4333  ;;  %v2206_v28 = vsub.f32 %v5632_v33, %v2201_v47  ;;  %v2198_v48 = vpop.xlane.xlu1 %2197 }
 0x23d   :  { %v5840_v23 = vpop.eup %4335  ;;  %v2205_v32 = vsub.f32 %v5628_v40, %v2198_v48  ;;  %v1997_v1 = vsel %vm145_vm0, %v5837_v37, 0.0 }
 0x23e   :  { %v2210_v58 = vmul.f32 1.442695, %v2206_v28  ;;  %v1994_v61 = vsel %vm145_vm0, %v5840_v23, 0.0  ;;  %1998 = vadd.xlane.f32.xlu1 %v1997_v1  ;;  %v5847_v35 = vpop.eup %4337 }
 0x23f   :  { %v2208_v14 = vmul.f32 1.442695, %v2205_v32  ;;  %1995 = vadd.xlane.f32.xlu0 %v1994_v61  ;;  %v2000_v33 = vsel %vm210_vm2, %v5847_v35, 0.0 }
 0x240   :  { %4339 = vpow2.f32 %v2210_v58 }
 0x241   :  { %4341 = vpow2.f32 %v2208_v14 }
 0x242   :  { %4343 = vpow2.f32 %v2212_v62 }
 0x243   :  { %2001 = vadd.xlane.f32.xlu0 %v2000_v33 }
 0x247   :  { %v2424_v40 = vpop.xlane.xlu0 %2423 }
 0x248   :  { %v2427_v27 = vsub.f32 %v5638_v60, %v2424_v40 }
 0x24a   :  { %v5851_v48 = vpop.eup %4339  ;;  %v2421_v2 = vpop.xlane.xlu1 %2420  ;;  %v2432_v60 = vmul.f32 1.442695, %v2427_v27 }
 0x24b   :  { %v5854_v47 = vpop.eup %4341  ;;  %v2426_v28 = vsub.f32 %v5644_v53, %v2421_v2  ;;  %v2418_v42 = vpop.xlane.xlu0 %2417  ;;  %v2217_v32 = vsel %vm145_vm0, %v5851_v48, 0.0 }
 0x24c   :  { %v2425_v1 = vsub.f32 %v5640_v0, %v2418_v42  ;;  %v2214_v58 = vsel %vm145_vm0, %v5854_v47, 0.0  ;;  %2218 = vadd.xlane.f32.xlu0 %v2217_v32  ;;  %v5862_v61 = vpop.eup %4343 }
 0x24d   :  { %v2430_v62 = vmul.f32 1.442695, %v2426_v28  ;;  %2215 = vadd.xlane.f32.xlu1 %v2214_v58  ;;  %v2220_v53 = vsel %vm210_vm2, %v5862_v61, 0.0 }
 0x24e   :  { %v2428_v14 = vmul.f32 1.442695, %v2425_v1 }
 0x24f   :  { %4345 = vpow2.f32 %v2430_v62 }
 0x250   :  { %4347 = vpow2.f32 %v2428_v14 }
 0x251   :  { %2221 = vadd.xlane.f32.xlu1 %v2220_v53  ;;  %4349 = vpow2.f32 %v2432_v60 }
 0x255   :  { %v2644_v33 = vpop.xlane.xlu0 %2643 }
 0x256   :  { %v2647_v0 = vsub.f32 %v5650_v51, %v2644_v33  ;;  %v2638_v40 = vpop.xlane.xlu1 %2637 }
 0x257   :  { %v2645_v2 = vsub.f32 %v5652_v59, %v2638_v40 }
 0x258   :  { %v2652_v32 = vmul.f32 1.442695, %v2647_v0 }
 0x259   :  { %v5868_v42 = vpop.eup %4345  ;;  %v2648_v28 = vmul.f32 1.442695, %v2645_v2  ;;  %v2641_v58 = vpop.xlane.xlu0 %2640 }
 0x25a   :  { %v5870_v27 = vpop.eup %4347  ;;  %v2646_v1 = vsub.f32 %v5658_v11, %v2641_v58  ;;  %v2437_v62 = vsel %vm145_vm0, %v5868_v42, 0.0 }
 0x25b   :  { %4351 = vpow2.f32 %v2648_v28  ;;  %2438 = vadd.xlane.f32.xlu1 %v2437_v62  ;;  %v2434_v51 = vsel %vm145_vm0, %v5870_v27, 0.0  ;;  %v5877_v60 = vpop.eup %4349 }
 0x25c   :  { %v2650_v59 = vmul.f32 1.442695, %v2646_v1  ;;  %2435 = vadd.xlane.f32.xlu0 %v2434_v51  ;;  %4353 = vpow2.f32 %v2652_v32  ;;  %v2440_v14 = vsel %vm210_vm2, %v5877_v60, 0.0 }
 0x25e   :  { %4355 = vpow2.f32 %v2650_v59 }
 0x260   :  { %2441 = vadd.xlane.f32.xlu0 %v2440_v14 }
 0x264   :  { %v2864_v53 = vpop.xlane.xlu0 %2863 }
 0x265   :  { %v5881_v11 = vpop.eup %4351  ;;  %v2867_v33 = vsub.f32 %v5664_v24, %v2864_v53  ;;  %v2858_v0 = vpop.xlane.xlu1 %2857 }
 0x266   :  { %v2865_v40 = vsub.f32 %v5666_v15, %v2858_v0  ;;  %v2654_v2 = vsel %vm145_vm0, %v5881_v11, 0.0  ;;  %v5887_v28 = vpop.eup %4353 }
 0x267   :  { %2655 = vadd.xlane.f32.xlu1 %v2654_v2  ;;  %v2872_v58 = vmul.f32 1.442695, %v2867_v33  ;;  %v2660_v24 = vsel %vm210_vm2, %v5887_v28, 0.0 }
 0x268   :  { %v5889_v32 = vpop.eup %4355  ;;  %v2868_v1 = vmul.f32 1.442695, %v2865_v40  ;;  %v2861_v62 = vpop.xlane.xlu0 %2860 }
 0x269   :  { %v2866_v51 = vsub.f32 %v5672_v13, %v2861_v62  ;;  %v2657_v59 = vsel %vm145_vm0, %v5889_v32, 0.0 }
 0x26a   :  { %4357 = vpow2.f32 %v2868_v1  ;;  %2658 = vadd.xlane.f32.xlu0 %v2657_v59 }
 0x26b   :  { %v2870_v15 = vmul.f32 1.442695, %v2866_v51  ;;  %2661 = vadd.xlane.f32.xlu1 %v2660_v24  ;;  %4359 = vpow2.f32 %v2872_v58 }
 0x26d   :  { %4361 = vpow2.f32 %v2870_v15 }
 0x273   :  { %v3078_v14 = vpop.xlane.xlu1 %3077 }
 0x274   :  { %v5896_v53 = vpop.eup %4357  ;;  %v3085_v33 = vsub.f32 %v5683_v29, %v3078_v14 }
 0x275   :  { %v3081_v0 = vpop.xlane.xlu0 %3080  ;;  %v2874_v13 = vsel %vm145_vm0, %v5896_v53, 0.0  ;;  %v5901_v40 = vpop.eup %4359 }
 0x276   :  { %6398 = vst [vmem:[#allocation37_spill] sm:$0xff] %v5901_v40  ;;  %v3088_v2 = vmul.f32 1.442695, %v3085_v33  ;;  %v3086_v1 = vsub.f32 %v5689_v49, %v3081_v0  ;;  %2875 = vadd.xlane.f32.xlu0 %v2874_v13  ;;  %v2880_v29 = vsel %vm210_vm2, %v5901_v40, 0.0 }
 0x277   :  { %v5904_v62 = vpop.eup %4361  ;;  %v231_v51 = vpop.xlane.xlu1 %230 }
 0x278   :  { %6399 = vst [vmem:[#allocation38_spill] sm:$0xff] %v5904_v62  ;;  %4363 = vpow2.f32 %v3088_v2  ;;  %v3090_v58 = vmul.f32 1.442695, %v3086_v1  ;;  %v2877_v59 = vsel %vm145_vm0, %v5904_v62, 0.0 }
 0x279   :  { %2878 = vadd.xlane.f32.xlu1 %v2877_v59  ;;  %4365 = vrcp.f32 %v231_v51  ;;  %v228_v24 = vpop.xlane.xlu0 %227 }
 0x27a   :  { %4367 = vpow2.f32 %v3090_v58  ;;  %2881 = vadd.xlane.f32.xlu0 %v2880_v29 }
 0x27b   :  { %v225_v15 = vpop.xlane.xlu1 %224  ;;  %4369 = vrcp.f32 %v228_v24 }
 0x27c   :  { %4371 = vrcp.f32 %v225_v15 }
 0x27d   :  { %v3084_v49 = vpop.xlane.xlu0 %3083 }
 0x27e   :  { %v3087_v14 = vsub.f32 %v5679_v25, %v3084_v49 }
 0x280   :  { %v3092_v33 = vmul.f32 1.442695, %v3087_v14 }
 0x281   :  { %v447_v0 = vpop.xlane.xlu0 %446 }
 0x282   :  { %v5911_v13 = vpop.eup %4363  ;;  %v3298_v2 = vpop.xlane.xlu1 %3297  ;;  %4373 = vpow2.f32 %v3092_v33 }
 0x283   :  { %6400 = vst [vmem:[#allocation39_spill] sm:$0xff] %v5911_v13  ;;  %v4366_v1 = vpop.eup %4365  ;;  %v3094_v59 = vsel %vm145_vm0, %v5911_v13, 0.0  ;;  %v3305_v51 = vsub.f32 %v5714_v55, %v3298_v2 }
 0x284   :  { %v5916_v58 = vpop.eup %4367  ;;  %3095 = vadd.xlane.f32.xlu1 %v3094_v59  ;;  %v237_v13 = vmul.f32 %v4366_v1, %v5681_v21 }
 0x285   :  { %6401 = vst [vmem:[#allocation40_spill] sm:$0xff] %v5916_v58  ;;  %v4370_v29 = vpop.eup %4369  ;;  %v3097_v24 = vsel %vm145_vm0, %v5916_v58, 0.0  ;;  %v3308_v25 = vmul.f32 1.442695, %v3305_v51  ;;  %v3301_v15 = vpop.xlane.xlu0 %3300 }
 0x286   :  { %v4372_v49 = vpop.eup %4371  ;;  %3098 = vadd.xlane.f32.xlu0 %v3097_v24  ;;  %v450_v14 = vpop.xlane.xlu1 %449  ;;  %v3306_v33 = vsub.f32 %v5721_v38, %v3301_v15  ;;  %v236_v40 = vmul.f32 %v4370_v29, %v5687_v7  ;;  %v239_v51 = vpack.c.bf16 %v237_v13, %v237_v13 }
 0x287   :  { %4375 = vpow2.f32 %v3308_v25  ;;  %v235_v55 = vmul.f32 %v4372_v49, %v5699_v57 }
 0x288   :  { %4377 = vrcp.f32 %v450_v14  ;;  %v3310_v2 = vmul.f32 1.442695, %v3306_v33 }
 0x289   :  { %4379 = vrcp.f32 %v447_v0  ;;  %v238_v59 = vpack.c.bf16 %v236_v40, %v235_v55  ;;  %v667_v62 = vpop.xlane.xlu0 %666  ;;  %v465_v40 = vsel %vm152_vm1, %v4749_v30, 0 }
 0x28a   :  { %v444_v58 = vpop.xlane.xlu1 %443  ;;  %4381 = vpow2.f32 %v3310_v2 }
 0x28b   :  { %4383 = vrcp.f32 %v444_v58  ;;  %4005 = vmatprep.mubr.msk.bf16.mxu1 %vm145_vm0, %v238_v59 }
 0x28c   :  { %v5925_v24 = vpop.eup %4373  ;;  %4006 = vmatmul.mubr.msk.bf16.vlgmr.msra.gmra.mrb[0].mxu1 %vm145_vm0, %v239_v51 }
 0x28d   :  { %v3304_v7 = vpop.xlane.xlu0 %3303  ;;  %v3100_v21 = vsel %vm210_vm2, %v5925_v24, 0.0  ;;  %4018 = vmatpush3.bf16.msra.mxu1 %v4736_v12 }
 0x28e   :  { %v670_v57 = vpop.xlane.xlu1 %669  ;;  %v3307_v38 = vsub.f32 %v5710_v43, %v3304_v7  ;;  %3101 = vadd.xlane.f32.xlu1 %v3100_v21  ;;  %4252 = vmatprep.subr.msk.bf16.mxu1 %vm152_vm1, %v4749_v30 }
 0x28f   :  { %4385 = vrcp.f32 %v670_v57 }
 0x290   :  { %v3312_v0 = vmul.f32 1.442695, %v3307_v38  ;;  %4387 = vrcp.f32 %v667_v62 }
 0x291   :  { %v5936_v13 = vpop.eup %4375  ;;  %v887_v1 = vpop.xlane.xlu0 %886  ;;  %4020 = vmatpush3.bf16.msra.mxu1 %v465_v40  ;;  %v685_v40 = vsel %vm152_vm1, %v4803_v34, 0 }
 0x292   :  { %v4378_v58 = vpop.eup %4377  ;;  %v664_v29 = vpop.xlane.xlu1 %663  ;;  %v3314_v12 = vsel %vm145_vm0, %v5936_v13, 0.0  ;;  %4389 = vpow2.f32 %v3312_v0  ;;  %4033 = vmatprep.subr.bf16.mxu1 %v4788_v19 }
 0x293   :  { %v4380_v43 = vpop.eup %4379  ;;  %4391 = vrcp.f32 %v664_v29  ;;  %3315 = vadd.xlane.f32.xlu0 %v3314_v12  ;;  %v456_v15 = vmul.f32 %v4378_v58, %v5712_v22 }
 0x294   :  { %v5941_v25 = vpop.eup %4381  ;;  %v455_v55 = vmul.f32 %v4380_v43, %v5708_v50 }
 0x295   :  { %v4384_v30 = vpop.eup %4383  ;;  %v3521_v49 = vpop.xlane.xlu0 %3520  ;;  %v3317_v62 = vsel %vm145_vm0, %v5941_v25, 0.0  ;;  %v458_v7 = vpack.c.bf16 %v456_v15, %v456_v15 }
 0x296   :  { %v890_v14 = vpop.xlane.xlu1 %889  ;;  %v454_v33 = vmul.f32 %v4384_v30, %v5731_v54  ;;  %v3526_v2 = vsub.f32 %v5754_v17, %v3521_v49  ;;  %3318 = vadd.xlane.f32.xlu1 %v3317_v62 }
 0x297   :  { %4393 = vrcp.f32 %v890_v14  ;;  %v905_v14 = vsel %vm152_vm1, %v4855_v44, 0 }
 0x298   :  { %v457_v59 = vpack.c.bf16 %v455_v55, %v454_v33  ;;  %v3530_v51 = vmul.f32 1.442695, %v3526_v2  ;;  %4395 = vrcp.f32 %v887_v1 }
 0x299   :  { %v1107_v21 = vpop.xlane.xlu0 %1106  ;;  %v4386_v57 = vpop.eup %4385 }
 0x29a   :  { %v884_v22 = vpop.xlane.xlu1 %883  ;;  %4021 = vmatprep.mubr.msk.bf16.mxu1 %vm145_vm0, %v457_v59  ;;  %4397 = vpow2.f32 %v3530_v51  ;;  %v4388_v38 = vpop.eup %4387  ;;  %v676_v17 = vmul.f32 %v4386_v57, %v5737_v5 }
 0x29b   :  { %4399 = vrcp.f32 %v884_v22  ;;  %4022 = vmatmul.mubr.msk.bf16.vlgmr.msra.gmra.mrb[4].mxu1 %vm145_vm0, %v458_v7  ;;  %v675_v12 = vmul.f32 %v4388_v38, %v5729_v8  ;;  %v6402_v7 = vld [vmem:[#allocation12_spill] sm:$0xff] }
 0x29c   :  { %v5951_v54 = vpop.eup %4389  ;;  %4034 = vmatpush3.bf16.msra.mxu1 %v4788_v19  ;;  %4401 = vrcp.f32 %v1107_v21 }
 0x29d   :  { %v4392_v50 = vpop.eup %4391  ;;  %4254 = vmatprep.subr.msk.bf16.mxu1 %vm152_vm1, %v4803_v34  ;;  %v3524_v0 = vpop.xlane.xlu0 %3523  ;;  %v3320_v1 = vsel %vm210_vm2, %v5951_v54, 0.0  ;;  %v678_v34 = vpack.c.bf16 %v676_v17, %v676_v17 }
 0x29e   :  { %v3518_v58 = vpop.xlane.xlu1 %3517  ;;  %v674_v29 = vmul.f32 %v4392_v50, %v5748_v9  ;;  %v3527_v19 = vsub.f32 %v5746_v45, %v3524_v0  ;;  %3321 = vadd.xlane.f32.xlu0 %v3320_v1 }
 0x29f   :  { %v3525_v5 = vsub.f32 %v5750_v4, %v3518_v58 }
 0x2a0   :  { %4036 = vmatpush3.bf16.msra.mxu1 %v685_v40  ;;  %v677_v43 = vpack.c.bf16 %v675_v12, %v674_v29  ;;  %v3532_v30 = vmul.f32 1.442695, %v3527_v19  ;;  %v6404_v19 = vld [vmem:[#allocation14_spill] sm:$0xff] }
 0x2a1   :  { %v3528_v15 = vmul.f32 1.442695, %v3525_v5  ;;  %4049 = vmatprep.subr.bf16.mxu1 %v4838_v26  ;;  %v4394_v49 = vpop.eup %4393  ;;  %v1327_v2 = vpop.xlane.xlu0 %1326 }
 0x2a2   :  { %v1104_v62 = vpop.xlane.xlu1 %1103  ;;  %4037 = vmatprep.mubr.msk.bf16.mxu1 %vm145_vm0, %v677_v43  ;;  %4403 = vpow2.f32 %v3532_v30  ;;  %v4396_v9 = vpop.eup %4395  ;;  %v896_v4 = vmul.f32 %v4394_v49, %v5760_v63 }
 0x2a3   :  { %4405 = vpow2.f32 %v3528_v15  ;;  %4038 = vmatmul.mubr.msk.bf16.vlgmr.msra.gmra.mrb[8].mxu1 %vm145_vm0, %v678_v34  ;;  %v895_v51 = vmul.f32 %v4396_v9, %v5742_v6 }
 0x2a4   :  { %v5968_v8 = vpop.eup %4397  ;;  %4407 = vrcp.f32 %v1104_v62  ;;  %4050 = vmatpush3.bf16.msra.mxu1 %v4838_v26  ;;  %v898_v63 = vpack.c.bf16 %v896_v4, %v896_v4  ;;  %v6405_v62 = vld [vmem:[#allocation15_spill] sm:$0xff] }
 0x2a5   :  { %v4400_v45 = vpop.eup %4399  ;;  %4256 = vmatprep.subr.msk.bf16.mxu1 %vm152_vm1, %v4855_v44  ;;  %v3537_v33 = vsel %vm145_vm0, %v5968_v8, 0.0  ;;  %v1345_v9 = vsel %vm152_vm1, %v6405_v62, 0 }
 0x2a6   :  { %v1110_v55 = vpop.xlane.xlu1 %1109  ;;  %v894_v59 = vmul.f32 %v4400_v45, %v5769_v3  ;;  %3538 = vadd.xlane.f32.xlu0 %v3537_v33  ;;  %v4402_v44 = vpop.eup %4401  ;;  %v6403_v3 = vld [vmem:[#allocation13_spill] sm:$0xff] }
 0x2a7   :  { %4409 = vrcp.f32 %v1110_v55  ;;  %v1125_v22 = vsel %vm152_vm1, %v6403_v3, 0  ;;  %v1115_v1 = vmul.f32 %v4402_v44, %v5765_v31  ;;  %v6406_v55 = vld [vmem:[#allocation16_spill] sm:$0xff] }
 0x2a8   :  { %4052 = vmatpush3.bf16.msra.mxu1 %v905_v14  ;;  %v897_v26 = vpack.c.bf16 %v895_v51, %v894_v59  ;;  %4411 = vrcp.f32 %v1327_v2 }
 0x2a9   :  { %4065 = vmatprep.subr.bf16.mxu1 %v6402_v7 }
 0x2aa   :  { %v1324_v21 = vpop.xlane.xlu1 %1323  ;;  %4053 = vmatprep.mubr.msk.bf16.mxu1 %vm145_vm0, %v897_v26 }
 0x2ab   :  { %4413 = vrcp.f32 %v1324_v21  ;;  %4054 = vmatmul.mubr.msk.bf16.vlgmr.msra.gmra.mrb[12].mxu1 %vm145_vm0, %v898_v63  ;;  %v6407_v63 = vld [vmem:[#allocation17_spill] sm:$0xff] }
 0x2ac   :  { %v5983_v57 = vpop.eup %4403  ;;  %4066 = vmatpush3.bf16.msra.mxu1 %v6402_v7  ;;  %v1565_v21 = vsel %vm152_vm1, %v6407_v63, 0 }
 0x2ad   :  { %v5986_v6 = vpop.eup %4405  ;;  %4258 = vmatprep.subr.msk.bf16.mxu1 %vm152_vm1, %v6403_v3  ;;  %v3540_v58 = vsel %vm210_vm2, %v5983_v57, 0.0 }
 0x2ae   :  { %v4408_v38 = vpop.eup %4407  ;;  %v1330_v50 = vpop.xlane.xlu1 %1329  ;;  %v3534_v17 = vsel %vm145_vm0, %v5986_v6, 0.0 }
 0x2af   :  { %v1544_v40 = vpop.xlane.xlu0 %1543  ;;  %4415 = vrcp.f32 %v1330_v50  ;;  %3535 = vadd.xlane.f32.xlu1 %v3534_v17  ;;  %v1114_v0 = vmul.f32 %v4408_v38, %v5783_v20  ;;  %v6409_v38 = vld [vmem:[#allocation19_spill] sm:$0xff]  ;;  %v6410_v17 = vld [vmem:[#allocation36_spill] sm:$0xff] }
 0x2b0   :  { %4068 = vmatpush3.bf16.msra.mxu1 %v1125_v22  ;;  %4417 = vrcp.f32 %v1544_v40  ;;  %v1785_v50 = vsel %vm152_vm1, %v6409_v38, 0 }
 0x2b1   :  { %v4410_v29 = vpop.eup %4409  ;;  %v1117_v12 = vpack.c.bf16 %v1115_v1, %v1114_v0  ;;  %4081 = vmatprep.subr.bf16.mxu1 %v6404_v19 }
 0x2b2   :  { %v1116_v5 = vmul.f32 %v4410_v29, %v5793_v46  ;;  %v1547_v43 = vpop.xlane.xlu1 %1546  ;;  %v4412_v30 = vpop.eup %4411 }
 0x2b3   :  { %v1550_v15 = vpop.xlane.xlu0 %1549  ;;  %4419 = vrcp.f32 %v1547_v43  ;;  %4069 = vmatprep.mubr.msk.bf16.mxu1 %vm145_vm0, %v1117_v12  ;;  %3541 = vadd.xlane.f32.xlu1 %v3540_v58  ;;  %v1335_v49 = vmul.f32 %v4412_v30, %v5778_v10  ;;  %v6411_v12 = vld [vmem:[#allocation20_spill] sm:$0xff]  ;;  %v6412_v43 = vld [vmem:[#allocation21_spill] sm:$0xff] }
 0x2b4   :  { %4421 = vrcp.f32 %v1550_v15  ;;  %v1118_v31 = vpack.c.bf16 %v1116_v5, %v1116_v5  ;;  %v2017_v30 = vsel %vm152_vm1, %v6412_v43, 0 }
 0x2b5   :  { %v4414_v20 = vpop.eup %4413 }
 0x2b6   :  { %4070 = vmatmul.mubr.msk.bf16.vlgmr.msra.gmra.mrb[16].mxu1 %vm145_vm0, %v1118_v31  ;;  %v1334_v34 = vmul.f32 %v4414_v20, %v5798_v52  ;;  %v6413_v20 = vld [vmem:[#allocation22_spill] sm:$0xff] }
 0x2b7   :  { %4082 = vmatpush3.bf16.msra.mxu1 %v6404_v19 }
 0x2b8   :  { %4260 = vmatprep.subr.msk.bf16.mxu1 %vm152_vm1, %v6405_v62  ;;  %v1337_v46 = vpack.c.bf16 %v1335_v49, %v1334_v34 }
 0x2b9   :  { %v4416_v45 = vpop.eup %4415 }
 0x2ba   :  { %v1336_v4 = vmul.f32 %v4416_v45, %v5802_v16  ;;  %4085 = vmatprep.mubr.msk.bf16.mxu1 %vm145_vm0, %v1337_v46  ;;  %v4418_v14 = vpop.eup %4417 }
 0x2bb   :  { %4084 = vmatpush3.bf16.msra.mxu1 %v1345_v9  ;;  %v1554_v51 = vmul.f32 %v4418_v14, %v5806_v56  ;;  %v6408_v56 = vld [vmem:[#allocation18_spill] sm:$0xff] }
 0x2bc   :  { %v1767_v33 = vpop.xlane.xlu0 %1766  ;;  %v1338_v52 = vpack.c.bf16 %v1336_v4, %v1336_v4  ;;  %4097 = vmatprep.subr.bf16.mxu1 %v6406_v55 }
 0x2bd   :  { %v4420_v10 = vpop.eup %4419  ;;  %4423 = vrcp.f32 %v1767_v33  ;;  %v1764_v2 = vpop.xlane.xlu1 %1763 }
 0x2be   :  { %v4422_v59 = vpop.eup %4421  ;;  %4425 = vrcp.f32 %v1764_v2  ;;  %4086 = vmatmul.mubr.msk.bf16.vlgmr.msra.gmra.mrb[20].mxu1 %vm145_vm0, %v1338_v52  ;;  %v1555_v26 = vmul.f32 %v4420_v10, %v5811_v36  ;;  %v6415_v10 = vld [vmem:[#allocation24_spill] sm:$0xff] }
 0x2bf   :  { %4098 = vmatpush3.bf16.msra.mxu1 %v6406_v55  ;;  %v1556_v16 = vmul.f32 %v4422_v59, %v5815_v41 }
 0x2c0   :  { %4262 = vmatprep.subr.msk.bf16.mxu1 %vm152_vm1, %v6407_v63  ;;  %v1557_v7 = vpack.c.bf16 %v1555_v26, %v1554_v51 }
 0x2c1   :  { %v1770_v44 = vpop.xlane.xlu1 %1769  ;;  %v1558_v3 = vpack.c.bf16 %v1556_v16, %v1556_v16 }
 0x2c2   :  { %4427 = vrcp.f32 %v1770_v44  ;;  %4101 = vmatprep.mubr.msk.bf16.mxu1 %vm145_vm0, %v1557_v7 }
 0x2c3   :  { %4100 = vmatpush3.bf16.msra.mxu1 %v1565_v21 }
 0x2c4   :  { %4113 = vmatprep.subr.bf16.mxu1 %v6408_v56 }
 0x2c6   :  { %4102 = vmatmul.mubr.msk.bf16.vlgmr.msra.gmra.mrb[24].mxu1 %vm145_vm0, %v1558_v3 }
 0x2c7   :  { %v4424_v36 = vpop.eup %4423  ;;  %4114 = vmatpush3.bf16.msra.mxu1 %v6408_v56  ;;  %v6417_v56 = vld [vmem:[#allocation26_spill] sm:$0xff] }
 0x2c8   :  { %v4426_v41 = vpop.eup %4425  ;;  %v1775_v22 = vmul.f32 %v4424_v36, %v5821_v39  ;;  %4264 = vmatprep.subr.msk.bf16.mxu1 %vm152_vm1, %v6409_v38 }
 0x2c9   :  { %v1774_v40 = vmul.f32 %v4426_v41, %v6410_v17 }
 0x2cb   :  { %v1999_v0 = vpop.xlane.xlu1 %1998  ;;  %v1777_v1 = vpack.c.bf16 %v1775_v22, %v1774_v40  ;;  %4116 = vmatpush3.bf16.msra.mxu1 %v1785_v50 }
 0x2cc   :  { %v4428_v58 = vpop.eup %4427  ;;  %v1996_v29 = vpop.xlane.xlu0 %1995  ;;  %4429 = vrcp.f32 %v1999_v0  ;;  %4129 = vmatprep.subr.bf16.mxu1 %v6411_v12 }
 0x2cd   :  { %v1776_v19 = vmul.f32 %v4428_v58, %v5832_v18  ;;  %4431 = vrcp.f32 %v1996_v29  ;;  %4117 = vmatprep.mubr.msk.bf16.mxu1 %vm145_vm0, %v1777_v1 }
 0x2cf   :  { %v1778_v39 = vpack.c.bf16 %v1776_v19, %v1776_v19  ;;  %v6419_v19 = vld [vmem:[#allocation28_spill] sm:$0xff] }
 0x2d0   :  { %v2002_v5 = vpop.xlane.xlu0 %2001 }
 0x2d1   :  { %4433 = vrcp.f32 %v2002_v5  ;;  %4118 = vmatmul.mubr.msk.bf16.vlgmr.msra.gmra.mrb[28].mxu1 %vm145_vm0, %v1778_v39 }
 0x2d2   :  { %4130 = vmatpush3.bf16.msra.mxu1 %v6411_v12 }
 0x2d3   :  { %4266 = vmatprep.subr.msk.bf16.mxu1 %vm152_vm1, %v6412_v43 }
 0x2d6   :  { %v4430_v15 = vpop.eup %4429  ;;  %4132 = vmatpush3.bf16.msra.mxu1 %v2017_v30 }
 0x2d7   :  { %v4432_v31 = vpop.eup %4431  ;;  %v2007_v18 = vmul.f32 %v4430_v15, %v5837_v37  ;;  %4145 = vmatprep.subr.bf16.mxu1 %v6413_v20  ;;  %v6414_v37 = vld [vmem:[#allocation23_spill] sm:$0xff] }
 0x2d8   :  { %v2006_v34 = vmul.f32 %v4432_v31, %v5840_v23  ;;  %v2237_v23 = vsel %vm152_vm1, %v6414_v37, 0 }
 0x2d9   :  { %v2219_v49 = vpop.xlane.xlu0 %2218 }
 0x2da   :  { %v2216_v62 = vpop.xlane.xlu1 %2215  ;;  %4435 = vrcp.f32 %v2219_v49  ;;  %v2009_v46 = vpack.c.bf16 %v2007_v18, %v2006_v34 }
 0x2db   :  { %v4434_v9 = vpop.eup %4433  ;;  %4437 = vrcp.f32 %v2216_v62  ;;  %v6422_v62 = vld [vmem:[#allocation38_spill] sm:$0xff] }
 0x2dc   :  { %v2008_v45 = vmul.f32 %v4434_v9, %v5847_v35  ;;  %4133 = vmatprep.mubr.msk.bf16.mxu1 %vm145_vm0, %v2009_v46  ;;  %v6423_v9 = vld [vmem:[#allocation37_spill] sm:$0xff] }
 0x2de   :  { %v2222_v4 = vpop.xlane.xlu1 %2221  ;;  %v2010_v14 = vpack.c.bf16 %v2008_v45, %v2008_v45 }
 0x2df   :  { %4439 = vrcp.f32 %v2222_v4 }
 0x2e0   :  { %4134 = vmatmul.mubr.msk.bf16.vlgmr.msra.gmra.mrb[32].mxu1 %vm145_vm0, %v2010_v14 }
 0x2e1   :  { %4146 = vmatpush3.bf16.msra.mxu1 %v6413_v20 }
 0x2e2   :  { %4268 = vmatprep.subr.msk.bf16.mxu1 %vm152_vm1, %v6414_v37 }
 0x2e4   :  { %v4436_v33 = vpop.eup %4435 }
 0x2e5   :  { %v4438_v52 = vpop.eup %4437  ;;  %v2227_v55 = vmul.f32 %v4436_v33, %v5851_v48  ;;  %4148 = vmatpush3.bf16.msra.mxu1 %v2237_v23  ;;  %v6416_v48 = vld [vmem:[#allocation25_spill] sm:$0xff]  ;;  %v6424_v23 = vld [vmem:[#allocation31_spill] sm:$0xff] }
 0x2e6   :  { %v2226_v35 = vmul.f32 %v4438_v52, %v5854_v47  ;;  %4161 = vmatprep.subr.bf16.mxu1 %v6415_v10  ;;  %v2457_v47 = vsel %vm152_vm1, %v6416_v48, 0 }
 0x2e8   :  { %v2439_v2 = vpop.xlane.xlu1 %2438  ;;  %v2229_v59 = vpack.c.bf16 %v2227_v55, %v2226_v35  ;;  %v6425_v55 = vld [vmem:[#allocation32_spill] sm:$0xff] }
 0x2e9   :  { %v4440_v51 = vpop.eup %4439  ;;  %4441 = vrcp.f32 %v2439_v2  ;;  %v2436_v26 = vpop.xlane.xlu0 %2435 }
 0x2ea   :  { %v2228_v16 = vmul.f32 %v4440_v51, %v5862_v61  ;;  %4443 = vrcp.f32 %v2436_v26  ;;  %4149 = vmatprep.mubr.msk.bf16.mxu1 %vm145_vm0, %v2229_v59  ;;  %v6427_v59 = vld [vmem:[#allocation40_spill] sm:$0xff] }
 0x2ec   :  { %v2230_v63 = vpack.c.bf16 %v2228_v16, %v2228_v16 }
 0x2ed   :  { %v2442_v7 = vpop.xlane.xlu0 %2441 }
 0x2ee   :  { %4445 = vrcp.f32 %v2442_v7  ;;  %4150 = vmatmul.mubr.msk.bf16.vlgmr.msra.gmra.mrb[36].mxu1 %vm145_vm0, %v2230_v63 }
 0x2ef   :  { %4162 = vmatpush3.bf16.msra.mxu1 %v6415_v10  ;;  %v6426_v10 = vld [vmem:[#allocation39_spill] sm:$0xff] }
 0x2f0   :  { %4270 = vmatprep.subr.msk.bf16.mxu1 %vm152_vm1, %v6416_v48 }
 0x2f3   :  { %v4442_v21 = vpop.eup %4441  ;;  %4164 = vmatpush3.bf16.msra.mxu1 %v2457_v47 }
 0x2f4   :  { %v4444_v44 = vpop.eup %4443  ;;  %v2656_v61 = vpop.xlane.xlu1 %2655  ;;  %v2447_v3 = vmul.f32 %v4442_v21, %v5868_v42  ;;  %4177 = vmatprep.subr.bf16.mxu1 %v6417_v56  ;;  %v6418_v42 = vld [vmem:[#allocation27_spill] sm:$0xff] }
 0x2f5   :  { %v2446_v36 = vmul.f32 %v4444_v44, %v5870_v27  ;;  %4447 = vrcp.f32 %v2656_v61  ;;  %v2677_v27 = vsel %vm152_vm1, %v6418_v42, 0  ;;  %v6428_v61 = vld [vmem:[#allocation33_spill] sm:$0xff] }
 0x2f7   :  { %v2659_v41 = vpop.xlane.xlu0 %2658  ;;  %v2449_v22 = vpack.c.bf16 %v2447_v3, %v2446_v36  ;;  %v3337_v3 = vsel %vm152_vm1, %v6428_v61, 0 }
 0x2f8   :  { %v4446_v38 = vpop.eup %4445  ;;  %4449 = vrcp.f32 %v2659_v41  ;;  %v2662_v50 = vpop.xlane.xlu1 %2661 }
 0x2f9   :  { %v2448_v17 = vmul.f32 %v4446_v38, %v5877_v60  ;;  %4451 = vrcp.f32 %v2662_v50  ;;  %4165 = vmatprep.mubr.msk.bf16.mxu1 %vm145_vm0, %v2449_v22  ;;  %v6429_v22 = vld [vmem:[#allocation34_spill] sm:$0xff] }
 0x2fb   :  { %v2450_v40 = vpack.c.bf16 %v2448_v17, %v2448_v17 }
 0x2fd   :  { %4166 = vmatmul.mubr.msk.bf16.vlgmr.msra.gmra.mrb[40].mxu1 %vm145_vm0, %v2450_v40 }
 0x2fe   :  { %4178 = vmatpush3.bf16.msra.mxu1 %v6417_v56 }
 0x2ff   :  { %4272 = vmatprep.subr.msk.bf16.mxu1 %vm152_vm1, %v6418_v42  ;;  %v4448_v0 = vpop.eup %4447 }
 0x300   :  { %v2666_v60 = vmul.f32 %v4448_v0, %v5881_v11  ;;  %v6420_v11 = vld [vmem:[#allocation29_spill] sm:$0xff] }
 0x302   :  { %v4450_v1 = vpop.eup %4449  ;;  %4180 = vmatpush3.bf16.msra.mxu1 %v2677_v27 }
 0x303   :  { %v4452_v58 = vpop.eup %4451  ;;  %v2876_v29 = vpop.xlane.xlu0 %2875  ;;  %v2667_v12 = vmul.f32 %v4450_v1, %v5889_v32  ;;  %4193 = vmatprep.subr.bf16.mxu1 %v6419_v19  ;;  %v2897_v32 = vsel %vm152_vm1, %v6420_v11, 0 }
 0x304   :  { %v2668_v39 = vmul.f32 %v4452_v58, %v5887_v28  ;;  %4453 = vrcp.f32 %v2876_v29  ;;  %v6421_v28 = vld [vmem:[#allocation30_spill] sm:$0xff] }
 0x305   :  { %v2669_v5 = vpack.c.bf16 %v2667_v12, %v2666_v60 }
 0x306   :  { %v2879_v43 = vpop.xlane.xlu1 %2878  ;;  %v2670_v30 = vpack.c.bf16 %v2668_v39, %v2668_v39 }
 0x307   :  { %4455 = vrcp.f32 %v2879_v43  ;;  %v2882_v15 = vpop.xlane.xlu0 %2881  ;;  %4181 = vmatprep.mubr.msk.bf16.mxu1 %vm145_vm0, %v2669_v5 }
 0x308   :  { %4457 = vrcp.f32 %v2882_v15  ;;  %4182 = vmatmul.mubr.msk.bf16.vlgmr.msra.gmra.mrb[44].mxu1 %vm145_vm0, %v2670_v30 }
 0x309   :  { %4194 = vmatpush3.bf16.msra.mxu1 %v6419_v19 }
 0x30a   :  { %4274 = vmatprep.subr.msk.bf16.mxu1 %vm152_vm1, %v6420_v11 }
 0x30d   :  { %4196 = vmatpush3.bf16.msra.mxu1 %v2897_v32 }
 0x30e   :  { %4209 = vmatprep.subr.bf16.mxu1 %v6421_v28  ;;  %v4454_v31 = vpop.eup %4453 }
 0x30f   :  { %v2886_v49 = vmul.f32 %v4454_v31, %v5896_v53  ;;  %v3117_v53 = vsel %vm152_vm1, %v6424_v23, 0 }
 0x311   :  { %v4456_v18 = vpop.eup %4455  ;;  %v3096_v20 = vpop.xlane.xlu1 %3095 }
 0x312   :  { %v4458_v34 = vpop.eup %4457  ;;  %4459 = vrcp.f32 %v3096_v20  ;;  %v2887_v46 = vmul.f32 %v4456_v18, %v6422_v62 }
 0x313   :  { %v2888_v45 = vmul.f32 %v4458_v34, %v6423_v9  ;;  %v3099_v4 = vpop.xlane.xlu0 %3098 }
 0x314   :  { %4461 = vrcp.f32 %v3099_v4  ;;  %v2889_v14 = vpack.c.bf16 %v2887_v46, %v2886_v49 }
 0x315   :  { %v2890_v37 = vpack.c.bf16 %v2888_v45, %v2888_v45 }
 0x316   :  { %4197 = vmatprep.mubr.msk.bf16.mxu1 %vm145_vm0, %v2889_v14 }
 0x317   :  { %4198 = vmatmul.mubr.msk.bf16.vlgmr.msra.gmra.mrb[48].mxu1 %vm145_vm0, %v2890_v37 }
 0x318   :  { %4210 = vmatpush3.bf16.msra.mxu1 %v6421_v28 }
 0x319   :  { %4276 = vmatprep.subr.msk.bf16.mxu1 %vm152_vm1, %v6424_v23 }
 0x31b   :  { %v3102_v33 = vpop.xlane.xlu1 %3101 }
 0x31c   :  { %v4460_v52 = vpop.eup %4459  ;;  %4463 = vrcp.f32 %v3102_v33  ;;  %4212 = vmatpush3.bf16.msra.mxu1 %v3117_v53 }
 0x31d   :  { %4225 = vmatprep.subr.bf16.mxu1 %v6425_v55  ;;  %v3106_v2 = vmul.f32 %v4460_v52, %v6426_v10 }
 0x31e   :  { %v4462_v35 = vpop.eup %4461 }
 0x31f   :  { %v3107_v51 = vmul.f32 %v4462_v35, %v6427_v59 }
 0x320   :  { %v3316_v26 = vpop.xlane.xlu0 %3315 }
 0x321   :  { %v3109_v16 = vpack.c.bf16 %v3107_v51, %v3106_v2  ;;  %4465 = vrcp.f32 %v3316_v26 }
 0x323   :  { %4213 = vmatprep.mubr.msk.bf16.mxu1 %vm145_vm0, %v3109_v16  ;;  %v3319_v63 = vpop.xlane.xlu1 %3318 }
 0x324   :  { %4467 = vrcp.f32 %v3319_v63 }
 0x326   :  { %v4464_v7 = vpop.eup %4463 }
 0x327   :  { %v3108_v48 = vmul.f32 %v4464_v7, %v5925_v24 }
 0x329   :  { %v3110_v47 = vpack.c.bf16 %v3108_v48, %v3108_v48 }
 0x32b   :  { %4214 = vmatmul.mubr.msk.bf16.vlgmr.msra.gmra.mrb[52].mxu1 %vm145_vm0, %v3110_v47  ;;  %v3322_v21 = vpop.xlane.xlu0 %3321  ;;  %v4466_v44 = vpop.eup %4465 }
 0x32c   :  { %4469 = vrcp.f32 %v3322_v21  ;;  %4226 = vmatpush3.bf16.msra.mxu1 %v6425_v55  ;;  %v3326_v36 = vmul.f32 %v4466_v44, %v5936_v13  ;;  %v6430_v13 = vld [vmem:[#allocation35_spill] sm:$0xff] }
 0x32d   :  { %4278 = vmatprep.subr.msk.bf16.mxu1 %vm152_vm1, %v6428_v61 }
 0x32e   :  { %v4468_v56 = vpop.eup %4467 }
 0x32f   :  { %v3327_v41 = vmul.f32 %v4468_v56, %v5941_v25  ;;  %v3557_v25 = vsel %vm152_vm1, %v6430_v13, 0 }
 0x330   :  { %4228 = vmatpush3.bf16.msra.mxu1 %v3337_v3 }
 0x331   :  { %v3329_v24 = vpack.c.bf16 %v3327_v41, %v3326_v36  ;;  %4241 = vmatprep.subr.bf16.mxu1 %v6429_v22 }
 0x333   :  { %4229 = vmatprep.mubr.msk.bf16.mxu1 %vm145_vm0, %v3329_v24  ;;  %v3539_v17 = vpop.xlane.xlu0 %3538 }
 0x334   :  { %4471 = vrcp.f32 %v3539_v17 }
 0x336   :  { %v4470_v38 = vpop.eup %4469 }
 0x337   :  { %v3328_v50 = vmul.f32 %v4470_v38, %v5951_v54 }
 0x339   :  { %v3330_v40 = vpack.c.bf16 %v3328_v50, %v3328_v50 }
 0x33b   :  { %4230 = vmatmul.mubr.msk.bf16.vlgmr.msra.gmra.mrb[56].mxu1 %vm145_vm0, %v3330_v40 }
 0x33c   :  { %v3536_v42 = vpop.xlane.xlu1 %3535  ;;  %4242 = vmatpush3.bf16.msra.mxu1 %v6429_v22 }
 0x33d   :  { %4473 = vrcp.f32 %v3536_v42  ;;  %4280 = vmatprep.subr.msk.bf16.mxu1 %vm152_vm1, %v6430_v13 }
 0x33e   :  { %v4472_v0 = vpop.eup %4471 }
 0x33f   :  { %v3547_v58 = vmul.f32 %v4472_v0, %v5968_v8 }
 0x340   :  { %v3542_v27 = vpop.xlane.xlu1 %3541  ;;  %4244 = vmatpush3.bf16.msra.mxu1 %v3557_v25 }
 0x341   :  { %4475 = vrcp.f32 %v3542_v27 }
 0x347   :  { %v4474_v54 = vpop.eup %4473 }
 0x348   :  { %v3546_v1 = vmul.f32 %v4474_v54, %v5986_v6 }
 0x34a   :  { %v3549_v29 = vpack.c.bf16 %v3547_v58, %v3546_v1 }
 0x34b   :  { %v4476_v60 = vpop.eup %4475 }
 0x34c   :  { %v3548_v12 = vmul.f32 %v4476_v60, %v5983_v57  ;;  %4245 = vmatprep.mubr.msk.bf16.mxu1 %vm145_vm0, %v3549_v29 }
 0x34e   :  { %v3550_v19 = vpack.c.bf16 %v3548_v12, %v3548_v12 }
 0x350   :  { %4246 = vmatmul.mubr.msk.bf16.vlgmr.msra.gmra.mrb[60].mxu1 %vm145_vm0, %v3550_v19 }
 0x35f   :  { %v4007_v39 = vpop.f32.mrb[0].mxu1 }
 0x360   :  { %v298_v5 = vmul.f32 0.20412415, %v4007_v39  ;;  %v282_v43 = vpop.f32.mrb[1].mxu1 }
 0x361   :  { %v296_v30 = vmul.f32 0.20412415, %v282_v43  ;;  %v4008_v15 = vpop.f32.mrb[2].mxu1 }
 0x362   :  { %301 = vst.msk [vmem:[%s6319_s5 + $0x10] sm:$0x3] %vm210_vm2, %v298_v5  ;;  %v285_v8 = vpop.f32.mrb[3].mxu1 }
 0x363   :  { %299 = vst.msk [vmem:[%s6319_s5] sm:$0xff] %vm145_vm0, %v296_v30  ;;  %v297_v57 = vmul.f32 0.20412415, %v285_v8 }
 0x365   :  { %300 = vst.msk [vmem:[%s6319_s5 + $0x8] sm:$0xff] %vm145_vm0, %v297_v57 }
 0x36e   :  { %v4023_v6 = vpop.f32.mrb[4].mxu1 }
 0x36f   :  { %v517_v11 = vmul.f32 0.20412415, %v4023_v6  ;;  %v501_v32 = vpop.f32.mrb[5].mxu1 }
 0x370   :  { %v515_v28 = vmul.f32 0.20412415, %v501_v32  ;;  %v4024_v31 = vpop.f32.mrb[6].mxu1 }
 0x371   :  { %3649 = vst.msk [vmem:[%s6319_s5 + $0x28] sm:$0x3] %vm210_vm2, %v517_v11  ;;  %v504_v18 = vpop.f32.mrb[7].mxu1 }
 0x372   :  { %3647 = vst.msk [vmem:[%s6319_s5 + $0x18] sm:$0xff] %vm145_vm0, %v515_v28  ;;  %v516_v20 = vmul.f32 0.20412415, %v504_v18 }
 0x374   :  { %3648 = vst.msk [vmem:[%s6319_s5 + $0x20] sm:$0xff] %vm145_vm0, %v516_v20 }
 0x376   :  { %v4039_v34 = vpop.f32.mrb[8].mxu1 }
 0x377   :  { %v737_v49 = vmul.f32 0.20412415, %v4039_v34  ;;  %v721_v62 = vpop.f32.mrb[9].mxu1 }
 0x378   :  { %v735_v46 = vmul.f32 0.20412415, %v721_v62  ;;  %v4040_v9 = vpop.f32.mrb[10].mxu1 }
 0x379   :  { %3664 = vst.msk [vmem:[%s6319_s5 + $0x40] sm:$0x3] %vm210_vm2, %v737_v49  ;;  %v724_v45 = vpop.f32.mrb[11].mxu1 }
 0x37a   :  { %3662 = vst.msk [vmem:[%s6319_s5 + $0x30] sm:$0xff] %vm145_vm0, %v735_v46  ;;  %v736_v4 = vmul.f32 0.20412415, %v724_v45 }
 0x37c   :  { %3663 = vst.msk [vmem:[%s6319_s5 + $0x38] sm:$0xff] %vm145_vm0, %v736_v4 }
 0x37e   :  { %v4055_v14 = vpop.f32.mrb[12].mxu1 }
 0x37f   :  { %v957_v37 = vmul.f32 0.20412415, %v4055_v14  ;;  %v941_v23 = vpop.f32.mrb[13].mxu1 }
 0x380   :  { %v955_v53 = vmul.f32 0.20412415, %v941_v23  ;;  %v4056_v33 = vpop.f32.mrb[14].mxu1 }
 0x381   :  { %3679 = vst.msk [vmem:[%s6319_s5 + $0x58] sm:$0x3] %vm210_vm2, %v957_v37  ;;  %v944_v52 = vpop.f32.mrb[15].mxu1 }
 0x382   :  { %3677 = vst.msk [vmem:[%s6319_s5 + $0x48] sm:$0xff] %vm145_vm0, %v955_v53  ;;  %v956_v55 = vmul.f32 0.20412415, %v944_v52 }
 0x384   :  { %3678 = vst.msk [vmem:[%s6319_s5 + $0x50] sm:$0xff] %vm145_vm0, %v956_v55 }
 0x389   :  { %v4071_v35 = vpop.f32.mrb[16].mxu1 }
 0x38a   :  { %v1177_v10 = vmul.f32 0.20412415, %v4071_v35  ;;  %v1161_v2 = vpop.f32.mrb[17].mxu1 }
 0x38b   :  { %v1175_v59 = vmul.f32 0.20412415, %v1161_v2  ;;  %v4072_v51 = vpop.f32.mrb[18].mxu1 }
 0x38c   :  { %3694 = vst.msk [vmem:[%s6319_s5 + $0x70] sm:$0x3] %vm210_vm2, %v1177_v10  ;;  %v1164_v26 = vpop.f32.mrb[19].mxu1 }
 0x38d   :  { %3692 = vst.msk [vmem:[%s6319_s5 + $0x60] sm:$0xff] %vm145_vm0, %v1175_v59  ;;  %v1176_v16 = vmul.f32 0.20412415, %v1164_v26 }
 0x38f   :  { %3693 = vst.msk [vmem:[%s6319_s5 + $0x68] sm:$0xff] %vm145_vm0, %v1176_v16 }
 0x391   :  { %v4087_v63 = vpop.f32.mrb[20].mxu1 }
 0x392   :  { %v1397_v7 = vmul.f32 0.20412415, %v4087_v63  ;;  %v1381_v48 = vpop.f32.mrb[21].mxu1 }
 0x393   :  { %v1395_v47 = vmul.f32 0.20412415, %v1381_v48  ;;  %v4088_v21 = vpop.f32.mrb[22].mxu1 }
 0x394   :  { %3709 = vst.msk [vmem:[%s6319_s5 + $0x88] sm:$0x3] %vm210_vm2, %v1397_v7  ;;  %v1384_v44 = vpop.f32.mrb[23].mxu1 }
 0x395   :  { %3707 = vst.msk [vmem:[%s6319_s5 + $0x78] sm:$0xff] %vm145_vm0, %v1395_v47  ;;  %v1396_v61 = vmul.f32 0.20412415, %v1384_v44 }
 0x397   :  { %3708 = vst.msk [vmem:[%s6319_s5 + $0x80] sm:$0xff] %vm145_vm0, %v1396_v61 }
 0x399   :  { %v4103_v3 = vpop.f32.mrb[24].mxu1 }
 0x39a   :  { %v1617_v56 = vmul.f32 0.20412415, %v4103_v3  ;;  %v1601_v36 = vpop.f32.mrb[25].mxu1 }
 0x39b   :  { %v1615_v41 = vmul.f32 0.20412415, %v1601_v36  ;;  %v4104_v24 = vpop.f32.mrb[26].mxu1 }
 0x39c   :  { %3724 = vst.msk [vmem:[%s6319_s5 + $0xa0] sm:$0x3] %vm210_vm2, %v1617_v56  ;;  %v1604_v22 = vpop.f32.mrb[27].mxu1 }
 0x39d   :  { %3722 = vst.msk [vmem:[%s6319_s5 + $0x90] sm:$0xff] %vm145_vm0, %v1615_v41  ;;  %v1616_v38 = vmul.f32 0.20412415, %v1604_v22 }
 0x39f   :  { %3723 = vst.msk [vmem:[%s6319_s5 + $0x98] sm:$0xff] %vm145_vm0, %v1616_v38 }
 0x3a4   :  { %v4119_v50 = vpop.f32.mrb[28].mxu1 }
 0x3a5   :  { %v1837_v17 = vmul.f32 0.20412415, %v4119_v50  ;;  %v1821_v40 = vpop.f32.mrb[29].mxu1 }
 0x3a6   :  { %v1835_v42 = vmul.f32 0.20412415, %v1821_v40  ;;  %v4120_v13 = vpop.f32.mrb[30].mxu1 }
 0x3a7   :  { %3739 = vst.msk [vmem:[%s6319_s5 + $0xb8] sm:$0x3] %vm210_vm2, %v1837_v17  ;;  %v1824_v25 = vpop.f32.mrb[31].mxu1 }
 0x3a8   :  { %3737 = vst.msk [vmem:[%s6319_s5 + $0xa8] sm:$0xff] %vm145_vm0, %v1835_v42  ;;  %v1836_v27 = vmul.f32 0.20412415, %v1824_v25 }
 0x3aa   :  { %3738 = vst.msk [vmem:[%s6319_s5 + $0xb0] sm:$0xff] %vm145_vm0, %v1836_v27 }
 0x3b3   :  { %v4135_v0 = vpop.f32.mrb[32].mxu1 }
 0x3b4   :  { %v2069_v54 = vmul.f32 0.20412415, %v4135_v0  ;;  %v2053_v1 = vpop.f32.mrb[33].mxu1 }
 0x3b5   :  { %v2067_v58 = vmul.f32 0.20412415, %v2053_v1  ;;  %v4136_v29 = vpop.f32.mrb[34].mxu1 }
 0x3b6   :  { %3759 = vst.msk [vmem:[%s6319_s5 + $0xd0] sm:$0x3] %vm210_vm2, %v2069_v54  ;;  %v2056_v60 = vpop.f32.mrb[35].mxu1 }
 0x3b7   :  { %3757 = vst.msk [vmem:[%s6319_s5 + $0xc0] sm:$0xff] %vm145_vm0, %v2067_v58  ;;  %v2068_v12 = vmul.f32 0.20412415, %v2056_v60 }
 0x3b9   :  { %3758 = vst.msk [vmem:[%s6319_s5 + $0xc8] sm:$0xff] %vm145_vm0, %v2068_v12 }
 0x3c1   :  { %v4151_v19 = vpop.f32.mrb[36].mxu1 }
 0x3c2   :  { %v2289_v39 = vmul.f32 0.20412415, %v4151_v19  ;;  %v2273_v5 = vpop.f32.mrb[37].mxu1 }
 0x3c3   :  { %v2287_v43 = vmul.f32 0.20412415, %v2273_v5  ;;  %v4152_v30 = vpop.f32.mrb[38].mxu1 }
 0x3c4   :  { %3774 = vst.msk [vmem:[%s6319_s5 + $0xe8] sm:$0x3] %vm210_vm2, %v2289_v39  ;;  %v2276_v15 = vpop.f32.mrb[39].mxu1 }
 0x3c5   :  { %3772 = vst.msk [vmem:[%s6319_s5 + $0xd8] sm:$0xff] %vm145_vm0, %v2287_v43  ;;  %v2288_v8 = vmul.f32 0.20412415, %v2276_v15 }
 0x3c7   :  { %3773 = vst.msk [vmem:[%s6319_s5 + $0xe0] sm:$0xff] %vm145_vm0, %v2288_v8 }
 0x3d0   :  { %v4167_v57 = vpop.f32.mrb[40].mxu1 }
 0x3d1   :  { %v2509_v6 = vmul.f32 0.20412415, %v4167_v57  ;;  %v2493_v11 = vpop.f32.mrb[41].mxu1 }
 0x3d2   :  { %v2507_v32 = vmul.f32 0.20412415, %v2493_v11  ;;  %v4168_v28 = vpop.f32.mrb[42].mxu1 }
 0x3d3   :  { %3789 = vst.msk [vmem:[%s6319_s5 + $0x100] sm:$0x3] %vm210_vm2, %v2509_v6  ;;  %v2496_v31 = vpop.f32.mrb[43].mxu1 }
 0x3d4   :  { %3787 = vst.msk [vmem:[%s6319_s5 + $0xf0] sm:$0xff] %vm145_vm0, %v2507_v32  ;;  %v2508_v18 = vmul.f32 0.20412415, %v2496_v31 }
 0x3d6   :  { %3788 = vst.msk [vmem:[%s6319_s5 + $0xf8] sm:$0xff] %vm145_vm0, %v2508_v18 }
 0x3db   :  { %v4183_v20 = vpop.f32.mrb[44].mxu1 }
 0x3dc   :  { %v2729_v34 = vmul.f32 0.20412415, %v4183_v20  ;;  %v2713_v49 = vpop.f32.mrb[45].mxu1 }
 0x3dd   :  { %v2727_v62 = vmul.f32 0.20412415, %v2713_v49  ;;  %v4184_v46 = vpop.f32.mrb[46].mxu1 }
 0x3de   :  { %3804 = vst.msk [vmem:[%s6319_s5 + $0x118] sm:$0x3] %vm210_vm2, %v2729_v34  ;;  %v2716_v9 = vpop.f32.mrb[47].mxu1 }
 0x3df   :  { %3802 = vst.msk [vmem:[%s6319_s5 + $0x108] sm:$0xff] %vm145_vm0, %v2727_v62  ;;  %v2728_v45 = vmul.f32 0.20412415, %v2716_v9 }
 0x3e1   :  { %3803 = vst.msk [vmem:[%s6319_s5 + $0x110] sm:$0xff] %vm145_vm0, %v2728_v45 }
 0x3ea   :  { %v4199_v4 = vpop.f32.mrb[48].mxu1 }
 0x3eb   :  { %v2949_v14 = vmul.f32 0.20412415, %v4199_v4  ;;  %v2933_v37 = vpop.f32.mrb[49].mxu1 }
 0x3ec   :  { %v2947_v23 = vmul.f32 0.20412415, %v2933_v37  ;;  %v4200_v53 = vpop.f32.mrb[50].mxu1 }
 0x3ed   :  { %3819 = vst.msk [vmem:[%s6319_s5 + $0x130] sm:$0x3] %vm210_vm2, %v2949_v14  ;;  %v2936_v33 = vpop.f32.mrb[51].mxu1 }
 0x3ee   :  { %3817 = vst.msk [vmem:[%s6319_s5 + $0x120] sm:$0xff] %vm145_vm0, %v2947_v23  ;;  %v2948_v52 = vmul.f32 0.20412415, %v2936_v33 }
 0x3f0   :  { %3818 = vst.msk [vmem:[%s6319_s5 + $0x128] sm:$0xff] %vm145_vm0, %v2948_v52 }
 0x3fe   :  { %v4215_v55 = vpop.f32.mrb[52].mxu1 }
 0x3ff   :  { %v3169_v35 = vmul.f32 0.20412415, %v4215_v55  ;;  %v3153_v10 = vpop.f32.mrb[53].mxu1 }
 0x400   :  { %v3167_v2 = vmul.f32 0.20412415, %v3153_v10  ;;  %v4216_v59 = vpop.f32.mrb[54].mxu1 }
 0x401   :  { %3834 = vst.msk [vmem:[%s6319_s5 + $0x148] sm:$0x3] %vm210_vm2, %v3169_v35  ;;  %v3156_v51 = vpop.f32.mrb[55].mxu1 }
 0x402   :  { %3832 = vst.msk [vmem:[%s6319_s5 + $0x138] sm:$0xff] %vm145_vm0, %v3167_v2  ;;  %v3168_v26 = vmul.f32 0.20412415, %v3156_v51 }
 0x404   :  { %3833 = vst.msk [vmem:[%s6319_s5 + $0x140] sm:$0xff] %vm145_vm0, %v3168_v26 }
 0x40e   :  { %v4231_v16 = vpop.f32.mrb[56].mxu1 }
 0x40f   :  { %v3389_v63 = vmul.f32 0.20412415, %v4231_v16  ;;  %v3373_v7 = vpop.f32.mrb[57].mxu1 }
 0x410   :  { %v3387_v48 = vmul.f32 0.20412415, %v3373_v7  ;;  %v4232_v47 = vpop.f32.mrb[58].mxu1 }
 0x411   :  { %3849 = vst.msk [vmem:[%s6319_s5 + $0x160] sm:$0x3] %vm210_vm2, %v3389_v63  ;;  %v3376_v21 = vpop.f32.mrb[59].mxu1 }
 0x412   :  { %3847 = vst.msk [vmem:[%s6319_s5 + $0x150] sm:$0xff] %vm145_vm0, %v3387_v48  ;;  %v3388_v44 = vmul.f32 0.20412415, %v3376_v21 }
 0x414   :  { %3848 = vst.msk [vmem:[%s6319_s5 + $0x158] sm:$0xff] %vm145_vm0, %v3388_v44 }
 0x423   :  { %v4247_v61 = vpop.f32.mrb[60].mxu1 }
 0x424   :  { %v3609_v3 = vmul.f32 0.20412415, %v4247_v61  ;;  %v3593_v56 = vpop.f32.mrb[61].mxu1 }
 0x425   :  { %v3607_v36 = vmul.f32 0.20412415, %v3593_v56  ;;  %v4248_v41 = vpop.f32.mrb[62].mxu1 }
 0x426   :  { %3864 = vst.msk [vmem:[%s6319_s5 + $0x178] sm:$0x3] %vm210_vm2, %v3609_v3  ;;  %v3596_v24 = vpop.f32.mrb[63].mxu1 }
 0x427   :  { %3862 = vst.msk [vmem:[%s6319_s5 + $0x168] sm:$0xff] %vm145_vm0, %v3607_v36  ;;  %v3608_v22 = vmul.f32 0.20412415, %v3596_v24 }
 0x429   :  { %3863 = vst.msk [vmem:[%s6319_s5 + $0x170] sm:$0xff] %vm145_vm0, %v3608_v22 }
 0x42a   :  { %3618 = vsyncpa [#allocation3], 1 }
 0x42b   :  { %3619 = vsyncpa [#allocation5], 1 }
 0x42c   :  { %3620 = vsyncpa [#allocation8], 1 }

</bundles_post_ra>
